<compile_context>
chip_gen: v5e
topology: v5e:2x2
jax: 0.10.0
libtpu: 0.0.40
codegen_flags: <defaults>
</compile_context>

<pallas_src>
import functools

import jax
import jax.numpy as jnp
import numpy as np
from jax import lax
from jax.experimental import pallas as pl
from jax.experimental.pallas import tpu as pltpu

EPS = 1e-5                      # torch nn.LayerNorm default
MXU_DTYPE = jnp.bfloat16        # matmul operand dtype (f32 accumulation)
ACT_DTYPE = jnp.bfloat16        # inter-block / stacked-input activation storage


# --------------------------- in-kernel helpers ------------------------------

def _dot(a, b):
    """a @ b with bf16 operands, f32 accumulation (MXU-friendly)."""
    return jnp.dot(a.astype(MXU_DTYPE), b.astype(MXU_DTYPE),
                   preferred_element_type=jnp.float32)


def _dot_nt(a, b):
    """a @ b.T (contract last dims) without an explicit transpose."""
    return lax.dot_general(a.astype(MXU_DTYPE), b.astype(MXU_DTYPE),
                           (((1,), (1,)), ((), ())),
                           preferred_element_type=jnp.float32)


def _layernorm(x, g, b):
    mu = jnp.mean(x, axis=-1, keepdims=True)
    var = jnp.mean((x - mu) ** 2, axis=-1, keepdims=True)
    return (x - mu) * lax.rsqrt(var + EPS) * g + b


def _gelu(x):
    # tanh-approximate GELU: tanh runs on the EUP slot (VALU already carries
    # LayerNorm / softmax work), unlike an erf VPU polynomial.
    c = 0.7978845608028654      # sqrt(2/pi)
    return 0.5 * x * (1.0 + jnp.tanh(c * (x + 0.044715 * x * x * x)))


def _softmax(s):
    s = s - jnp.max(s, axis=-1, keepdims=True)
    p = jnp.exp(s)
    return p * pl.reciprocal(jnp.sum(p, axis=-1, keepdims=True), approx=True)


def _ffn_residual(x, m, w1a, w1b, b1, lg, lb, w2, b2):
    """x + Linear2(GELU(LayerNorm(cat([x, m], -1) @ W1 + b1)))  (W1 pre-split)."""
    h = _dot(x, w1a) + _dot(m, w1b) + b1
    h = _layernorm(h, lg, lb)
    h = _gelu(h)
    return x + _dot(h, w2) + b2


def _rope(x, cos, sin_m, sin_p):
    """RoPE on a full head-major [T, D] tensor, applied ONCE (outside the head
    loop).  rotate_half on interleaved (even, odd) pairs is two lane rolls with
    the mask/sign folded into sin_m / sin_p on the host:
        rot(x)[2i]   = -x[2i+1]  ->  roll(x, D-1) (= x[j+1]) * sin_m   (even j)
        rot(x)[2i+1] =  x[2i]    ->  roll(x, 1)   (= x[j-1]) * sin_p   (odd  j)
    Cross-head wraparound terms are multiplied by the zeros in sin_m/sin_p."""
    d = x.shape[-1]
    return (x * cos
            + pltpu.roll(x, shift=d - 1, axis=1) * sin_m
            + pltpu.roll(x, shift=1, axis=1) * sin_p)


def _attn_proj(q, k, v, wo, num_heads, scale):
    """Per-head softmax attention with the output projection folded into the head
    loop: acc += softmax(q_h k_h^T * scale) v_h @ Wo[h*dh:(h+1)*dh].
    Accumulates into one lane-dense [T, D] f32 buffer (no per-head concat)."""
    dh = q.shape[-1] // num_heads
    acc = jnp.zeros((q.shape[0], wo.shape[-1]), jnp.float32)
    for h in range(num_heads):                       # static unroll
        sl = slice(h * dh, (h + 1) * dh)
        p = _softmax(_dot_nt(q[:, sl], k[:, sl]) * scale)
        acc = acc + _dot(_dot(p, v[:, sl]), wo[sl, :])
    return acc


# --------------------------------- kernels ----------------------------------

def _fused_kernel(desc_ref, feat_ref, cos_ref, sinm_ref, sinp_ref,
                  # --- SAF (cross_sd_attn) ---
                  s_g_ref, s_b_ref, f_g_ref, f_b_ref,
                  pw_ref, pb_ref, wq_ref, bq_ref, wkv_ref, bkv_ref,
                  sow_ref, sob_ref,
                  a_w1a_ref, a_w1b_ref, a_b1_ref, a_lg_ref, a_lb_ref,
                  a_w2_ref, a_b2_ref,
                  # --- SelfBlock ---
                  wqkv_ref, bqkv_ref, ow_ref, ob_ref,
                  b_w1a_ref, b_w1b_ref, b_b1_ref, b_lg_ref, b_lb_ref,
                  b_w2_ref, b_b2_ref,
                  # --- skip FFN ---
                  c_w1a_ref, c_w1b_ref, c_b1_ref, c_lg_ref, c_lb_ref,
                  c_w2_ref, c_b2_ref,
                  o_ref, *, num_heads, scale):
    """SAF -> Self (RoPE) -> skip-FFN for one batch element, fully fused."""
    d = o_ref.shape[-1]
    x_in = desc_ref[...].astype(jnp.float32)                 # original desc
    feat = feat_ref[...].astype(jnp.float32)

    # ---- SAF: desc attends to the projected segment features ----
    # TODO(synk): f_LayerNorm source is not provided; implemented as channels-last
    # affine LayerNorm so the .transpose(1,2) shuffles of the original fold away.
    dsc = _layernorm(x_in, f_g_ref[...], f_b_ref[...])       # f_fnorm1(desc)
    ft = _layernorm(feat, s_g_ref[...], s_b_ref[...])        # s_fnorm1(feature)
    ft = _dot(ft, pw_ref[...]) + pb_ref[...]
    q = _dot(dsc, wq_ref[...]) + bq_ref[...]                  # [N, D]
    kv = _dot(ft, wkv_ref[...]) + bkv_ref[...]                # [M, 2D] = [k | v]
    msg = _attn_proj(q, kv[:, :d], kv[:, d:], sow_ref[...],
                     num_heads, scale) + sob_ref[...]
    x = _ffn_residual(dsc, msg, a_w1a_ref[...], a_w1b_ref[...], a_b1_ref[...],
                      a_lg_ref[...], a_lb_ref[...], a_w2_ref[...], a_b2_ref[...])

    # ---- SelfBlock with rotary position encoding ----
    cos = cos_ref[...].astype(jnp.float32)
    sinm = sinm_ref[...].astype(jnp.float32)
    sinp = sinp_ref[...].astype(jnp.float32)
    qkv = _dot(x, wqkv_ref[...]) + bqkv_ref[...]              # [N, 3D] = [q | k | v]
    qr = _rope(qkv[:, :d], cos, sinm, sinp)
    kr = _rope(qkv[:, d:2 * d], cos, sinm, sinp)
    msg = _attn_proj(qr, kr, qkv[:, 2 * d:], ow_ref[...],
                     num_heads, scale) + ob_ref[...]
    x = _ffn_residual(x, msg, b_w1a_ref[...], b_w1b_ref[...], b_b1_ref[...],
                      b_lg_ref[...], b_lb_ref[...], b_w2_ref[...], b_b2_ref[...])

    # ---- skip FFN against the original descriptors ----
    out = _ffn_residual(x, x_in, c_w1a_ref[...], c_w1b_ref[...], c_b1_ref[...],
                        c_lg_ref[...], c_lb_ref[...], c_w2_ref[...], c_b2_ref[...])
    o_ref[...] = out.astype(o_ref.dtype)


def _cross_kernel(x0_ref, x1_ref,
                  wqk_ref, bqk_ref, wv_ref, bv_ref, wo_ref, bo_ref,
                  w1a_ref, w1b_ref, b1_ref, lg_ref, lb_ref, w2_ref, b2_ref,
                  o0_ref, o1_ref, *, num_heads, scale):
    """CrossBlock for one batch element: both streams handled in one grid step."""
    d = o0_ref.shape[-1]
    dh = d // num_heads
    x0 = x0_ref[...].astype(jnp.float32)
    x1 = x1_ref[...].astype(jnp.float32)
    qk0 = _dot(x0, wqk_ref[...]) + bqk_ref[...]
    qk1 = _dot(x1, wqk_ref[...]) + bqk_ref[...]
    v0 = _dot(x0, wv_ref[...]) + bv_ref[...]
    v1 = _dot(x1, wv_ref[...]) + bv_ref[...]
    wo = wo_ref[...]
    m0 = jnp.zeros((x0.shape[0], d), jnp.float32)
    m1 = jnp.zeros((x1.shape[0], d), jnp.float32)
    for h in range(num_heads):                        # static unroll
        sl = slice(h * dh, (h + 1) * dh)
        q0h, q1h, v0h, v1h = qk0[:, sl], qk1[:, sl], v0[:, sl], v1[:, sl]
        woh = wo[sl, :]
        s01 = _dot_nt(q0h, q1h) * scale               # sim
        # TODO(synk): on v5e reuse s01 (axis-0 softmax + transposed contraction)
        # instead of a second QK^T matmul; on v6e/v7x the MXU has slack.
        s10 = _dot_nt(q1h, q0h) * scale               # sim^T (no XLU transpose)
        m0 = m0 + _dot(_dot(_softmax(s01), v1h), woh)
        m1 = m1 + _dot(_dot(_softmax(s10), v0h), woh)
    m0 = m0 + bo_ref[...]
    m1 = m1 + bo_ref[...]
    out0 = _ffn_residual(x0, m0, w1a_ref[...], w1b_ref[...], b1_ref[...],
                         lg_ref[...], lb_ref[...], w2_ref[...], b2_ref[...])
    out1 = _ffn_residual(x1, m1, w1a_ref[...], w1b_ref[...], b1_ref[...],
                         lg_ref[...], lb_ref[...], w2_ref[...], b2_ref[...])
    o0_ref[...] = out0.astype(o0_ref.dtype)
    o1_ref[...] = out1.astype(o1_ref.dtype)


# --------------------------------- wrappers ----------------------------------

def _wspec(a):
    nd = a.ndim
    return pl.BlockSpec(a.shape, lambda *_: (0,) * nd)   # weight resident across grid


def _bspec(rows, cols, offset=0):
    return pl.BlockSpec((None, rows, cols),
                        lambda b, _o=offset: (b + _o, 0, 0))   # squeezed batch dim


@functools.lru_cache(maxsize=None)
def _vmem_limit_bytes():
    """Generation-aware scoped-VMEM budget: ~3/4 of physical VMEM, capped.
    v7x (64 MiB/TC) -> 48 MiB; v5e/v6e (128 MiB) -> 96 MiB."""
    try:
        cap = int(pltpu.get_tpu_info().vmem_capacity_bytes)
    except Exception:                                     # older JAX / non-TPU trace
        cap = 0
    if cap <= 0:
        cap = 64 * 1024 * 1024
    return int(max(32 * 1024 * 1024, min(cap * 3 // 4, 100 * 1024 * 1024)))


def _compiler_params():
    return pltpu.CompilerParams(dimension_semantics=("parallel",),
                                vmem_limit_bytes=_vmem_limit_bytes())


def _cost_estimate(flops, transcendentals, operands, out_bytes):
    bytes_accessed = int(out_bytes) + sum(
        int(np.prod(a.shape)) * np.dtype(a.dtype).itemsize for a in operands)
    return pl.CostEstimate(flops=int(flops), transcendentals=int(transcendentals),
                           bytes_accessed=int(bytes_accessed))


def _ffn_args(f):
    return [f['w1a'], f['w1b'], f['b1'], f['g'], f['be'], f['w2'], f['b2']]


def fused_block(params, desc, feat, cos, sin_m, sin_p, num_heads):
    """SAF + Self + skip-FFN fused: one pallas_call over the stacked (2B,) grid."""
    b2, n, d = desc.shape
    m = feat.shape[1]
    sa, se, sk = params['saf'], params['self'], params['ffn']
    wargs = ([sa['s_g'], sa['s_b'], sa['f_g'], sa['f_b'],
              sa['proj_w'], sa['proj_b'], sa['Wq_w'], sa['Wq_b'],
              sa['Wkv_w'], sa['Wkv_b'], sa['out_w'], sa['out_b']]
             + _ffn_args(sa['ffn'])
             + [se['Wqkv_w'], se['Wqkv_b'], se['out_w'], se['out_b']]
             + _ffn_args(se['ffn'])
             + _ffn_args(sk))
    kern = functools.partial(_fused_kernel, num_heads=num_heads,
                             scale=float((d // num_heads) ** -0.5))
    flops = b2 * (d * d * (6 * m + 48 * n) + 4 * n * d * (m + n))
    trans = b2 * (num_heads * n * (m + n) + 6 * n * d)
    ce = _cost_estimate(flops, trans, (desc, feat, cos, sin_m, sin_p, *wargs),
                        b2 * n * d * np.dtype(ACT_DTYPE).itemsize)
    return pl.pallas_call(
        kern,
        out_shape=jax.ShapeDtypeStruct((b2, n, d), ACT_DTYPE),
        grid=(b2,),
        in_specs=[_bspec(n, d), _bspec(m, d),
                  _bspec(n, d), _bspec(n, d), _bspec(n, d)]
                 + [_wspec(w) for w in wargs],
        out_specs=_bspec(n, d),
        compiler_params=_compiler_params(),
        cost_estimate=ce,
    )(desc, feat, cos, sin_m, sin_p, *wargs)


def cross_block(p, desc, num_heads):
    """CrossBlock over the stacked [2B, N, D] activations: stream 0 / stream 1 are
    addressed by two index maps (b and b+B) on the SAME array — no host concat —
    and emitted as two separate outputs (no output slicing)."""
    b2, n, d = desc.shape
    b = b2 // 2
    wargs = [p['to_qk_w'], p['to_qk_b'], p['to_v_w'], p['to_v_b'],
             p['to_out_w'], p['to_out_b']] + _ffn_args(p['ffn'])
    kern = functools.partial(_cross_kernel, num_heads=num_heads,
                             scale=float((d // num_heads) ** -0.5))
    flops = b * (36 * n * d * d + 8 * n * n * d)
    trans = b * (2 * num_heads * n * n + 12 * n * d)
    ce = _cost_estimate(flops, trans, (desc, *wargs), 2 * b * n * d * 4)
    out0, out1 = pl.pallas_call(
        kern,
        out_shape=(jax.ShapeDtypeStruct((b, n, d), jnp.float32),
                   jax.ShapeDtypeStruct((b, n, d), jnp.float32)),
        grid=(b,),
        in_specs=[_bspec(n, d, offset=0), _bspec(n, d, offset=b)]
                 + [_wspec(w) for w in wargs],
        out_specs=(_bspec(n, d), _bspec(n, d)),
        compiler_params=_compiler_params(),
        cost_estimate=ce,
    )(desc, desc, *wargs)
    return out0, out1


# ------------------------------- forward pass --------------------------------

def prepare_encoding(enc, num_heads):
    """[2, B, 1, N, Dh] rotary (cos, sin) -> head-tiled [B, N, D] tensors so that
    RoPE is x*cos + roll(x, D-1)*sin_m + roll(x, 1)*sin_p (rotate_half on the
    original interleaved pairs, sign/mask folded on the host)."""
    cos = jnp.tile(enc[0, :, 0], (1, 1, num_heads))           # [B, N, D]
    sin = jnp.tile(enc[1, :, 0], (1, 1, num_heads))
    even = (jnp.arange(cos.shape[-1]) % 2) == 0
    sin_m = jnp.where(even, -sin, 0.0)      # multiplies x[j+1] at even j
    sin_p = jnp.where(even, 0.0, sin)       # multiplies x[j-1] at odd  j
    return cos.astype(ACT_DTYPE), sin_m.astype(ACT_DTYPE), sin_p.astype(ACT_DTYPE)


def seg_transformer(params, desc0, desc1, enc0, enc1, feat0, feat1, num_heads):
    b = desc0.shape[0]
    # TODO(synk): CDA (segment_attention) class definition is not provided in the
    # source module; features pass through unchanged here.
    # Stack the two descriptor streams along batch (shared weights) in bf16 so the
    # fused SAF/Self/skip-FFN kernel runs ONCE over a (2B,) parallel grid.
    desc = jnp.concatenate([desc0, desc1], axis=0).astype(ACT_DTYPE)   # [2B, N, D]
    feat = jnp.concatenate([feat0, feat1], axis=0).astype(ACT_DTYPE)   # [2B, M, D]
    cos0, sm0, sp0 = prepare_encoding(enc0, num_heads)
    cos1, sm1, sp1 = prepare_encoding(enc1, num_heads)
    cos = jnp.concatenate([cos0, cos1], axis=0)
    sm = jnp.concatenate([sm0, sm1], axis=0)
    sp = jnp.concatenate([sp0, sp1], axis=0)

    desc = fused_block(params, desc, feat, cos, sm, sp, num_heads)     # [2B, N, D] bf16
    return cross_block(params['cross'], desc, num_heads)               # (desc0, desc1)


# ------------------------- deterministic parameters --------------------------

def _dense(key, din, dout):
    kw, kb = jax.random.split(key)
    w = jax.random.normal(kw, (din, dout), jnp.float32) / jnp.sqrt(float(din))
    b = 0.01 * jax.random.normal(kb, (dout,), jnp.float32)
    return w, b


def _ffn_init(key, d):
    k1, k2 = jax.random.split(key)
    w1, b1 = _dense(k1, 2 * d, 2 * d)
    w2, b2 = _dense(k2, 2 * d, d)
    return dict(w1=w1, b1=b1,
                g=jnp.ones((2 * d,), jnp.float32), be=jnp.zeros((2 * d,), jnp.float32),
                w2=w2, b2=b2)


def init_params(key, d):
    ks = jax.random.split(key, 13)
    self_p = {}
    self_p['Wqkv_w'], self_p['Wqkv_b'] = _dense(ks[0], d, 3 * d)
    self_p['out_w'], self_p['out_b'] = _dense(ks[1], d, d)
    self_p['ffn'] = _ffn_init(ks[2], d)
    cross_p = {}
    cross_p['to_qk_w'], cross_p['to_qk_b'] = _dense(ks[3], d, d)
    cross_p['to_v_w'], cross_p['to_v_b'] = _dense(ks[4], d, d)
    cross_p['to_out_w'], cross_p['to_out_b'] = _dense(ks[5], d, d)
    cross_p['ffn'] = _ffn_init(ks[6], d)
    saf_p = dict(s_g=jnp.ones((d,), jnp.float32), s_b=jnp.zeros((d,), jnp.float32),
                 f_g=jnp.ones((d,), jnp.float32), f_b=jnp.zeros((d,), jnp.float32))
    saf_p['proj_w'], saf_p['proj_b'] = _dense(ks[7], d, d)
    saf_p['Wq_w'], saf_p['Wq_b'] = _dense(ks[8], d, d)
    saf_p['Wkv_w'], saf_p['Wkv_b'] = _dense(ks[9], d, 2 * d)
    saf_p['out_w'], saf_p['out_b'] = _dense(ks[10], d, d)
    saf_p['ffn'] = _ffn_init(ks[11], d)
    ffn_p = _ffn_init(ks[12], d)
    return dict(self=self_p, cross=cross_p, saf=saf_p, ffn=ffn_p)


# --------------------- one-time host-side parameter prep ---------------------

def _qkv_perm(d, num_heads):
    """Column source map: original interleaved (q,k,v)-triple layout (head-major,
    dim-major, qkv innermost) -> contiguous [q | k | v], head-major, natural dims."""
    dh = d // num_heads
    src = np.zeros(3 * d, dtype=np.int32)
    for h in range(num_heads):
        for i in range(dh):
            base = h * dh * 3 + i * 3
            src[0 * d + h * dh + i] = base + 0
            src[1 * d + h * dh + i] = base + 1
            src[2 * d + h * dh + i] = base + 2
    return src


def _kv_perm(d, num_heads):
    """Column source map: interleaved (k,v) pairs -> contiguous [k | v], head-major."""
    dh = d // num_heads
    src = np.zeros(2 * d, dtype=np.int32)
    for h in range(num_heads):
        for i in range(dh):
            src[h * dh + i] = h * dh * 2 + i * 2 + 0
            src[d + h * dh + i] = h * dh * 2 + i * 2 + 1
    return src


def _prep_ffn(f, d):
    return dict(w1a=f['w1'][:d].astype(MXU_DTYPE),      # pre-split cat([x, m]) weight
                w1b=f['w1'][d:].astype(MXU_DTYPE),
                b1=f['b1'].reshape(1, -1),
                g=f['g'].reshape(1, -1),
                be=f['be'].reshape(1, -1),
                w2=f['w2'].astype(MXU_DTYPE),
                b2=f['b2'].reshape(1, -1))


def prepare_params(params, d, num_heads):
    """Head-major column permutations, W1 pre-split, bf16 weights, [1, X] biases —
    done once on the host."""
    assert (d // num_heads) % 2 == 0
    qkv_src = _qkv_perm(d, num_heads)
    kv_src = _kv_perm(d, num_heads)
    sp, cp, sa = params['self'], params['cross'], params['saf']
    self_p = dict(Wqkv_w=sp['Wqkv_w'][:, qkv_src].astype(MXU_DTYPE),
                  Wqkv_b=sp['Wqkv_b'][qkv_src].reshape(1, -1),
                  out_w=sp['out_w'].astype(MXU_DTYPE),
                  out_b=sp['out_b'].reshape(1, -1),
                  ffn=_prep_ffn(sp['ffn'], d))
    cross_p = dict(to_qk_w=cp['to_qk_w'].astype(MXU_DTYPE),
                   to_qk_b=cp['to_qk_b'].reshape(1, -1),
                   to_v_w=cp['to_v_w'].astype(MXU_DTYPE),
                   to_v_b=cp['to_v_b'].reshape(1, -1),
                   to_out_w=cp['to_out_w'].astype(MXU_DTYPE),
                   to_out_b=cp['to_out_b'].reshape(1, -1),
                   ffn=_prep_ffn(cp['ffn'], d))
    saf_p = dict(s_g=sa['s_g'].reshape(1, -1), s_b=sa['s_b'].reshape(1, -1),
                 f_g=sa['f_g'].reshape(1, -1), f_b=sa['f_b'].reshape(1, -1),
                 proj_w=sa['proj_w'].astype(MXU_DTYPE), proj_b=sa['proj_b'].reshape(1, -1),
                 Wq_w=sa['Wq_w'].astype(MXU_DTYPE), Wq_b=sa['Wq_b'].reshape(1, -1),
                 Wkv_w=sa['Wkv_w'][:, kv_src].astype(MXU_DTYPE),
                 Wkv_b=sa['Wkv_b'][kv_src].reshape(1, -1),
                 out_w=sa['out_w'].astype(MXU_DTYPE), out_b=sa['out_b'].reshape(1, -1),
                 ffn=_prep_ffn(sa['ffn'], d))
    return dict(self=self_p, cross=cross_p, saf=saf_p,
                ffn=_prep_ffn(params['ffn'], d))


# ------------------------------------ main ------------------------------------

if __name__ == "__main__":
    B, N, M, D, H = 2, 8, 16, 32, 2
    Dh = D // H
    key = jax.random.PRNGKey(0)
    kp, k0, k1, kf0, kf1 = jax.random.split(key, 5)
    raw_params = init_params(kp, D)
    params = prepare_params(raw_params, D, H)          # one-time host-side prep

    desc0 = jax.random.normal(k0, (B, N, D), jnp.float32)
    desc1 = jax.random.normal(k1, (B, N, D), jnp.float32)
    feat0 = jax.random.normal(kf0, (B, M, D), jnp.float32)
    feat1 = jax.random.normal(kf1, (B, M, D), jnp.float32)

    # deterministic rotary encoding: [2, B, 1, N, Dh]
    pos = jnp.arange(N, dtype=jnp.float32)[:, None]
    freqs = jnp.exp(-jnp.arange(Dh, dtype=jnp.float32)[None, :] / Dh)
    angle = pos * freqs
    enc = jnp.stack([jnp.cos(angle), jnp.sin(angle)])            # [2, N, Dh]
    enc = jnp.broadcast_to(enc[:, None, None], (2, B, 1, N, Dh))
    enc0, enc1 = enc, enc

    fwd = jax.jit(functools.partial(seg_transformer, num_heads=H))
    out0, out1 = fwd(params, desc0, desc1, enc0, enc1, feat0, feat1)
    jax.block_until_ready((out0, out1))

    assert out0.shape == (B, N, D) and out1.shape == (B, N, D)
    assert bool(jnp.all(jnp.isfinite(out0))) and bool(jnp.all(jnp.isfinite(out1)))
    print("KERNEL_OK")
</pallas_src>

<mosaic_0001>
module attributes {stable_mosaic.version = 11 : i64} {
  func.func @_cross_kernel(%arg0: i32, %arg1: memref<1x8x32xbf16, #tpu.memory_space<vmem>>, %arg2: memref<1x8x32xbf16, #tpu.memory_space<vmem>>, %arg3: memref<32x32xbf16, #tpu.memory_space<vmem>>, %arg4: memref<1x32xf32, #tpu.memory_space<vmem>>, %arg5: memref<32x32xbf16, #tpu.memory_space<vmem>>, %arg6: memref<1x32xf32, #tpu.memory_space<vmem>>, %arg7: memref<32x32xbf16, #tpu.memory_space<vmem>>, %arg8: memref<1x32xf32, #tpu.memory_space<vmem>>, %arg9: memref<32x64xbf16, #tpu.memory_space<vmem>>, %arg10: memref<32x64xbf16, #tpu.memory_space<vmem>>, %arg11: memref<1x64xf32, #tpu.memory_space<vmem>>, %arg12: memref<1x64xf32, #tpu.memory_space<vmem>>, %arg13: memref<1x64xf32, #tpu.memory_space<vmem>>, %arg14: memref<64x32xbf16, #tpu.memory_space<vmem>>, %arg15: memref<1x32xf32, #tpu.memory_space<vmem>>, %arg16: memref<1x8x32xf32, #tpu.memory_space<vmem>>, %arg17: memref<1x8x32xf32, #tpu.memory_space<vmem>>) attributes {dimension_semantics = [#tpu.dimension_semantics<parallel>], iteration_bounds = array<i64: 2>, scalar_prefetch = 0 : i64, scratch_operands = 0 : i64, tpu.core_type = #tpu.core_type<tc>, window_params = [{transform_indices = @transform_0, window_bounds = array<i64: 1, 8, 32>}, {transform_indices = @transform_1, window_bounds = array<i64: 1, 8, 32>}, {pipeline_mode = #tpu.pipeline_mode<synchronous>, transform_indices = @transform_2, window_bounds = array<i64: 32, 32>}, {pipeline_mode = #tpu.pipeline_mode<synchronous>, transform_indices = @transform_3, window_bounds = array<i64: 1, 32>}, {pipeline_mode = #tpu.pipeline_mode<synchronous>, transform_indices = @transform_4, window_bounds = array<i64: 32, 32>}, {pipeline_mode = #tpu.pipeline_mode<synchronous>, transform_indices = @transform_5, window_bounds = array<i64: 1, 32>}, {pipeline_mode = #tpu.pipeline_mode<synchronous>, transform_indices = @transform_6, window_bounds = array<i64: 32, 32>}, {pipeline_mode = #tpu.pipeline_mode<synchronous>, transform_indices = @transform_7, window_bounds = array<i64: 1, 32>}, {pipeline_mode = #tpu.pipeline_mode<synchronous>, transform_indices = @transform_8, window_bounds = array<i64: 32, 64>}, {pipeline_mode = #tpu.pipeline_mode<synchronous>, transform_indices = @transform_9, window_bounds = array<i64: 32, 64>}, {pipeline_mode = #tpu.pipeline_mode<synchronous>, transform_indices = @transform_10, window_bounds = array<i64: 1, 64>}, {pipeline_mode = #tpu.pipeline_mode<synchronous>, transform_indices = @transform_11, window_bounds = array<i64: 1, 64>}, {pipeline_mode = #tpu.pipeline_mode<synchronous>, transform_indices = @transform_12, window_bounds = array<i64: 1, 64>}, {pipeline_mode = #tpu.pipeline_mode<synchronous>, transform_indices = @transform_13, window_bounds = array<i64: 64, 32>}, {pipeline_mode = #tpu.pipeline_mode<synchronous>, transform_indices = @transform_14, window_bounds = array<i64: 1, 32>}, {transform_indices = @transform_15, window_bounds = array<i64: 1, 8, 32>}, {transform_indices = @transform_16, window_bounds = array<i64: 1, 8, 32>}]} {
    %c0 = arith.constant 0 : index
    %c0_0 = arith.constant 0 : index
    %c0_1 = arith.constant 0 : index
    %0 = vector.load %arg1[%c0, %c0_0, %c0_1] : memref<1x8x32xbf16, #tpu.memory_space<vmem>>, vector<1x8x32xbf16>
    %1 = vector.shape_cast %0 : vector<1x8x32xbf16> to vector<8x32xbf16>
    %2 = arith.extf %1 : vector<8x32xbf16> to vector<8x32xf32>
    %c0_2 = arith.constant 0 : index
    %c0_3 = arith.constant 0 : index
    %c0_4 = arith.constant 0 : index
    %3 = vector.load %arg2[%c0_2, %c0_3, %c0_4] : memref<1x8x32xbf16, #tpu.memory_space<vmem>>, vector<1x8x32xbf16>
    %4 = vector.shape_cast %3 : vector<1x8x32xbf16> to vector<8x32xbf16>
    %5 = arith.extf %4 : vector<8x32xbf16> to vector<8x32xf32>
    %c0_5 = arith.constant 0 : index
    %c0_6 = arith.constant 0 : index
    %6 = vector.load %arg3[%c0_5, %c0_6] : memref<32x32xbf16, #tpu.memory_space<vmem>>, vector<32x32xbf16>
    %7 = arith.truncf %2 : vector<8x32xf32> to vector<8x32xbf16>
    %cst = arith.constant dense<0.000000e+00> : vector<8x32xf32>
    %8 = tpu.matmul %7, %6, %cst {dimension_numbers = #tpu.dot_dimension_numbers<[1], [0], [0], [1], [0, 0, 1, 1], [], []>} : vector<8x32xbf16>, vector<32x32xbf16>, vector<8x32xf32> -> vector<8x32xf32>
    %c0_7 = arith.constant 0 : index
    %c0_8 = arith.constant 0 : index
    %9 = vector.load %arg4[%c0_7, %c0_8] : memref<1x32xf32, #tpu.memory_space<vmem>>, vector<1x32xf32>
    %10 = vector.broadcast %9 : vector<1x32xf32> to vector<8x32xf32>
    %11 = arith.addf %8, %10 : vector<8x32xf32>
    %c0_9 = arith.constant 0 : index
    %c0_10 = arith.constant 0 : index
    %12 = vector.load %arg3[%c0_9, %c0_10] : memref<32x32xbf16, #tpu.memory_space<vmem>>, vector<32x32xbf16>
    %13 = arith.truncf %5 : vector<8x32xf32> to vector<8x32xbf16>
    %cst_11 = arith.constant dense<0.000000e+00> : vector<8x32xf32>
    %14 = tpu.matmul %13, %12, %cst_11 {dimension_numbers = #tpu.dot_dimension_numbers<[1], [0], [0], [1], [0, 0, 1, 1], [], []>} : vector<8x32xbf16>, vector<32x32xbf16>, vector<8x32xf32> -> vector<8x32xf32>
    %c0_12 = arith.constant 0 : index
    %c0_13 = arith.constant 0 : index
    %15 = vector.load %arg4[%c0_12, %c0_13] : memref<1x32xf32, #tpu.memory_space<vmem>>, vector<1x32xf32>
    %16 = vector.broadcast %15 : vector<1x32xf32> to vector<8x32xf32>
    %17 = arith.addf %14, %16 : vector<8x32xf32>
    %c0_14 = arith.constant 0 : index
    %c0_15 = arith.constant 0 : index
    %18 = vector.load %arg5[%c0_14, %c0_15] : memref<32x32xbf16, #tpu.memory_space<vmem>>, vector<32x32xbf16>
    %19 = arith.truncf %2 : vector<8x32xf32> to vector<8x32xbf16>
    %cst_16 = arith.constant dense<0.000000e+00> : vector<8x32xf32>
    %20 = tpu.matmul %19, %18, %cst_16 {dimension_numbers = #tpu.dot_dimension_numbers<[1], [0], [0], [1], [0, 0, 1, 1], [], []>} : vector<8x32xbf16>, vector<32x32xbf16>, vector<8x32xf32> -> vector<8x32xf32>
    %c0_17 = arith.constant 0 : index
    %c0_18 = arith.constant 0 : index
    %21 = vector.load %arg6[%c0_17, %c0_18] : memref<1x32xf32, #tpu.memory_space<vmem>>, vector<1x32xf32>
    %22 = vector.broadcast %21 : vector<1x32xf32> to vector<8x32xf32>
    %23 = arith.addf %20, %22 : vector<8x32xf32>
    %c0_19 = arith.constant 0 : index
    %c0_20 = arith.constant 0 : index
    %24 = vector.load %arg5[%c0_19, %c0_20] : memref<32x32xbf16, #tpu.memory_space<vmem>>, vector<32x32xbf16>
    %25 = arith.truncf %5 : vector<8x32xf32> to vector<8x32xbf16>
    %cst_21 = arith.constant dense<0.000000e+00> : vector<8x32xf32>
    %26 = tpu.matmul %25, %24, %cst_21 {dimension_numbers = #tpu.dot_dimension_numbers<[1], [0], [0], [1], [0, 0, 1, 1], [], []>} : vector<8x32xbf16>, vector<32x32xbf16>, vector<8x32xf32> -> vector<8x32xf32>
    %c0_22 = arith.constant 0 : index
    %c0_23 = arith.constant 0 : index
    %27 = vector.load %arg6[%c0_22, %c0_23] : memref<1x32xf32, #tpu.memory_space<vmem>>, vector<1x32xf32>
    %28 = vector.broadcast %27 : vector<1x32xf32> to vector<8x32xf32>
    %29 = arith.addf %26, %28 : vector<8x32xf32>
    %c0_24 = arith.constant 0 : index
    %c0_25 = arith.constant 0 : index
    %30 = vector.load %arg7[%c0_24, %c0_25] : memref<32x32xbf16, #tpu.memory_space<vmem>>, vector<32x32xbf16>
    %cst_26 = arith.constant 0.000000e+00 : f32
    %31 = vector.broadcast %cst_26 : f32 to vector<8x32xf32>
    %cst_27 = arith.constant 0.000000e+00 : f32
    %32 = vector.broadcast %cst_27 : f32 to vector<8x32xf32>
    %33 = vector.extract_strided_slice %11 {offsets = [0, 0], sizes = [8, 16], strides = [1, 1]} : vector<8x32xf32> to vector<8x16xf32>
    %34 = vector.extract_strided_slice %17 {offsets = [0, 0], sizes = [8, 16], strides = [1, 1]} : vector<8x32xf32> to vector<8x16xf32>
    %35 = vector.extract_strided_slice %23 {offsets = [0, 0], sizes = [8, 16], strides = [1, 1]} : vector<8x32xf32> to vector<8x16xf32>
    %36 = vector.extract_strided_slice %29 {offsets = [0, 0], sizes = [8, 16], strides = [1, 1]} : vector<8x32xf32> to vector<8x16xf32>
    %37 = vector.extract_strided_slice %30 {offsets = [0, 0], sizes = [16, 32], strides = [1, 1]} : vector<32x32xbf16> to vector<16x32xbf16>
    %38 = arith.truncf %33 : vector<8x16xf32> to vector<8x16xbf16>
    %39 = arith.truncf %34 : vector<8x16xf32> to vector<8x16xbf16>
    %cst_28 = arith.constant dense<0.000000e+00> : vector<8x8xf32>
    %40 = tpu.matmul %38, %39, %cst_28 {dimension_numbers = #tpu.dot_dimension_numbers<[1], [1], [0], [0], [0, 0, 1, 0], [], []>} : vector<8x16xbf16>, vector<8x16xbf16>, vector<8x8xf32> -> vector<8x8xf32>
    %cst_29 = arith.constant 2.500000e-01 : f32
    %41 = vector.broadcast %cst_29 : f32 to vector<8x8xf32>
    %42 = arith.mulf %40, %41 : vector<8x8xf32>
    %43 = arith.truncf %34 : vector<8x16xf32> to vector<8x16xbf16>
    %44 = arith.truncf %33 : vector<8x16xf32> to vector<8x16xbf16>
    %cst_30 = arith.constant dense<0.000000e+00> : vector<8x8xf32>
    %45 = tpu.matmul %43, %44, %cst_30 {dimension_numbers = #tpu.dot_dimension_numbers<[1], [1], [0], [0], [0, 0, 1, 0], [], []>} : vector<8x16xbf16>, vector<8x16xbf16>, vector<8x8xf32> -> vector<8x8xf32>
    %cst_31 = arith.constant 2.500000e-01 : f32
    %46 = vector.broadcast %cst_31 : f32 to vector<8x8xf32>
    %47 = arith.mulf %45, %46 : vector<8x8xf32>
    %cst_32 = arith.constant dense<0xFF800000> : vector<8xf32>
    %48 = vector.multi_reduction <maximumf>, %42, %cst_32 [1] : vector<8x8xf32> to vector<8xf32>
    %49 = vector.shape_cast %48 : vector<8xf32> to vector<8x1xf32>
    %50 = vector.broadcast %49 : vector<8x1xf32> to vector<8x8xf32>
    %51 = arith.subf %42, %50 : vector<8x8xf32>
    %52 = math.exp %51 : vector<8x8xf32>
    %cst_33 = arith.constant dense<0.000000e+00> : vector<8xf32>
    %53 = vector.multi_reduction <add>, %52, %cst_33 [1] : vector<8x8xf32> to vector<8xf32>
    %54 = vector.shape_cast %53 : vector<8xf32> to vector<8x1xf32>
    %55 = tpu.reciprocal %54 {approx = true} : vector<8x1xf32> -> vector<8x1xf32>
    %56 = vector.broadcast %55 : vector<8x1xf32> to vector<8x8xf32>
    %57 = arith.mulf %52, %56 : vector<8x8xf32>
    %58 = arith.truncf %57 : vector<8x8xf32> to vector<8x8xbf16>
    %59 = arith.truncf %36 : vector<8x16xf32> to vector<8x16xbf16>
    %cst_34 = arith.constant dense<0.000000e+00> : vector<8x16xf32>
    %60 = tpu.matmul %58, %59, %cst_34 {dimension_numbers = #tpu.dot_dimension_numbers<[1], [0], [0], [1], [0, 0, 1, 1], [], []>} : vector<8x8xbf16>, vector<8x16xbf16>, vector<8x16xf32> -> vector<8x16xf32>
    %61 = arith.truncf %60 : vector<8x16xf32> to vector<8x16xbf16>
    %cst_35 = arith.constant dense<0.000000e+00> : vector<8x32xf32>
    %62 = tpu.matmul %61, %37, %cst_35 {dimension_numbers = #tpu.dot_dimension_numbers<[1], [0], [0], [1], [0, 0, 1, 1], [], []>} : vector<8x16xbf16>, vector<16x32xbf16>, vector<8x32xf32> -> vector<8x32xf32>
    %63 = arith.addf %31, %62 : vector<8x32xf32>
    %cst_36 = arith.constant dense<0xFF800000> : vector<8xf32>
    %64 = vector.multi_reduction <maximumf>, %47, %cst_36 [1] : vector<8x8xf32> to vector<8xf32>
    %65 = vector.shape_cast %64 : vector<8xf32> to vector<8x1xf32>
    %66 = vector.broadcast %65 : vector<8x1xf32> to vector<8x8xf32>
    %67 = arith.subf %47, %66 : vector<8x8xf32>
    %68 = math.exp %67 : vector<8x8xf32>
    %cst_37 = arith.constant dense<0.000000e+00> : vector<8xf32>
    %69 = vector.multi_reduction <add>, %68, %cst_37 [1] : vector<8x8xf32> to vector<8xf32>
    %70 = vector.shape_cast %69 : vector<8xf32> to vector<8x1xf32>
    %71 = tpu.reciprocal %70 {approx = true} : vector<8x1xf32> -> vector<8x1xf32>
    %72 = vector.broadcast %71 : vector<8x1xf32> to vector<8x8xf32>
    %73 = arith.mulf %68, %72 : vector<8x8xf32>
    %74 = arith.truncf %73 : vector<8x8xf32> to vector<8x8xbf16>
    %75 = arith.truncf %35 : vector<8x16xf32> to vector<8x16xbf16>
    %cst_38 = arith.constant dense<0.000000e+00> : vector<8x16xf32>
    %76 = tpu.matmul %74, %75, %cst_38 {dimension_numbers = #tpu.dot_dimension_numbers<[1], [0], [0], [1], [0, 0, 1, 1], [], []>} : vector<8x8xbf16>, vector<8x16xbf16>, vector<8x16xf32> -> vector<8x16xf32>
    %77 = arith.truncf %76 : vector<8x16xf32> to vector<8x16xbf16>
    %cst_39 = arith.constant dense<0.000000e+00> : vector<8x32xf32>
    %78 = tpu.matmul %77, %37, %cst_39 {dimension_numbers = #tpu.dot_dimension_numbers<[1], [0], [0], [1], [0, 0, 1, 1], [], []>} : vector<8x16xbf16>, vector<16x32xbf16>, vector<8x32xf32> -> vector<8x32xf32>
    %79 = arith.addf %32, %78 : vector<8x32xf32>
    %80 = vector.extract_strided_slice %11 {offsets = [0, 16], sizes = [8, 16], strides = [1, 1]} : vector<8x32xf32> to vector<8x16xf32>
    %81 = vector.extract_strided_slice %17 {offsets = [0, 16], sizes = [8, 16], strides = [1, 1]} : vector<8x32xf32> to vector<8x16xf32>
    %82 = vector.extract_strided_slice %23 {offsets = [0, 16], sizes = [8, 16], strides = [1, 1]} : vector<8x32xf32> to vector<8x16xf32>
    %83 = vector.extract_strided_slice %29 {offsets = [0, 16], sizes = [8, 16], strides = [1, 1]} : vector<8x32xf32> to vector<8x16xf32>
    %84 = vector.extract_strided_slice %30 {offsets = [16, 0], sizes = [16, 32], strides = [1, 1]} : vector<32x32xbf16> to vector<16x32xbf16>
    %85 = arith.truncf %80 : vector<8x16xf32> to vector<8x16xbf16>
    %86 = arith.truncf %81 : vector<8x16xf32> to vector<8x16xbf16>
    %cst_40 = arith.constant dense<0.000000e+00> : vector<8x8xf32>
    %87 = tpu.matmul %85, %86, %cst_40 {dimension_numbers = #tpu.dot_dimension_numbers<[1], [1], [0], [0], [0, 0, 1, 0], [], []>} : vector<8x16xbf16>, vector<8x16xbf16>, vector<8x8xf32> -> vector<8x8xf32>
    %cst_41 = arith.constant 2.500000e-01 : f32
    %88 = vector.broadcast %cst_41 : f32 to vector<8x8xf32>
    %89 = arith.mulf %87, %88 : vector<8x8xf32>
    %90 = arith.truncf %81 : vector<8x16xf32> to vector<8x16xbf16>
    %91 = arith.truncf %80 : vector<8x16xf32> to vector<8x16xbf16>
    %cst_42 = arith.constant dense<0.000000e+00> : vector<8x8xf32>
    %92 = tpu.matmul %90, %91, %cst_42 {dimension_numbers = #tpu.dot_dimension_numbers<[1], [1], [0], [0], [0, 0, 1, 0], [], []>} : vector<8x16xbf16>, vector<8x16xbf16>, vector<8x8xf32> -> vector<8x8xf32>
    %cst_43 = arith.constant 2.500000e-01 : f32
    %93 = vector.broadcast %cst_43 : f32 to vector<8x8xf32>
    %94 = arith.mulf %92, %93 : vector<8x8xf32>
    %cst_44 = arith.constant dense<0xFF800000> : vector<8xf32>
    %95 = vector.multi_reduction <maximumf>, %89, %cst_44 [1] : vector<8x8xf32> to vector<8xf32>
    %96 = vector.shape_cast %95 : vector<8xf32> to vector<8x1xf32>
    %97 = vector.broadcast %96 : vector<8x1xf32> to vector<8x8xf32>
    %98 = arith.subf %89, %97 : vector<8x8xf32>
    %99 = math.exp %98 : vector<8x8xf32>
    %cst_45 = arith.constant dense<0.000000e+00> : vector<8xf32>
    %100 = vector.multi_reduction <add>, %99, %cst_45 [1] : vector<8x8xf32> to vector<8xf32>
    %101 = vector.shape_cast %100 : vector<8xf32> to vector<8x1xf32>
    %102 = tpu.reciprocal %101 {approx = true} : vector<8x1xf32> -> vector<8x1xf32>
    %103 = vector.broadcast %102 : vector<8x1xf32> to vector<8x8xf32>
    %104 = arith.mulf %99, %103 : vector<8x8xf32>
    %105 = arith.truncf %104 : vector<8x8xf32> to vector<8x8xbf16>
    %106 = arith.truncf %83 : vector<8x16xf32> to vector<8x16xbf16>
    %cst_46 = arith.constant dense<0.000000e+00> : vector<8x16xf32>
    %107 = tpu.matmul %105, %106, %cst_46 {dimension_numbers = #tpu.dot_dimension_numbers<[1], [0], [0], [1], [0, 0, 1, 1], [], []>} : vector<8x8xbf16>, vector<8x16xbf16>, vector<8x16xf32> -> vector<8x16xf32>
    %108 = arith.truncf %107 : vector<8x16xf32> to vector<8x16xbf16>
    %cst_47 = arith.constant dense<0.000000e+00> : vector<8x32xf32>
    %109 = tpu.matmul %108, %84, %cst_47 {dimension_numbers = #tpu.dot_dimension_numbers<[1], [0], [0], [1], [0, 0, 1, 1], [], []>} : vector<8x16xbf16>, vector<16x32xbf16>, vector<8x32xf32> -> vector<8x32xf32>
    %110 = arith.addf %63, %109 : vector<8x32xf32>
    %cst_48 = arith.constant dense<0xFF800000> : vector<8xf32>
    %111 = vector.multi_reduction <maximumf>, %94, %cst_48 [1] : vector<8x8xf32> to vector<8xf32>
    %112 = vector.shape_cast %111 : vector<8xf32> to vector<8x1xf32>
    %113 = vector.broadcast %112 : vector<8x1xf32> to vector<8x8xf32>
    %114 = arith.subf %94, %113 : vector<8x8xf32>
    %115 = math.exp %114 : vector<8x8xf32>
    %cst_49 = arith.constant dense<0.000000e+00> : vector<8xf32>
    %116 = vector.multi_reduction <add>, %115, %cst_49 [1] : vector<8x8xf32> to vector<8xf32>
    %117 = vector.shape_cast %116 : vector<8xf32> to vector<8x1xf32>
    %118 = tpu.reciprocal %117 {approx = true} : vector<8x1xf32> -> vector<8x1xf32>
    %119 = vector.broadcast %118 : vector<8x1xf32> to vector<8x8xf32>
    %120 = arith.mulf %115, %119 : vector<8x8xf32>
    %121 = arith.truncf %120 : vector<8x8xf32> to vector<8x8xbf16>
    %122 = arith.truncf %82 : vector<8x16xf32> to vector<8x16xbf16>
    %cst_50 = arith.constant dense<0.000000e+00> : vector<8x16xf32>
    %123 = tpu.matmul %121, %122, %cst_50 {dimension_numbers = #tpu.dot_dimension_numbers<[1], [0], [0], [1], [0, 0, 1, 1], [], []>} : vector<8x8xbf16>, vector<8x16xbf16>, vector<8x16xf32> -> vector<8x16xf32>
    %124 = arith.truncf %123 : vector<8x16xf32> to vector<8x16xbf16>
    %cst_51 = arith.constant dense<0.000000e+00> : vector<8x32xf32>
    %125 = tpu.matmul %124, %84, %cst_51 {dimension_numbers = #tpu.dot_dimension_numbers<[1], [0], [0], [1], [0, 0, 1, 1], [], []>} : vector<8x16xbf16>, vector<16x32xbf16>, vector<8x32xf32> -> vector<8x32xf32>
    %126 = arith.addf %79, %125 : vector<8x32xf32>
    %c0_52 = arith.constant 0 : index
    %c0_53 = arith.constant 0 : index
    %127 = vector.load %arg8[%c0_52, %c0_53] : memref<1x32xf32, #tpu.memory_space<vmem>>, vector<1x32xf32>
    %128 = vector.broadcast %127 : vector<1x32xf32> to vector<8x32xf32>
    %129 = arith.addf %110, %128 : vector<8x32xf32>
    %c0_54 = arith.constant 0 : index
    %c0_55 = arith.constant 0 : index
    %130 = vector.load %arg8[%c0_54, %c0_55] : memref<1x32xf32, #tpu.memory_space<vmem>>, vector<1x32xf32>
    %131 = vector.broadcast %130 : vector<1x32xf32> to vector<8x32xf32>
    %132 = arith.addf %126, %131 : vector<8x32xf32>
    %c0_56 = arith.constant 0 : index
    %c0_57 = arith.constant 0 : index
    %133 = vector.load %arg9[%c0_56, %c0_57] : memref<32x64xbf16, #tpu.memory_space<vmem>>, vector<32x64xbf16>
    %c0_58 = arith.constant 0 : index
    %c0_59 = arith.constant 0 : index
    %134 = vector.load %arg10[%c0_58, %c0_59] : memref<32x64xbf16, #tpu.memory_space<vmem>>, vector<32x64xbf16>
    %c0_60 = arith.constant 0 : index
    %c0_61 = arith.constant 0 : index
    %135 = vector.load %arg11[%c0_60, %c0_61] : memref<1x64xf32, #tpu.memory_space<vmem>>, vector<1x64xf32>
    %c0_62 = arith.constant 0 : index
    %c0_63 = arith.constant 0 : index
    %136 = vector.load %arg12[%c0_62, %c0_63] : memref<1x64xf32, #tpu.memory_space<vmem>>, vector<1x64xf32>
    %c0_64 = arith.constant 0 : index
    %c0_65 = arith.constant 0 : index
    %137 = vector.load %arg13[%c0_64, %c0_65] : memref<1x64xf32, #tpu.memory_space<vmem>>, vector<1x64xf32>
    %c0_66 = arith.constant 0 : index
    %c0_67 = arith.constant 0 : index
    %138 = vector.load %arg14[%c0_66, %c0_67] : memref<64x32xbf16, #tpu.memory_space<vmem>>, vector<64x32xbf16>
    %c0_68 = arith.constant 0 : index
    %c0_69 = arith.constant 0 : index
    %139 = vector.load %arg15[%c0_68, %c0_69] : memref<1x32xf32, #tpu.memory_space<vmem>>, vector<1x32xf32>
    %140 = arith.truncf %2 : vector<8x32xf32> to vector<8x32xbf16>
    %cst_70 = arith.constant dense<0.000000e+00> : vector<8x64xf32>
    %141 = tpu.matmul %140, %133, %cst_70 {dimension_numbers = #tpu.dot_dimension_numbers<[1], [0], [0], [1], [0, 0, 1, 1], [], []>} : vector<8x32xbf16>, vector<32x64xbf16>, vector<8x64xf32> -> vector<8x64xf32>
    %142 = arith.truncf %129 : vector<8x32xf32> to vector<8x32xbf16>
    %cst_71 = arith.constant dense<0.000000e+00> : vector<8x64xf32>
    %143 = tpu.matmul %142, %134, %cst_71 {dimension_numbers = #tpu.dot_dimension_numbers<[1], [0], [0], [1], [0, 0, 1, 1], [], []>} : vector<8x32xbf16>, vector<32x64xbf16>, vector<8x64xf32> -> vector<8x64xf32>
    %144 = arith.addf %141, %143 : vector<8x64xf32>
    %145 = vector.broadcast %135 : vector<1x64xf32> to vector<8x64xf32>
    %146 = arith.addf %144, %145 : vector<8x64xf32>
    %cst_72 = arith.constant dense<0.000000e+00> : vector<8xf32>
    %147 = vector.multi_reduction <add>, %146, %cst_72 [1] : vector<8x64xf32> to vector<8xf32>
    %148 = vector.shape_cast %147 : vector<8xf32> to vector<8x1xf32>
    %cst_73 = arith.constant 6.400000e+01 : f32
    %149 = vector.broadcast %cst_73 : f32 to vector<8x1xf32>
    %150 = arith.divf %148, %149 : vector<8x1xf32>
    %151 = vector.broadcast %150 : vector<8x1xf32> to vector<8x64xf32>
    %152 = arith.subf %146, %151 : vector<8x64xf32>
    %153 = arith.mulf %152, %152 : vector<8x64xf32>
    %cst_74 = arith.constant dense<0.000000e+00> : vector<8xf32>
    %154 = vector.multi_reduction <add>, %153, %cst_74 [1] : vector<8x64xf32> to vector<8xf32>
    %155 = vector.shape_cast %154 : vector<8xf32> to vector<8x1xf32>
    %cst_75 = arith.constant 6.400000e+01 : f32
    %156 = vector.broadcast %cst_75 : f32 to vector<8x1xf32>
    %157 = arith.divf %155, %156 : vector<8x1xf32>
    %158 = vector.broadcast %150 : vector<8x1xf32> to vector<8x64xf32>
    %159 = arith.subf %146, %158 : vector<8x64xf32>
    %cst_76 = arith.constant 9.99999974E-6 : f32
    %160 = vector.broadcast %cst_76 : f32 to vector<8x1xf32>
    %161 = arith.addf %157, %160 : vector<8x1xf32>
    %162 = math.rsqrt %161 : vector<8x1xf32>
    %163 = vector.broadcast %162 : vector<8x1xf32> to vector<8x64xf32>
    %164 = arith.mulf %159, %163 : vector<8x64xf32>
    %165 = vector.broadcast %136 : vector<1x64xf32> to vector<8x64xf32>
    %166 = arith.mulf %164, %165 : vector<8x64xf32>
    %167 = vector.broadcast %137 : vector<1x64xf32> to vector<8x64xf32>
    %168 = arith.addf %166, %167 : vector<8x64xf32>
    %cst_77 = arith.constant 5.000000e-01 : f32
    %169 = vector.broadcast %cst_77 : f32 to vector<8x64xf32>
    %170 = arith.mulf %169, %168 : vector<8x64xf32>
    %cst_78 = arith.constant 4.471500e-02 : f32
    %171 = vector.broadcast %cst_78 : f32 to vector<8x64xf32>
    %172 = arith.mulf %171, %168 : vector<8x64xf32>
    %173 = arith.mulf %172, %168 : vector<8x64xf32>
    %174 = arith.mulf %173, %168 : vector<8x64xf32>
    %175 = arith.addf %168, %174 : vector<8x64xf32>
    %cst_79 = arith.constant 0.797884583 : f32
    %176 = vector.broadcast %cst_79 : f32 to vector<8x64xf32>
    %177 = arith.mulf %176, %175 : vector<8x64xf32>
    %178 = math.tanh %177 : vector<8x64xf32>
    %cst_80 = arith.constant 1.000000e+00 : f32
    %179 = vector.broadcast %cst_80 : f32 to vector<8x64xf32>
    %180 = arith.addf %179, %178 : vector<8x64xf32>
    %181 = arith.mulf %170, %180 : vector<8x64xf32>
    %182 = arith.truncf %181 : vector<8x64xf32> to vector<8x64xbf16>
    %cst_81 = arith.constant dense<0.000000e+00> : vector<8x32xf32>
    %183 = tpu.matmul %182, %138, %cst_81 {dimension_numbers = #tpu.dot_dimension_numbers<[1], [0], [0], [1], [0, 0, 1, 1], [], []>} : vector<8x64xbf16>, vector<64x32xbf16>, vector<8x32xf32> -> vector<8x32xf32>
    %184 = arith.addf %2, %183 : vector<8x32xf32>
    %185 = vector.broadcast %139 : vector<1x32xf32> to vector<8x32xf32>
    %186 = arith.addf %184, %185 : vector<8x32xf32>
    %c0_82 = arith.constant 0 : index
    %c0_83 = arith.constant 0 : index
    %187 = vector.load %arg9[%c0_82, %c0_83] : memref<32x64xbf16, #tpu.memory_space<vmem>>, vector<32x64xbf16>
    %c0_84 = arith.constant 0 : index
    %c0_85 = arith.constant 0 : index
    %188 = vector.load %arg10[%c0_84, %c0_85] : memref<32x64xbf16, #tpu.memory_space<vmem>>, vector<32x64xbf16>
    %c0_86 = arith.constant 0 : index
    %c0_87 = arith.constant 0 : index
    %189 = vector.load %arg11[%c0_86, %c0_87] : memref<1x64xf32, #tpu.memory_space<vmem>>, vector<1x64xf32>
    %c0_88 = arith.constant 0 : index
    %c0_89 = arith.constant 0 : index
    %190 = vector.load %arg12[%c0_88, %c0_89] : memref<1x64xf32, #tpu.memory_space<vmem>>, vector<1x64xf32>
    %c0_90 = arith.constant 0 : index
    %c0_91 = arith.constant 0 : index
    %191 = vector.load %arg13[%c0_90, %c0_91] : memref<1x64xf32, #tpu.memory_space<vmem>>, vector<1x64xf32>
    %c0_92 = arith.constant 0 : index
    %c0_93 = arith.constant 0 : index
    %192 = vector.load %arg14[%c0_92, %c0_93] : memref<64x32xbf16, #tpu.memory_space<vmem>>, vector<64x32xbf16>
    %c0_94 = arith.constant 0 : index
    %c0_95 = arith.constant 0 : index
    %193 = vector.load %arg15[%c0_94, %c0_95] : memref<1x32xf32, #tpu.memory_space<vmem>>, vector<1x32xf32>
    %194 = arith.truncf %5 : vector<8x32xf32> to vector<8x32xbf16>
    %cst_96 = arith.constant dense<0.000000e+00> : vector<8x64xf32>
    %195 = tpu.matmul %194, %187, %cst_96 {dimension_numbers = #tpu.dot_dimension_numbers<[1], [0], [0], [1], [0, 0, 1, 1], [], []>} : vector<8x32xbf16>, vector<32x64xbf16>, vector<8x64xf32> -> vector<8x64xf32>
    %196 = arith.truncf %132 : vector<8x32xf32> to vector<8x32xbf16>
    %cst_97 = arith.constant dense<0.000000e+00> : vector<8x64xf32>
    %197 = tpu.matmul %196, %188, %cst_97 {dimension_numbers = #tpu.dot_dimension_numbers<[1], [0], [0], [1], [0, 0, 1, 1], [], []>} : vector<8x32xbf16>, vector<32x64xbf16>, vector<8x64xf32> -> vector<8x64xf32>
    %198 = arith.addf %195, %197 : vector<8x64xf32>
    %199 = vector.broadcast %189 : vector<1x64xf32> to vector<8x64xf32>
    %200 = arith.addf %198, %199 : vector<8x64xf32>
    %cst_98 = arith.constant dense<0.000000e+00> : vector<8xf32>
    %201 = vector.multi_reduction <add>, %200, %cst_98 [1] : vector<8x64xf32> to vector<8xf32>
    %202 = vector.shape_cast %201 : vector<8xf32> to vector<8x1xf32>
    %cst_99 = arith.constant 6.400000e+01 : f32
    %203 = vector.broadcast %cst_99 : f32 to vector<8x1xf32>
    %204 = arith.divf %202, %203 : vector<8x1xf32>
    %205 = vector.broadcast %204 : vector<8x1xf32> to vector<8x64xf32>
    %206 = arith.subf %200, %205 : vector<8x64xf32>
    %207 = arith.mulf %206, %206 : vector<8x64xf32>
    %cst_100 = arith.constant dense<0.000000e+00> : vector<8xf32>
    %208 = vector.multi_reduction <add>, %207, %cst_100 [1] : vector<8x64xf32> to vector<8xf32>
    %209 = vector.shape_cast %208 : vector<8xf32> to vector<8x1xf32>
    %cst_101 = arith.constant 6.400000e+01 : f32
    %210 = vector.broadcast %cst_101 : f32 to vector<8x1xf32>
    %211 = arith.divf %209, %210 : vector<8x1xf32>
    %212 = vector.broadcast %204 : vector<8x1xf32> to vector<8x64xf32>
    %213 = arith.subf %200, %212 : vector<8x64xf32>
    %cst_102 = arith.constant 9.99999974E-6 : f32
    %214 = vector.broadcast %cst_102 : f32 to vector<8x1xf32>
    %215 = arith.addf %211, %214 : vector<8x1xf32>
    %216 = math.rsqrt %215 : vector<8x1xf32>
    %217 = vector.broadcast %216 : vector<8x1xf32> to vector<8x64xf32>
    %218 = arith.mulf %213, %217 : vector<8x64xf32>
    %219 = vector.broadcast %190 : vector<1x64xf32> to vector<8x64xf32>
    %220 = arith.mulf %218, %219 : vector<8x64xf32>
    %221 = vector.broadcast %191 : vector<1x64xf32> to vector<8x64xf32>
    %222 = arith.addf %220, %221 : vector<8x64xf32>
    %cst_103 = arith.constant 5.000000e-01 : f32
    %223 = vector.broadcast %cst_103 : f32 to vector<8x64xf32>
    %224 = arith.mulf %223, %222 : vector<8x64xf32>
    %cst_104 = arith.constant 4.471500e-02 : f32
    %225 = vector.broadcast %cst_104 : f32 to vector<8x64xf32>
    %226 = arith.mulf %225, %222 : vector<8x64xf32>
    %227 = arith.mulf %226, %222 : vector<8x64xf32>
    %228 = arith.mulf %227, %222 : vector<8x64xf32>
    %229 = arith.addf %222, %228 : vector<8x64xf32>
    %cst_105 = arith.constant 0.797884583 : f32
    %230 = vector.broadcast %cst_105 : f32 to vector<8x64xf32>
    %231 = arith.mulf %230, %229 : vector<8x64xf32>
    %232 = math.tanh %231 : vector<8x64xf32>
    %cst_106 = arith.constant 1.000000e+00 : f32
    %233 = vector.broadcast %cst_106 : f32 to vector<8x64xf32>
    %234 = arith.addf %233, %232 : vector<8x64xf32>
    %235 = arith.mulf %224, %234 : vector<8x64xf32>
    %236 = arith.truncf %235 : vector<8x64xf32> to vector<8x64xbf16>
    %cst_107 = arith.constant dense<0.000000e+00> : vector<8x32xf32>
    %237 = tpu.matmul %236, %192, %cst_107 {dimension_numbers = #tpu.dot_dimension_numbers<[1], [0], [0], [1], [0, 0, 1, 1], [], []>} : vector<8x64xbf16>, vector<64x32xbf16>, vector<8x32xf32> -> vector<8x32xf32>
    %238 = arith.addf %5, %237 : vector<8x32xf32>
    %239 = vector.broadcast %193 : vector<1x32xf32> to vector<8x32xf32>
    %240 = arith.addf %238, %239 : vector<8x32xf32>
    %c0_108 = arith.constant 0 : index
    %c0_109 = arith.constant 0 : index
    %c0_110 = arith.constant 0 : index
    %241 = vector.load %arg16[%c0_108, %c0_109, %c0_110] : memref<1x8x32xf32, #tpu.memory_space<vmem>>, vector<1x8x32xf32>
    %242 = vector.shape_cast %241 : vector<1x8x32xf32> to vector<8x32xf32>
    %243 = vector.shape_cast %186 : vector<8x32xf32> to vector<1x8x32xf32>
    tpu.vector_store %arg16[%c0_108, %c0_109, %c0_110], %243 {strides = array<i32>} : memref<1x8x32xf32, #tpu.memory_space<vmem>>, vector<1x8x32xf32>,
    %c0_111 = arith.constant 0 : index
    %c0_112 = arith.constant 0 : index
    %c0_113 = arith.constant 0 : index
    %244 = vector.load %arg17[%c0_111, %c0_112, %c0_113] : memref<1x8x32xf32, #tpu.memory_space<vmem>>, vector<1x8x32xf32>
    %245 = vector.shape_cast %244 : vector<1x8x32xf32> to vector<8x32xf32>
    %246 = vector.shape_cast %240 : vector<8x32xf32> to vector<1x8x32xf32>
    tpu.vector_store %arg17[%c0_111, %c0_112, %c0_113], %246 {strides = array<i32>} : memref<1x8x32xf32, #tpu.memory_space<vmem>>, vector<1x8x32xf32>,
    return
  }
  func.func @transform_0(%arg0: i32) -> (i32, i32, i32) {
    %c0_i32 = arith.constant 0 : i32
    %0 = arith.addi %arg0, %c0_i32 : i32
    %c0_i32_0 = arith.constant 0 : i32
    %c0_i32_1 = arith.constant 0 : i32
    %c0_i32_2 = arith.constant 0 : i32
    return %0, %c0_i32_0, %c0_i32_1 : i32, i32, i32
  }
  func.func @transform_1(%arg0: i32) -> (i32, i32, i32) {
    %c2_i32 = arith.constant 2 : i32
    %0 = arith.addi %arg0, %c2_i32 : i32
    %c0_i32 = arith.constant 0 : i32
    %c0_i32_0 = arith.constant 0 : i32
    %c0_i32_1 = arith.constant 0 : i32
    return %0, %c0_i32, %c0_i32_0 : i32, i32, i32
  }
  func.func @transform_2(%arg0: i32) -> (i32, i32) {
    %c0_i32 = arith.constant 0 : i32
    %c0_i32_0 = arith.constant 0 : i32
    %c0_i32_1 = arith.constant 0 : i32
    return %c0_i32, %c0_i32_0 : i32, i32
  }
  func.func @transform_3(%arg0: i32) -> (i32, i32) {
    %c0_i32 = arith.constant 0 : i32
    %c0_i32_0 = arith.constant 0 : i32
    %c0_i32_1 = arith.constant 0 : i32
    return %c0_i32, %c0_i32_0 : i32, i32
  }
  func.func @transform_4(%arg0: i32) -> (i32, i32) {
    %c0_i32 = arith.constant 0 : i32
    %c0_i32_0 = arith.constant 0 : i32
    %c0_i32_1 = arith.constant 0 : i32
    return %c0_i32, %c0_i32_0 : i32, i32
  }
  func.func @transform_5(%arg0: i32) -> (i32, i32) {
    %c0_i32 = arith.constant 0 : i32
    %c0_i32_0 = arith.constant 0 : i32
    %c0_i32_1 = arith.constant 0 : i32
    return %c0_i32, %c0_i32_0 : i32, i32
  }
  func.func @transform_6(%arg0: i32) -> (i32, i32) {
    %c0_i32 = arith.constant 0 : i32
    %c0_i32_0 = arith.constant 0 : i32
    %c0_i32_1 = arith.constant 0 : i32
    return %c0_i32, %c0_i32_0 : i32, i32
  }
  func.func @transform_7(%arg0: i32) -> (i32, i32) {
    %c0_i32 = arith.constant 0 : i32
    %c0_i32_0 = arith.constant 0 : i32
    %c0_i32_1 = arith.constant 0 : i32
    return %c0_i32, %c0_i32_0 : i32, i32
  }
  func.func @transform_8(%arg0: i32) -> (i32, i32) {
    %c0_i32 = arith.constant 0 : i32
    %c0_i32_0 = arith.constant 0 : i32
    %c0_i32_1 = arith.constant 0 : i32
    return %c0_i32, %c0_i32_0 : i32, i32
  }
  func.func @transform_9(%arg0: i32) -> (i32, i32) {
    %c0_i32 = arith.constant 0 : i32
    %c0_i32_0 = arith.constant 0 : i32
    %c0_i32_1 = arith.constant 0 : i32
    return %c0_i32, %c0_i32_0 : i32, i32
  }
  func.func @transform_10(%arg0: i32) -> (i32, i32) {
    %c0_i32 = arith.constant 0 : i32
    %c0_i32_0 = arith.constant 0 : i32
    %c0_i32_1 = arith.constant 0 : i32
    return %c0_i32, %c0_i32_0 : i32, i32
  }
  func.func @transform_11(%arg0: i32) -> (i32, i32) {
    %c0_i32 = arith.constant 0 : i32
    %c0_i32_0 = arith.constant 0 : i32
    %c0_i32_1 = arith.constant 0 : i32
    return %c0_i32, %c0_i32_0 : i32, i32
  }
  func.func @transform_12(%arg0: i32) -> (i32, i32) {
    %c0_i32 = arith.constant 0 : i32
    %c0_i32_0 = arith.constant 0 : i32
    %c0_i32_1 = arith.constant 0 : i32
    return %c0_i32, %c0_i32_0 : i32, i32
  }
  func.func @transform_13(%arg0: i32) -> (i32, i32) {
    %c0_i32 = arith.constant 0 : i32
    %c0_i32_0 = arith.constant 0 : i32
    %c0_i32_1 = arith.constant 0 : i32
    return %c0_i32, %c0_i32_0 : i32, i32
  }
  func.func @transform_14(%arg0: i32) -> (i32, i32) {
    %c0_i32 = arith.constant 0 : i32
    %c0_i32_0 = arith.constant 0 : i32
    %c0_i32_1 = arith.constant 0 : i32
    return %c0_i32, %c0_i32_0 : i32, i32
  }
  func.func @transform_15(%arg0: i32) -> (i32, i32, i32) {
    %c0_i32 = arith.constant 0 : i32
    %0 = arith.addi %arg0, %c0_i32 : i32
    %c0_i32_0 = arith.constant 0 : i32
    %c0_i32_1 = arith.constant 0 : i32
    %c0_i32_2 = arith.constant 0 : i32
    return %0, %c0_i32_0, %c0_i32_1 : i32, i32, i32
  }
  func.func @transform_16(%arg0: i32) -> (i32, i32, i32) {
    %c0_i32 = arith.constant 0 : i32
    %0 = arith.addi %arg0, %c0_i32 : i32
    %c0_i32_0 = arith.constant 0 : i32
    %c0_i32_1 = arith.constant 0 : i32
    %c0_i32_2 = arith.constant 0 : i32
    return %0, %c0_i32_0, %c0_i32_1 : i32, i32, i32
  }
}

module attributes {stable_mosaic.version = 11 : i64} {
  func.func @_fused_kernel(%arg0: i32, %arg1: memref<1x8x32xbf16, #tpu.memory_space<vmem>>, %arg2: memref<1x16x32xbf16, #tpu.memory_space<vmem>>, %arg3: memref<1x8x32xbf16, #tpu.memory_space<vmem>>, %arg4: memref<1x8x32xbf16, #tpu.memory_space<vmem>>, %arg5: memref<1x8x32xbf16, #tpu.memory_space<vmem>>, %arg6: memref<1x32xf32, #tpu.memory_space<vmem>>, %arg7: memref<1x32xf32, #tpu.memory_space<vmem>>, %arg8: memref<1x32xf32, #tpu.memory_space<vmem>>, %arg9: memref<1x32xf32, #tpu.memory_space<vmem>>, %arg10: memref<32x32xbf16, #tpu.memory_space<vmem>>, %arg11: memref<1x32xf32, #tpu.memory_space<vmem>>, %arg12: memref<32x32xbf16, #tpu.memory_space<vmem>>, %arg13: memref<1x32xf32, #tpu.memory_space<vmem>>, %arg14: memref<32x64xbf16, #tpu.memory_space<vmem>>, %arg15: memref<1x64xf32, #tpu.memory_space<vmem>>, %arg16: memref<32x32xbf16, #tpu.memory_space<vmem>>, %arg17: memref<1x32xf32, #tpu.memory_space<vmem>>, %arg18: memref<32x64xbf16, #tpu.memory_space<vmem>>, %arg19: memref<32x64xbf16, #tpu.memory_space<vmem>>, %arg20: memref<1x64xf32, #tpu.memory_space<vmem>>, %arg21: memref<1x64xf32, #tpu.memory_space<vmem>>, %arg22: memref<1x64xf32, #tpu.memory_space<vmem>>, %arg23: memref<64x32xbf16, #tpu.memory_space<vmem>>, %arg24: memref<1x32xf32, #tpu.memory_space<vmem>>, %arg25: memref<32x96xbf16, #tpu.memory_space<vmem>>, %arg26: memref<1x96xf32, #tpu.memory_space<vmem>>, %arg27: memref<32x32xbf16, #tpu.memory_space<vmem>>, %arg28: memref<1x32xf32, #tpu.memory_space<vmem>>, %arg29: memref<32x64xbf16, #tpu.memory_space<vmem>>, %arg30: memref<32x64xbf16, #tpu.memory_space<vmem>>, %arg31: memref<1x64xf32, #tpu.memory_space<vmem>>, %arg32: memref<1x64xf32, #tpu.memory_space<vmem>>, %arg33: memref<1x64xf32, #tpu.memory_space<vmem>>, %arg34: memref<64x32xbf16, #tpu.memory_space<vmem>>, %arg35: memref<1x32xf32, #tpu.memory_space<vmem>>, %arg36: memref<32x64xbf16, #tpu.memory_space<vmem>>, %arg37: memref<32x64xbf16, #tpu.memory_space<vmem>>, %arg38: memref<1x64xf32, #tpu.memory_space<vmem>>, %arg39: memref<1x64xf32, #tpu.memory_space<vmem>>, %arg40: memref<1x64xf32, #tpu.memory_space<vmem>>, %arg41: memref<64x32xbf16, #tpu.memory_space<vmem>>, %arg42: memref<1x32xf32, #tpu.memory_space<vmem>>, %arg43: memref<1x8x32xbf16, #tpu.memory_space<vmem>>) attributes {dimension_semantics = [#tpu.dimension_semantics<parallel>], iteration_bounds = array<i64: 4>, scalar_prefetch = 0 : i64, scratch_operands = 0 : i64, tpu.core_type = #tpu.core_type<tc>, window_params = [{transform_indices = @transform_0, window_bounds = array<i64: 1, 8, 32>}, {transform_indices = @transform_1, window_bounds = array<i64: 1, 16, 32>}, {transform_indices = @transform_2, window_bounds = array<i64: 1, 8, 32>}, {transform_indices = @transform_3, window_bounds = array<i64: 1, 8, 32>}, {transform_indices = @transform_4, window_bounds = array<i64: 1, 8, 32>}, {pipeline_mode = #tpu.pipeline_mode<synchronous>, transform_indices = @transform_5, window_bounds = array<i64: 1, 32>}, {pipeline_mode = #tpu.pipeline_mode<synchronous>, transform_indices = @transform_6, window_bounds = array<i64: 1, 32>}, {pipeline_mode = #tpu.pipeline_mode<synchronous>, transform_indices = @transform_7, window_bounds = array<i64: 1, 32>}, {pipeline_mode = #tpu.pipeline_mode<synchronous>, transform_indices = @transform_8, window_bounds = array<i64: 1, 32>}, {pipeline_mode = #tpu.pipeline_mode<synchronous>, transform_indices = @transform_9, window_bounds = array<i64: 32, 32>}, {pipeline_mode = #tpu.pipeline_mode<synchronous>, transform_indices = @transform_10, window_bounds = array<i64: 1, 32>}, {pipeline_mode = #tpu.pipeline_mode<synchronous>, transform_indices = @transform_11, window_bounds = array<i64: 32, 32>}, {pipeline_mode = #tpu.pipeline_mode<synchronous>, transform_indices = @transform_12, window_bounds = array<i64: 1, 32>}, {pipeline_mode = #tpu.pipeline_mode<synchronous>, transform_indices = @transform_13, window_bounds = array<i64: 32, 64>}, {pipeline_mode = #tpu.pipeline_mode<synchronous>, transform_indices = @transform_14, window_bounds = array<i64: 1, 64>}, {pipeline_mode = #tpu.pipeline_mode<synchronous>, transform_indices = @transform_15, window_bounds = array<i64: 32, 32>}, {pipeline_mode = #tpu.pipeline_mode<synchronous>, transform_indices = @transform_16, window_bounds = array<i64: 1, 32>}, {pipeline_mode = #tpu.pipeline_mode<synchronous>, transform_indices = @transform_17, window_bounds = array<i64: 32, 64>}, {pipeline_mode = #tpu.pipeline_mode<synchronous>, transform_indices = @transform_18, window_bounds = array<i64: 32, 64>}, {pipeline_mode = #tpu.pipeline_mode<synchronous>, transform_indices = @transform_19, window_bounds = array<i64: 1, 64>}, {pipeline_mode = #tpu.pipeline_mode<synchronous>, transform_indices = @transform_20, window_bounds = array<i64: 1, 64>}, {pipeline_mode = #tpu.pipeline_mode<synchronous>, transform_indices = @transform_21, window_bounds = array<i64: 1, 64>}, {pipeline_mode = #tpu.pipeline_mode<synchronous>, transform_indices = @transform_22, window_bounds = array<i64: 64, 32>}, {pipeline_mode = #tpu.pipeline_mode<synchronous>, transform_indices = @transform_23, window_bounds = array<i64: 1, 32>}, {pipeline_mode = #tpu.pipeline_mode<synchronous>, transform_indices = @transform_24, window_bounds = array<i64: 32, 96>}, {pipeline_mode = #tpu.pipeline_mode<synchronous>, transform_indices = @transform_25, window_bounds = array<i64: 1, 96>}, {pipeline_mode = #tpu.pipeline_mode<synchronous>, transform_indices = @transform_26, window_bounds = array<i64: 32, 32>}, {pipeline_mode = #tpu.pipeline_mode<synchronous>, transform_indices = @transform_27, window_bounds = array<i64: 1, 32>}, {pipeline_mode = #tpu.pipeline_mode<synchronous>, transform_indices = @transform_28, window_bounds = array<i64: 32, 64>}, {pipeline_mode = #tpu.pipeline_mode<synchronous>, transform_indices = @transform_29, window_bounds = array<i64: 32, 64>}, {pipeline_mode = #tpu.pipeline_mode<synchronous>, transform_indices = @transform_30, window_bounds = array<i64: 1, 64>}, {pipeline_mode = #tpu.pipeline_mode<synchronous>, transform_indices = @transform_31, window_bounds = array<i64: 1, 64>}, {pipeline_mode = #tpu.pipeline_mode<synchronous>, transform_indices = @transform_32, window_bounds = array<i64: 1, 64>}, {pipeline_mode = #tpu.pipeline_mode<synchronous>, transform_indices = @transform_33, window_bounds = array<i64: 64, 32>}, {pipeline_mode = #tpu.pipeline_mode<synchronous>, transform_indices = @transform_34, window_bounds = array<i64: 1, 32>}, {pipeline_mode = #tpu.pipeline_mode<synchronous>, transform_indices = @transform_35, window_bounds = array<i64: 32, 64>}, {pipeline_mode = #tpu.pipeline_mode<synchronous>, transform_indices = @transform_36, window_bounds = array<i64: 32, 64>}, {pipeline_mode = #tpu.pipeline_mode<synchronous>, transform_indices = @transform_37, window_bounds = array<i64: 1, 64>}, {pipeline_mode = #tpu.pipeline_mode<synchronous>, transform_indices = @transform_38, window_bounds = array<i64: 1, 64>}, {pipeline_mode = #tpu.pipeline_mode<synchronous>, transform_indices = @transform_39, window_bounds = array<i64: 1, 64>}, {pipeline_mode = #tpu.pipeline_mode<synchronous>, transform_indices = @transform_40, window_bounds = array<i64: 64, 32>}, {pipeline_mode = #tpu.pipeline_mode<synchronous>, transform_indices = @transform_41, window_bounds = array<i64: 1, 32>}, {transform_indices = @transform_42, window_bounds = array<i64: 1, 8, 32>}]} {
    %c0 = arith.constant 0 : index
    %c0_0 = arith.constant 0 : index
    %c0_1 = arith.constant 0 : index
    %0 = vector.load %arg1[%c0, %c0_0, %c0_1] : memref<1x8x32xbf16, #tpu.memory_space<vmem>>, vector<1x8x32xbf16>
    %1 = vector.shape_cast %0 : vector<1x8x32xbf16> to vector<8x32xbf16>
    %2 = arith.extf %1 : vector<8x32xbf16> to vector<8x32xf32>
    %c0_2 = arith.constant 0 : index
    %c0_3 = arith.constant 0 : index
    %c0_4 = arith.constant 0 : index
    %3 = vector.load %arg2[%c0_2, %c0_3, %c0_4] : memref<1x16x32xbf16, #tpu.memory_space<vmem>>, vector<1x16x32xbf16>
    %4 = vector.shape_cast %3 : vector<1x16x32xbf16> to vector<16x32xbf16>
    %5 = arith.extf %4 : vector<16x32xbf16> to vector<16x32xf32>
    %c0_5 = arith.constant 0 : index
    %c0_6 = arith.constant 0 : index
    %6 = vector.load %arg8[%c0_5, %c0_6] : memref<1x32xf32, #tpu.memory_space<vmem>>, vector<1x32xf32>
    %c0_7 = arith.constant 0 : index
    %c0_8 = arith.constant 0 : index
    %7 = vector.load %arg9[%c0_7, %c0_8] : memref<1x32xf32, #tpu.memory_space<vmem>>, vector<1x32xf32>
    %cst = arith.constant dense<0.000000e+00> : vector<8xf32>
    %8 = vector.multi_reduction <add>, %2, %cst [1] : vector<8x32xf32> to vector<8xf32>
    %9 = vector.shape_cast %8 : vector<8xf32> to vector<8x1xf32>
    %cst_9 = arith.constant 3.200000e+01 : f32
    %10 = vector.broadcast %cst_9 : f32 to vector<8x1xf32>
    %11 = arith.divf %9, %10 : vector<8x1xf32>
    %12 = vector.broadcast %11 : vector<8x1xf32> to vector<8x32xf32>
    %13 = arith.subf %2, %12 : vector<8x32xf32>
    %14 = arith.mulf %13, %13 : vector<8x32xf32>
    %cst_10 = arith.constant dense<0.000000e+00> : vector<8xf32>
    %15 = vector.multi_reduction <add>, %14, %cst_10 [1] : vector<8x32xf32> to vector<8xf32>
    %16 = vector.shape_cast %15 : vector<8xf32> to vector<8x1xf32>
    %cst_11 = arith.constant 3.200000e+01 : f32
    %17 = vector.broadcast %cst_11 : f32 to vector<8x1xf32>
    %18 = arith.divf %16, %17 : vector<8x1xf32>
    %19 = vector.broadcast %11 : vector<8x1xf32> to vector<8x32xf32>
    %20 = arith.subf %2, %19 : vector<8x32xf32>
    %cst_12 = arith.constant 9.99999974E-6 : f32
    %21 = vector.broadcast %cst_12 : f32 to vector<8x1xf32>
    %22 = arith.addf %18, %21 : vector<8x1xf32>
    %23 = math.rsqrt %22 : vector<8x1xf32>
    %24 = vector.broadcast %23 : vector<8x1xf32> to vector<8x32xf32>
    %25 = arith.mulf %20, %24 : vector<8x32xf32>
    %26 = vector.broadcast %6 : vector<1x32xf32> to vector<8x32xf32>
    %27 = arith.mulf %25, %26 : vector<8x32xf32>
    %28 = vector.broadcast %7 : vector<1x32xf32> to vector<8x32xf32>
    %29 = arith.addf %27, %28 : vector<8x32xf32>
    %c0_13 = arith.constant 0 : index
    %c0_14 = arith.constant 0 : index
    %30 = vector.load %arg6[%c0_13, %c0_14] : memref<1x32xf32, #tpu.memory_space<vmem>>, vector<1x32xf32>
    %c0_15 = arith.constant 0 : index
    %c0_16 = arith.constant 0 : index
    %31 = vector.load %arg7[%c0_15, %c0_16] : memref<1x32xf32, #tpu.memory_space<vmem>>, vector<1x32xf32>
    %cst_17 = arith.constant dense<0.000000e+00> : vector<16xf32>
    %32 = vector.multi_reduction <add>, %5, %cst_17 [1] : vector<16x32xf32> to vector<16xf32>
    %33 = vector.shape_cast %32 : vector<16xf32> to vector<16x1xf32>
    %cst_18 = arith.constant 3.200000e+01 : f32
    %34 = vector.broadcast %cst_18 : f32 to vector<16x1xf32>
    %35 = arith.divf %33, %34 : vector<16x1xf32>
    %36 = vector.broadcast %35 : vector<16x1xf32> to vector<16x32xf32>
    %37 = arith.subf %5, %36 : vector<16x32xf32>
    %38 = arith.mulf %37, %37 : vector<16x32xf32>
    %cst_19 = arith.constant dense<0.000000e+00> : vector<16xf32>
    %39 = vector.multi_reduction <add>, %38, %cst_19 [1] : vector<16x32xf32> to vector<16xf32>
    %40 = vector.shape_cast %39 : vector<16xf32> to vector<16x1xf32>
    %cst_20 = arith.constant 3.200000e+01 : f32
    %41 = vector.broadcast %cst_20 : f32 to vector<16x1xf32>
    %42 = arith.divf %40, %41 : vector<16x1xf32>
    %43 = vector.broadcast %35 : vector<16x1xf32> to vector<16x32xf32>
    %44 = arith.subf %5, %43 : vector<16x32xf32>
    %cst_21 = arith.constant 9.99999974E-6 : f32
    %45 = vector.broadcast %cst_21 : f32 to vector<16x1xf32>
    %46 = arith.addf %42, %45 : vector<16x1xf32>
    %47 = math.rsqrt %46 : vector<16x1xf32>
    %48 = vector.broadcast %47 : vector<16x1xf32> to vector<16x32xf32>
    %49 = arith.mulf %44, %48 : vector<16x32xf32>
    %50 = vector.broadcast %30 : vector<1x32xf32> to vector<16x32xf32>
    %51 = arith.mulf %49, %50 : vector<16x32xf32>
    %52 = vector.broadcast %31 : vector<1x32xf32> to vector<16x32xf32>
    %53 = arith.addf %51, %52 : vector<16x32xf32>
    %c0_22 = arith.constant 0 : index
    %c0_23 = arith.constant 0 : index
    %54 = vector.load %arg10[%c0_22, %c0_23] : memref<32x32xbf16, #tpu.memory_space<vmem>>, vector<32x32xbf16>
    %55 = arith.truncf %53 : vector<16x32xf32> to vector<16x32xbf16>
    %cst_24 = arith.constant dense<0.000000e+00> : vector<16x32xf32>
    %56 = tpu.matmul %55, %54, %cst_24 {dimension_numbers = #tpu.dot_dimension_numbers<[1], [0], [0], [1], [0, 0, 1, 1], [], []>} : vector<16x32xbf16>, vector<32x32xbf16>, vector<16x32xf32> -> vector<16x32xf32>
    %c0_25 = arith.constant 0 : index
    %c0_26 = arith.constant 0 : index
    %57 = vector.load %arg11[%c0_25, %c0_26] : memref<1x32xf32, #tpu.memory_space<vmem>>, vector<1x32xf32>
    %58 = vector.broadcast %57 : vector<1x32xf32> to vector<16x32xf32>
    %59 = arith.addf %56, %58 : vector<16x32xf32>
    %c0_27 = arith.constant 0 : index
    %c0_28 = arith.constant 0 : index
    %60 = vector.load %arg12[%c0_27, %c0_28] : memref<32x32xbf16, #tpu.memory_space<vmem>>, vector<32x32xbf16>
    %61 = arith.truncf %29 : vector<8x32xf32> to vector<8x32xbf16>
    %cst_29 = arith.constant dense<0.000000e+00> : vector<8x32xf32>
    %62 = tpu.matmul %61, %60, %cst_29 {dimension_numbers = #tpu.dot_dimension_numbers<[1], [0], [0], [1], [0, 0, 1, 1], [], []>} : vector<8x32xbf16>, vector<32x32xbf16>, vector<8x32xf32> -> vector<8x32xf32>
    %c0_30 = arith.constant 0 : index
    %c0_31 = arith.constant 0 : index
    %63 = vector.load %arg13[%c0_30, %c0_31] : memref<1x32xf32, #tpu.memory_space<vmem>>, vector<1x32xf32>
    %64 = vector.broadcast %63 : vector<1x32xf32> to vector<8x32xf32>
    %65 = arith.addf %62, %64 : vector<8x32xf32>
    %c0_32 = arith.constant 0 : index
    %c0_33 = arith.constant 0 : index
    %66 = vector.load %arg14[%c0_32, %c0_33] : memref<32x64xbf16, #tpu.memory_space<vmem>>, vector<32x64xbf16>
    %67 = arith.truncf %59 : vector<16x32xf32> to vector<16x32xbf16>
    %cst_34 = arith.constant dense<0.000000e+00> : vector<16x64xf32>
    %68 = tpu.matmul %67, %66, %cst_34 {dimension_numbers = #tpu.dot_dimension_numbers<[1], [0], [0], [1], [0, 0, 1, 1], [], []>} : vector<16x32xbf16>, vector<32x64xbf16>, vector<16x64xf32> -> vector<16x64xf32>
    %c0_35 = arith.constant 0 : index
    %c0_36 = arith.constant 0 : index
    %69 = vector.load %arg15[%c0_35, %c0_36] : memref<1x64xf32, #tpu.memory_space<vmem>>, vector<1x64xf32>
    %70 = vector.broadcast %69 : vector<1x64xf32> to vector<16x64xf32>
    %71 = arith.addf %68, %70 : vector<16x64xf32>
    %72 = vector.extract_strided_slice %71 {offsets = [0, 0], sizes = [16, 32], strides = [1, 1]} : vector<16x64xf32> to vector<16x32xf32>
    %73 = vector.extract_strided_slice %71 {offsets = [0, 32], sizes = [16, 32], strides = [1, 1]} : vector<16x64xf32> to vector<16x32xf32>
    %c0_37 = arith.constant 0 : index
    %c0_38 = arith.constant 0 : index
    %74 = vector.load %arg16[%c0_37, %c0_38] : memref<32x32xbf16, #tpu.memory_space<vmem>>, vector<32x32xbf16>
    %cst_39 = arith.constant 0.000000e+00 : f32
    %75 = vector.broadcast %cst_39 : f32 to vector<8x32xf32>
    %76 = vector.extract_strided_slice %65 {offsets = [0, 0], sizes = [8, 16], strides = [1, 1]} : vector<8x32xf32> to vector<8x16xf32>
    %77 = vector.extract_strided_slice %72 {offsets = [0, 0], sizes = [16, 16], strides = [1, 1]} : vector<16x32xf32> to vector<16x16xf32>
    %78 = arith.truncf %76 : vector<8x16xf32> to vector<8x16xbf16>
    %79 = arith.truncf %77 : vector<16x16xf32> to vector<16x16xbf16>
    %cst_40 = arith.constant dense<0.000000e+00> : vector<8x16xf32>
    %80 = tpu.matmul %78, %79, %cst_40 {dimension_numbers = #tpu.dot_dimension_numbers<[1], [1], [0], [0], [0, 0, 1, 0], [], []>} : vector<8x16xbf16>, vector<16x16xbf16>, vector<8x16xf32> -> vector<8x16xf32>
    %cst_41 = arith.constant 2.500000e-01 : f32
    %81 = vector.broadcast %cst_41 : f32 to vector<8x16xf32>
    %82 = arith.mulf %80, %81 : vector<8x16xf32>
    %cst_42 = arith.constant dense<0xFF800000> : vector<8xf32>
    %83 = vector.multi_reduction <maximumf>, %82, %cst_42 [1] : vector<8x16xf32> to vector<8xf32>
    %84 = vector.shape_cast %83 : vector<8xf32> to vector<8x1xf32>
    %85 = vector.broadcast %84 : vector<8x1xf32> to vector<8x16xf32>
    %86 = arith.subf %82, %85 : vector<8x16xf32>
    %87 = math.exp %86 : vector<8x16xf32>
    %cst_43 = arith.constant dense<0.000000e+00> : vector<8xf32>
    %88 = vector.multi_reduction <add>, %87, %cst_43 [1] : vector<8x16xf32> to vector<8xf32>
    %89 = vector.shape_cast %88 : vector<8xf32> to vector<8x1xf32>
    %90 = tpu.reciprocal %89 {approx = true} : vector<8x1xf32> -> vector<8x1xf32>
    %91 = vector.broadcast %90 : vector<8x1xf32> to vector<8x16xf32>
    %92 = arith.mulf %87, %91 : vector<8x16xf32>
    %93 = vector.extract_strided_slice %73 {offsets = [0, 0], sizes = [16, 16], strides = [1, 1]} : vector<16x32xf32> to vector<16x16xf32>
    %94 = arith.truncf %92 : vector<8x16xf32> to vector<8x16xbf16>
    %95 = arith.truncf %93 : vector<16x16xf32> to vector<16x16xbf16>
    %cst_44 = arith.constant dense<0.000000e+00> : vector<8x16xf32>
    %96 = tpu.matmul %94, %95, %cst_44 {dimension_numbers = #tpu.dot_dimension_numbers<[1], [0], [0], [1], [0, 0, 1, 1], [], []>} : vector<8x16xbf16>, vector<16x16xbf16>, vector<8x16xf32> -> vector<8x16xf32>
    %97 = vector.extract_strided_slice %74 {offsets = [0, 0], sizes = [16, 32], strides = [1, 1]} : vector<32x32xbf16> to vector<16x32xbf16>
    %98 = arith.truncf %96 : vector<8x16xf32> to vector<8x16xbf16>
    %cst_45 = arith.constant dense<0.000000e+00> : vector<8x32xf32>
    %99 = tpu.matmul %98, %97, %cst_45 {dimension_numbers = #tpu.dot_dimension_numbers<[1], [0], [0], [1], [0, 0, 1, 1], [], []>} : vector<8x16xbf16>, vector<16x32xbf16>, vector<8x32xf32> -> vector<8x32xf32>
    %100 = arith.addf %75, %99 : vector<8x32xf32>
    %101 = vector.extract_strided_slice %65 {offsets = [0, 16], sizes = [8, 16], strides = [1, 1]} : vector<8x32xf32> to vector<8x16xf32>
    %102 = vector.extract_strided_slice %72 {offsets = [0, 16], sizes = [16, 16], strides = [1, 1]} : vector<16x32xf32> to vector<16x16xf32>
    %103 = arith.truncf %101 : vector<8x16xf32> to vector<8x16xbf16>
    %104 = arith.truncf %102 : vector<16x16xf32> to vector<16x16xbf16>
    %cst_46 = arith.constant dense<0.000000e+00> : vector<8x16xf32>
    %105 = tpu.matmul %103, %104, %cst_46 {dimension_numbers = #tpu.dot_dimension_numbers<[1], [1], [0], [0], [0, 0, 1, 0], [], []>} : vector<8x16xbf16>, vector<16x16xbf16>, vector<8x16xf32> -> vector<8x16xf32>
    %cst_47 = arith.constant 2.500000e-01 : f32
    %106 = vector.broadcast %cst_47 : f32 to vector<8x16xf32>
    %107 = arith.mulf %105, %106 : vector<8x16xf32>
    %cst_48 = arith.constant dense<0xFF800000> : vector<8xf32>
    %108 = vector.multi_reduction <maximumf>, %107, %cst_48 [1] : vector<8x16xf32> to vector<8xf32>
    %109 = vector.shape_cast %108 : vector<8xf32> to vector<8x1xf32>
    %110 = vector.broadcast %109 : vector<8x1xf32> to vector<8x16xf32>
    %111 = arith.subf %107, %110 : vector<8x16xf32>
    %112 = math.exp %111 : vector<8x16xf32>
    %cst_49 = arith.constant dense<0.000000e+00> : vector<8xf32>
    %113 = vector.multi_reduction <add>, %112, %cst_49 [1] : vector<8x16xf32> to vector<8xf32>
    %114 = vector.shape_cast %113 : vector<8xf32> to vector<8x1xf32>
    %115 = tpu.reciprocal %114 {approx = true} : vector<8x1xf32> -> vector<8x1xf32>
    %116 = vector.broadcast %115 : vector<8x1xf32> to vector<8x16xf32>
    %117 = arith.mulf %112, %116 : vector<8x16xf32>
    %118 = vector.extract_strided_slice %73 {offsets = [0, 16], sizes = [16, 16], strides = [1, 1]} : vector<16x32xf32> to vector<16x16xf32>
    %119 = arith.truncf %117 : vector<8x16xf32> to vector<8x16xbf16>
    %120 = arith.truncf %118 : vector<16x16xf32> to vector<16x16xbf16>
    %cst_50 = arith.constant dense<0.000000e+00> : vector<8x16xf32>
    %121 = tpu.matmul %119, %120, %cst_50 {dimension_numbers = #tpu.dot_dimension_numbers<[1], [0], [0], [1], [0, 0, 1, 1], [], []>} : vector<8x16xbf16>, vector<16x16xbf16>, vector<8x16xf32> -> vector<8x16xf32>
    %122 = vector.extract_strided_slice %74 {offsets = [16, 0], sizes = [16, 32], strides = [1, 1]} : vector<32x32xbf16> to vector<16x32xbf16>
    %123 = arith.truncf %121 : vector<8x16xf32> to vector<8x16xbf16>
    %cst_51 = arith.constant dense<0.000000e+00> : vector<8x32xf32>
    %124 = tpu.matmul %123, %122, %cst_51 {dimension_numbers = #tpu.dot_dimension_numbers<[1], [0], [0], [1], [0, 0, 1, 1], [], []>} : vector<8x16xbf16>, vector<16x32xbf16>, vector<8x32xf32> -> vector<8x32xf32>
    %125 = arith.addf %100, %124 : vector<8x32xf32>
    %c0_52 = arith.constant 0 : index
    %c0_53 = arith.constant 0 : index
    %126 = vector.load %arg17[%c0_52, %c0_53] : memref<1x32xf32, #tpu.memory_space<vmem>>, vector<1x32xf32>
    %127 = vector.broadcast %126 : vector<1x32xf32> to vector<8x32xf32>
    %128 = arith.addf %125, %127 : vector<8x32xf32>
    %c0_54 = arith.constant 0 : index
    %c0_55 = arith.constant 0 : index
    %129 = vector.load %arg18[%c0_54, %c0_55] : memref<32x64xbf16, #tpu.memory_space<vmem>>, vector<32x64xbf16>
    %c0_56 = arith.constant 0 : index
    %c0_57 = arith.constant 0 : index
    %130 = vector.load %arg19[%c0_56, %c0_57] : memref<32x64xbf16, #tpu.memory_space<vmem>>, vector<32x64xbf16>
    %c0_58 = arith.constant 0 : index
    %c0_59 = arith.constant 0 : index
    %131 = vector.load %arg20[%c0_58, %c0_59] : memref<1x64xf32, #tpu.memory_space<vmem>>, vector<1x64xf32>
    %c0_60 = arith.constant 0 : index
    %c0_61 = arith.constant 0 : index
    %132 = vector.load %arg21[%c0_60, %c0_61] : memref<1x64xf32, #tpu.memory_space<vmem>>, vector<1x64xf32>
    %c0_62 = arith.constant 0 : index
    %c0_63 = arith.constant 0 : index
    %133 = vector.load %arg22[%c0_62, %c0_63] : memref<1x64xf32, #tpu.memory_space<vmem>>, vector<1x64xf32>
    %c0_64 = arith.constant 0 : index
    %c0_65 = arith.constant 0 : index
    %134 = vector.load %arg23[%c0_64, %c0_65] : memref<64x32xbf16, #tpu.memory_space<vmem>>, vector<64x32xbf16>
    %c0_66 = arith.constant 0 : index
    %c0_67 = arith.constant 0 : index
    %135 = vector.load %arg24[%c0_66, %c0_67] : memref<1x32xf32, #tpu.memory_space<vmem>>, vector<1x32xf32>
    %136 = arith.truncf %29 : vector<8x32xf32> to vector<8x32xbf16>
    %cst_68 = arith.constant dense<0.000000e+00> : vector<8x64xf32>
    %137 = tpu.matmul %136, %129, %cst_68 {dimension_numbers = #tpu.dot_dimension_numbers<[1], [0], [0], [1], [0, 0, 1, 1], [], []>} : vector<8x32xbf16>, vector<32x64xbf16>, vector<8x64xf32> -> vector<8x64xf32>
    %138 = arith.truncf %128 : vector<8x32xf32> to vector<8x32xbf16>
    %cst_69 = arith.constant dense<0.000000e+00> : vector<8x64xf32>
    %139 = tpu.matmul %138, %130, %cst_69 {dimension_numbers = #tpu.dot_dimension_numbers<[1], [0], [0], [1], [0, 0, 1, 1], [], []>} : vector<8x32xbf16>, vector<32x64xbf16>, vector<8x64xf32> -> vector<8x64xf32>
    %140 = arith.addf %137, %139 : vector<8x64xf32>
    %141 = vector.broadcast %131 : vector<1x64xf32> to vector<8x64xf32>
    %142 = arith.addf %140, %141 : vector<8x64xf32>
    %cst_70 = arith.constant dense<0.000000e+00> : vector<8xf32>
    %143 = vector.multi_reduction <add>, %142, %cst_70 [1] : vector<8x64xf32> to vector<8xf32>
    %144 = vector.shape_cast %143 : vector<8xf32> to vector<8x1xf32>
    %cst_71 = arith.constant 6.400000e+01 : f32
    %145 = vector.broadcast %cst_71 : f32 to vector<8x1xf32>
    %146 = arith.divf %144, %145 : vector<8x1xf32>
    %147 = vector.broadcast %146 : vector<8x1xf32> to vector<8x64xf32>
    %148 = arith.subf %142, %147 : vector<8x64xf32>
    %149 = arith.mulf %148, %148 : vector<8x64xf32>
    %cst_72 = arith.constant dense<0.000000e+00> : vector<8xf32>
    %150 = vector.multi_reduction <add>, %149, %cst_72 [1] : vector<8x64xf32> to vector<8xf32>
    %151 = vector.shape_cast %150 : vector<8xf32> to vector<8x1xf32>
    %cst_73 = arith.constant 6.400000e+01 : f32
    %152 = vector.broadcast %cst_73 : f32 to vector<8x1xf32>
    %153 = arith.divf %151, %152 : vector<8x1xf32>
    %154 = vector.broadcast %146 : vector<8x1xf32> to vector<8x64xf32>
    %155 = arith.subf %142, %154 : vector<8x64xf32>
    %cst_74 = arith.constant 9.99999974E-6 : f32
    %156 = vector.broadcast %cst_74 : f32 to vector<8x1xf32>
    %157 = arith.addf %153, %156 : vector<8x1xf32>
    %158 = math.rsqrt %157 : vector<8x1xf32>
    %159 = vector.broadcast %158 : vector<8x1xf32> to vector<8x64xf32>
    %160 = arith.mulf %155, %159 : vector<8x64xf32>
    %161 = vector.broadcast %132 : vector<1x64xf32> to vector<8x64xf32>
    %162 = arith.mulf %160, %161 : vector<8x64xf32>
    %163 = vector.broadcast %133 : vector<1x64xf32> to vector<8x64xf32>
    %164 = arith.addf %162, %163 : vector<8x64xf32>
    %cst_75 = arith.constant 5.000000e-01 : f32
    %165 = vector.broadcast %cst_75 : f32 to vector<8x64xf32>
    %166 = arith.mulf %165, %164 : vector<8x64xf32>
    %cst_76 = arith.constant 4.471500e-02 : f32
    %167 = vector.broadcast %cst_76 : f32 to vector<8x64xf32>
    %168 = arith.mulf %167, %164 : vector<8x64xf32>
    %169 = arith.mulf %168, %164 : vector<8x64xf32>
    %170 = arith.mulf %169, %164 : vector<8x64xf32>
    %171 = arith.addf %164, %170 : vector<8x64xf32>
    %cst_77 = arith.constant 0.797884583 : f32
    %172 = vector.broadcast %cst_77 : f32 to vector<8x64xf32>
    %173 = arith.mulf %172, %171 : vector<8x64xf32>
    %174 = math.tanh %173 : vector<8x64xf32>
    %cst_78 = arith.constant 1.000000e+00 : f32
    %175 = vector.broadcast %cst_78 : f32 to vector<8x64xf32>
    %176 = arith.addf %175, %174 : vector<8x64xf32>
    %177 = arith.mulf %166, %176 : vector<8x64xf32>
    %178 = arith.truncf %177 : vector<8x64xf32> to vector<8x64xbf16>
    %cst_79 = arith.constant dense<0.000000e+00> : vector<8x32xf32>
    %179 = tpu.matmul %178, %134, %cst_79 {dimension_numbers = #tpu.dot_dimension_numbers<[1], [0], [0], [1], [0, 0, 1, 1], [], []>} : vector<8x64xbf16>, vector<64x32xbf16>, vector<8x32xf32> -> vector<8x32xf32>
    %180 = arith.addf %29, %179 : vector<8x32xf32>
    %181 = vector.broadcast %135 : vector<1x32xf32> to vector<8x32xf32>
    %182 = arith.addf %180, %181 : vector<8x32xf32>
    %c0_80 = arith.constant 0 : index
    %c0_81 = arith.constant 0 : index
    %c0_82 = arith.constant 0 : index
    %183 = vector.load %arg3[%c0_80, %c0_81, %c0_82] : memref<1x8x32xbf16, #tpu.memory_space<vmem>>, vector<1x8x32xbf16>
    %184 = vector.shape_cast %183 : vector<1x8x32xbf16> to vector<8x32xbf16>
    %185 = arith.extf %184 : vector<8x32xbf16> to vector<8x32xf32>
    %c0_83 = arith.constant 0 : index
    %c0_84 = arith.constant 0 : index
    %c0_85 = arith.constant 0 : index
    %186 = vector.load %arg4[%c0_83, %c0_84, %c0_85] : memref<1x8x32xbf16, #tpu.memory_space<vmem>>, vector<1x8x32xbf16>
    %187 = vector.shape_cast %186 : vector<1x8x32xbf16> to vector<8x32xbf16>
    %188 = arith.extf %187 : vector<8x32xbf16> to vector<8x32xf32>
    %c0_86 = arith.constant 0 : index
    %c0_87 = arith.constant 0 : index
    %c0_88 = arith.constant 0 : index
    %189 = vector.load %arg5[%c0_86, %c0_87, %c0_88] : memref<1x8x32xbf16, #tpu.memory_space<vmem>>, vector<1x8x32xbf16>
    %190 = vector.shape_cast %189 : vector<1x8x32xbf16> to vector<8x32xbf16>
    %191 = arith.extf %190 : vector<8x32xbf16> to vector<8x32xf32>
    %c0_89 = arith.constant 0 : index
    %c0_90 = arith.constant 0 : index
    %192 = vector.load %arg25[%c0_89, %c0_90] : memref<32x96xbf16, #tpu.memory_space<vmem>>, vector<32x96xbf16>
    %193 = arith.truncf %182 : vector<8x32xf32> to vector<8x32xbf16>
    %cst_91 = arith.constant dense<0.000000e+00> : vector<8x96xf32>
    %194 = tpu.matmul %193, %192, %cst_91 {dimension_numbers = #tpu.dot_dimension_numbers<[1], [0], [0], [1], [0, 0, 1, 1], [], []>} : vector<8x32xbf16>, vector<32x96xbf16>, vector<8x96xf32> -> vector<8x96xf32>
    %c0_92 = arith.constant 0 : index
    %c0_93 = arith.constant 0 : index
    %195 = vector.load %arg26[%c0_92, %c0_93] : memref<1x96xf32, #tpu.memory_space<vmem>>, vector<1x96xf32>
    %196 = vector.broadcast %195 : vector<1x96xf32> to vector<8x96xf32>
    %197 = arith.addf %194, %196 : vector<8x96xf32>
    %198 = vector.extract_strided_slice %197 {offsets = [0, 0], sizes = [8, 32], strides = [1, 1]} : vector<8x96xf32> to vector<8x32xf32>
    %199 = arith.mulf %198, %185 : vector<8x32xf32>
    %c31_i32 = arith.constant 31 : i32
    %200 = tpu.dynamic_rotate %198 by %c31_i32 dim 1 : vector<8x32xf32>, i32 -> vector<8x32xf32>
    %201 = arith.mulf %200, %188 : vector<8x32xf32>
    %202 = arith.addf %199, %201 : vector<8x32xf32>
    %c1_i32 = arith.constant 1 : i32
    %203 = tpu.dynamic_rotate %198 by %c1_i32 dim 1 : vector<8x32xf32>, i32 -> vector<8x32xf32>
    %204 = arith.mulf %203, %191 : vector<8x32xf32>
    %205 = arith.addf %202, %204 : vector<8x32xf32>
    %206 = vector.extract_strided_slice %197 {offsets = [0, 32], sizes = [8, 32], strides = [1, 1]} : vector<8x96xf32> to vector<8x32xf32>
    %207 = arith.mulf %206, %185 : vector<8x32xf32>
    %c31_i32_94 = arith.constant 31 : i32
    %208 = tpu.dynamic_rotate %206 by %c31_i32_94 dim 1 : vector<8x32xf32>, i32 -> vector<8x32xf32>
    %209 = arith.mulf %208, %188 : vector<8x32xf32>
    %210 = arith.addf %207, %209 : vector<8x32xf32>
    %c1_i32_95 = arith.constant 1 : i32
    %211 = tpu.dynamic_rotate %206 by %c1_i32_95 dim 1 : vector<8x32xf32>, i32 -> vector<8x32xf32>
    %212 = arith.mulf %211, %191 : vector<8x32xf32>
    %213 = arith.addf %210, %212 : vector<8x32xf32>
    %214 = vector.extract_strided_slice %197 {offsets = [0, 64], sizes = [8, 32], strides = [1, 1]} : vector<8x96xf32> to vector<8x32xf32>
    %c0_96 = arith.constant 0 : index
    %c0_97 = arith.constant 0 : index
    %215 = vector.load %arg27[%c0_96, %c0_97] : memref<32x32xbf16, #tpu.memory_space<vmem>>, vector<32x32xbf16>
    %cst_98 = arith.constant 0.000000e+00 : f32
    %216 = vector.broadcast %cst_98 : f32 to vector<8x32xf32>
    %217 = vector.extract_strided_slice %205 {offsets = [0, 0], sizes = [8, 16], strides = [1, 1]} : vector<8x32xf32> to vector<8x16xf32>
    %218 = vector.extract_strided_slice %213 {offsets = [0, 0], sizes = [8, 16], strides = [1, 1]} : vector<8x32xf32> to vector<8x16xf32>
    %219 = arith.truncf %217 : vector<8x16xf32> to vector<8x16xbf16>
    %220 = arith.truncf %218 : vector<8x16xf32> to vector<8x16xbf16>
    %cst_99 = arith.constant dense<0.000000e+00> : vector<8x8xf32>
    %221 = tpu.matmul %219, %220, %cst_99 {dimension_numbers = #tpu.dot_dimension_numbers<[1], [1], [0], [0], [0, 0, 1, 0], [], []>} : vector<8x16xbf16>, vector<8x16xbf16>, vector<8x8xf32> -> vector<8x8xf32>
    %cst_100 = arith.constant 2.500000e-01 : f32
    %222 = vector.broadcast %cst_100 : f32 to vector<8x8xf32>
    %223 = arith.mulf %221, %222 : vector<8x8xf32>
    %cst_101 = arith.constant dense<0xFF800000> : vector<8xf32>
    %224 = vector.multi_reduction <maximumf>, %223, %cst_101 [1] : vector<8x8xf32> to vector<8xf32>
    %225 = vector.shape_cast %224 : vector<8xf32> to vector<8x1xf32>
    %226 = vector.broadcast %225 : vector<8x1xf32> to vector<8x8xf32>
    %227 = arith.subf %223, %226 : vector<8x8xf32>
    %228 = math.exp %227 : vector<8x8xf32>
    %cst_102 = arith.constant dense<0.000000e+00> : vector<8xf32>
    %229 = vector.multi_reduction <add>, %228, %cst_102 [1] : vector<8x8xf32> to vector<8xf32>
    %230 = vector.shape_cast %229 : vector<8xf32> to vector<8x1xf32>
    %231 = tpu.reciprocal %230 {approx = true} : vector<8x1xf32> -> vector<8x1xf32>
    %232 = vector.broadcast %231 : vector<8x1xf32> to vector<8x8xf32>
    %233 = arith.mulf %228, %232 : vector<8x8xf32>
    %234 = vector.extract_strided_slice %214 {offsets = [0, 0], sizes = [8, 16], strides = [1, 1]} : vector<8x32xf32> to vector<8x16xf32>
    %235 = arith.truncf %233 : vector<8x8xf32> to vector<8x8xbf16>
    %236 = arith.truncf %234 : vector<8x16xf32> to vector<8x16xbf16>
    %cst_103 = arith.constant dense<0.000000e+00> : vector<8x16xf32>
    %237 = tpu.matmul %235, %236, %cst_103 {dimension_numbers = #tpu.dot_dimension_numbers<[1], [0], [0], [1], [0, 0, 1, 1], [], []>} : vector<8x8xbf16>, vector<8x16xbf16>, vector<8x16xf32> -> vector<8x16xf32>
    %238 = vector.extract_strided_slice %215 {offsets = [0, 0], sizes = [16, 32], strides = [1, 1]} : vector<32x32xbf16> to vector<16x32xbf16>
    %239 = arith.truncf %237 : vector<8x16xf32> to vector<8x16xbf16>
    %cst_104 = arith.constant dense<0.000000e+00> : vector<8x32xf32>
    %240 = tpu.matmul %239, %238, %cst_104 {dimension_numbers = #tpu.dot_dimension_numbers<[1], [0], [0], [1], [0, 0, 1, 1], [], []>} : vector<8x16xbf16>, vector<16x32xbf16>, vector<8x32xf32> -> vector<8x32xf32>
    %241 = arith.addf %216, %240 : vector<8x32xf32>
    %242 = vector.extract_strided_slice %205 {offsets = [0, 16], sizes = [8, 16], strides = [1, 1]} : vector<8x32xf32> to vector<8x16xf32>
    %243 = vector.extract_strided_slice %213 {offsets = [0, 16], sizes = [8, 16], strides = [1, 1]} : vector<8x32xf32> to vector<8x16xf32>
    %244 = arith.truncf %242 : vector<8x16xf32> to vector<8x16xbf16>
    %245 = arith.truncf %243 : vector<8x16xf32> to vector<8x16xbf16>
    %cst_105 = arith.constant dense<0.000000e+00> : vector<8x8xf32>
    %246 = tpu.matmul %244, %245, %cst_105 {dimension_numbers = #tpu.dot_dimension_numbers<[1], [1], [0], [0], [0, 0, 1, 0], [], []>} : vector<8x16xbf16>, vector<8x16xbf16>, vector<8x8xf32> -> vector<8x8xf32>
    %cst_106 = arith.constant 2.500000e-01 : f32
    %247 = vector.broadcast %cst_106 : f32 to vector<8x8xf32>
    %248 = arith.mulf %246, %247 : vector<8x8xf32>
    %cst_107 = arith.constant dense<0xFF800000> : vector<8xf32>
    %249 = vector.multi_reduction <maximumf>, %248, %cst_107 [1] : vector<8x8xf32> to vector<8xf32>
    %250 = vector.shape_cast %249 : vector<8xf32> to vector<8x1xf32>
    %251 = vector.broadcast %250 : vector<8x1xf32> to vector<8x8xf32>
    %252 = arith.subf %248, %251 : vector<8x8xf32>
    %253 = math.exp %252 : vector<8x8xf32>
    %cst_108 = arith.constant dense<0.000000e+00> : vector<8xf32>
    %254 = vector.multi_reduction <add>, %253, %cst_108 [1] : vector<8x8xf32> to vector<8xf32>
    %255 = vector.shape_cast %254 : vector<8xf32> to vector<8x1xf32>
    %256 = tpu.reciprocal %255 {approx = true} : vector<8x1xf32> -> vector<8x1xf32>
    %257 = vector.broadcast %256 : vector<8x1xf32> to vector<8x8xf32>
    %258 = arith.mulf %253, %257 : vector<8x8xf32>
    %259 = vector.extract_strided_slice %214 {offsets = [0, 16], sizes = [8, 16], strides = [1, 1]} : vector<8x32xf32> to vector<8x16xf32>
    %260 = arith.truncf %258 : vector<8x8xf32> to vector<8x8xbf16>
    %261 = arith.truncf %259 : vector<8x16xf32> to vector<8x16xbf16>
    %cst_109 = arith.constant dense<0.000000e+00> : vector<8x16xf32>
    %262 = tpu.matmul %260, %261, %cst_109 {dimension_numbers = #tpu.dot_dimension_numbers<[1], [0], [0], [1], [0, 0, 1, 1], [], []>} : vector<8x8xbf16>, vector<8x16xbf16>, vector<8x16xf32> -> vector<8x16xf32>
    %263 = vector.extract_strided_slice %215 {offsets = [16, 0], sizes = [16, 32], strides = [1, 1]} : vector<32x32xbf16> to vector<16x32xbf16>
    %264 = arith.truncf %262 : vector<8x16xf32> to vector<8x16xbf16>
    %cst_110 = arith.constant dense<0.000000e+00> : vector<8x32xf32>
    %265 = tpu.matmul %264, %263, %cst_110 {dimension_numbers = #tpu.dot_dimension_numbers<[1], [0], [0], [1], [0, 0, 1, 1], [], []>} : vector<8x16xbf16>, vector<16x32xbf16>, vector<8x32xf32> -> vector<8x32xf32>
    %266 = arith.addf %241, %265 : vector<8x32xf32>
    %c0_111 = arith.constant 0 : index
    %c0_112 = arith.constant 0 : index
    %267 = vector.load %arg28[%c0_111, %c0_112] : memref<1x32xf32, #tpu.memory_space<vmem>>, vector<1x32xf32>
    %268 = vector.broadcast %267 : vector<1x32xf32> to vector<8x32xf32>
    %269 = arith.addf %266, %268 : vector<8x32xf32>
    %c0_113 = arith.constant 0 : index
    %c0_114 = arith.constant 0 : index
    %270 = vector.load %arg29[%c0_113, %c0_114] : memref<32x64xbf16, #tpu.memory_space<vmem>>, vector<32x64xbf16>
    %c0_115 = arith.constant 0 : index
    %c0_116 = arith.constant 0 : index
    %271 = vector.load %arg30[%c0_115, %c0_116] : memref<32x64xbf16, #tpu.memory_space<vmem>>, vector<32x64xbf16>
    %c0_117 = arith.constant 0 : index
    %c0_118 = arith.constant 0 : index
    %272 = vector.load %arg31[%c0_117, %c0_118] : memref<1x64xf32, #tpu.memory_space<vmem>>, vector<1x64xf32>
    %c0_119 = arith.constant 0 : index
    %c0_120 = arith.constant 0 : index
    %273 = vector.load %arg32[%c0_119, %c0_120] : memref<1x64xf32, #tpu.memory_space<vmem>>, vector<1x64xf32>
    %c0_121 = arith.constant 0 : index
    %c0_122 = arith.constant 0 : index
    %274 = vector.load %arg33[%c0_121, %c0_122] : memref<1x64xf32, #tpu.memory_space<vmem>>, vector<1x64xf32>
    %c0_123 = arith.constant 0 : index
    %c0_124 = arith.constant 0 : index
    %275 = vector.load %arg34[%c0_123, %c0_124] : memref<64x32xbf16, #tpu.memory_space<vmem>>, vector<64x32xbf16>
    %c0_125 = arith.constant 0 : index
    %c0_126 = arith.constant 0 : index
    %276 = vector.load %arg35[%c0_125, %c0_126] : memref<1x32xf32, #tpu.memory_space<vmem>>, vector<1x32xf32>
    %277 = arith.truncf %182 : vector<8x32xf32> to vector<8x32xbf16>
    %cst_127 = arith.constant dense<0.000000e+00> : vector<8x64xf32>
    %278 = tpu.matmul %277, %270, %cst_127 {dimension_numbers = #tpu.dot_dimension_numbers<[1], [0], [0], [1], [0, 0, 1, 1], [], []>} : vector<8x32xbf16>, vector<32x64xbf16>, vector<8x64xf32> -> vector<8x64xf32>
    %279 = arith.truncf %269 : vector<8x32xf32> to vector<8x32xbf16>
    %cst_128 = arith.constant dense<0.000000e+00> : vector<8x64xf32>
    %280 = tpu.matmul %279, %271, %cst_128 {dimension_numbers = #tpu.dot_dimension_numbers<[1], [0], [0], [1], [0, 0, 1, 1], [], []>} : vector<8x32xbf16>, vector<32x64xbf16>, vector<8x64xf32> -> vector<8x64xf32>
    %281 = arith.addf %278, %280 : vector<8x64xf32>
    %282 = vector.broadcast %272 : vector<1x64xf32> to vector<8x64xf32>
    %283 = arith.addf %281, %282 : vector<8x64xf32>
    %cst_129 = arith.constant dense<0.000000e+00> : vector<8xf32>
    %284 = vector.multi_reduction <add>, %283, %cst_129 [1] : vector<8x64xf32> to vector<8xf32>
    %285 = vector.shape_cast %284 : vector<8xf32> to vector<8x1xf32>
    %cst_130 = arith.constant 6.400000e+01 : f32
    %286 = vector.broadcast %cst_130 : f32 to vector<8x1xf32>
    %287 = arith.divf %285, %286 : vector<8x1xf32>
    %288 = vector.broadcast %287 : vector<8x1xf32> to vector<8x64xf32>
    %289 = arith.subf %283, %288 : vector<8x64xf32>
    %290 = arith.mulf %289, %289 : vector<8x64xf32>
    %cst_131 = arith.constant dense<0.000000e+00> : vector<8xf32>
    %291 = vector.multi_reduction <add>, %290, %cst_131 [1] : vector<8x64xf32> to vector<8xf32>
    %292 = vector.shape_cast %291 : vector<8xf32> to vector<8x1xf32>
    %cst_132 = arith.constant 6.400000e+01 : f32
    %293 = vector.broadcast %cst_132 : f32 to vector<8x1xf32>
    %294 = arith.divf %292, %293 : vector<8x1xf32>
    %295 = vector.broadcast %287 : vector<8x1xf32> to vector<8x64xf32>
    %296 = arith.subf %283, %295 : vector<8x64xf32>
    %cst_133 = arith.constant 9.99999974E-6 : f32
    %297 = vector.broadcast %cst_133 : f32 to vector<8x1xf32>
    %298 = arith.addf %294, %297 : vector<8x1xf32>
    %299 = math.rsqrt %298 : vector<8x1xf32>
    %300 = vector.broadcast %299 : vector<8x1xf32> to vector<8x64xf32>
    %301 = arith.mulf %296, %300 : vector<8x64xf32>
    %302 = vector.broadcast %273 : vector<1x64xf32> to vector<8x64xf32>
    %303 = arith.mulf %301, %302 : vector<8x64xf32>
    %304 = vector.broadcast %274 : vector<1x64xf32> to vector<8x64xf32>
    %305 = arith.addf %303, %304 : vector<8x64xf32>
    %cst_134 = arith.constant 5.000000e-01 : f32
    %306 = vector.broadcast %cst_134 : f32 to vector<8x64xf32>
    %307 = arith.mulf %306, %305 : vector<8x64xf32>
    %cst_135 = arith.constant 4.471500e-02 : f32
    %308 = vector.broadcast %cst_135 : f32 to vector<8x64xf32>
    %309 = arith.mulf %308, %305 : vector<8x64xf32>
    %310 = arith.mulf %309, %305 : vector<8x64xf32>
    %311 = arith.mulf %310, %305 : vector<8x64xf32>
    %312 = arith.addf %305, %311 : vector<8x64xf32>
    %cst_136 = arith.constant 0.797884583 : f32
    %313 = vector.broadcast %cst_136 : f32 to vector<8x64xf32>
    %314 = arith.mulf %313, %312 : vector<8x64xf32>
    %315 = math.tanh %314 : vector<8x64xf32>
    %cst_137 = arith.constant 1.000000e+00 : f32
    %316 = vector.broadcast %cst_137 : f32 to vector<8x64xf32>
    %317 = arith.addf %316, %315 : vector<8x64xf32>
    %318 = arith.mulf %307, %317 : vector<8x64xf32>
    %319 = arith.truncf %318 : vector<8x64xf32> to vector<8x64xbf16>
    %cst_138 = arith.constant dense<0.000000e+00> : vector<8x32xf32>
    %320 = tpu.matmul %319, %275, %cst_138 {dimension_numbers = #tpu.dot_dimension_numbers<[1], [0], [0], [1], [0, 0, 1, 1], [], []>} : vector<8x64xbf16>, vector<64x32xbf16>, vector<8x32xf32> -> vector<8x32xf32>
    %321 = arith.addf %182, %320 : vector<8x32xf32>
    %322 = vector.broadcast %276 : vector<1x32xf32> to vector<8x32xf32>
    %323 = arith.addf %321, %322 : vector<8x32xf32>
    %c0_139 = arith.constant 0 : index
    %c0_140 = arith.constant 0 : index
    %324 = vector.load %arg36[%c0_139, %c0_140] : memref<32x64xbf16, #tpu.memory_space<vmem>>, vector<32x64xbf16>
    %c0_141 = arith.constant 0 : index
    %c0_142 = arith.constant 0 : index
    %325 = vector.load %arg37[%c0_141, %c0_142] : memref<32x64xbf16, #tpu.memory_space<vmem>>, vector<32x64xbf16>
    %c0_143 = arith.constant 0 : index
    %c0_144 = arith.constant 0 : index
    %326 = vector.load %arg38[%c0_143, %c0_144] : memref<1x64xf32, #tpu.memory_space<vmem>>, vector<1x64xf32>
    %c0_145 = arith.constant 0 : index
    %c0_146 = arith.constant 0 : index
    %327 = vector.load %arg39[%c0_145, %c0_146] : memref<1x64xf32, #tpu.memory_space<vmem>>, vector<1x64xf32>
    %c0_147 = arith.constant 0 : index
    %c0_148 = arith.constant 0 : index
    %328 = vector.load %arg40[%c0_147, %c0_148] : memref<1x64xf32, #tpu.memory_space<vmem>>, vector<1x64xf32>
    %c0_149 = arith.constant 0 : index
    %c0_150 = arith.constant 0 : index
    %329 = vector.load %arg41[%c0_149, %c0_150] : memref<64x32xbf16, #tpu.memory_space<vmem>>, vector<64x32xbf16>
    %c0_151 = arith.constant 0 : index
    %c0_152 = arith.constant 0 : index
    %330 = vector.load %arg42[%c0_151, %c0_152] : memref<1x32xf32, #tpu.memory_space<vmem>>, vector<1x32xf32>
    %331 = arith.truncf %323 : vector<8x32xf32> to vector<8x32xbf16>
    %cst_153 = arith.constant dense<0.000000e+00> : vector<8x64xf32>
    %332 = tpu.matmul %331, %324, %cst_153 {dimension_numbers = #tpu.dot_dimension_numbers<[1], [0], [0], [1], [0, 0, 1, 1], [], []>} : vector<8x32xbf16>, vector<32x64xbf16>, vector<8x64xf32> -> vector<8x64xf32>
    %333 = arith.truncf %2 : vector<8x32xf32> to vector<8x32xbf16>
    %cst_154 = arith.constant dense<0.000000e+00> : vector<8x64xf32>
    %334 = tpu.matmul %333, %325, %cst_154 {dimension_numbers = #tpu.dot_dimension_numbers<[1], [0], [0], [1], [0, 0, 1, 1], [], []>} : vector<8x32xbf16>, vector<32x64xbf16>, vector<8x64xf32> -> vector<8x64xf32>
    %335 = arith.addf %332, %334 : vector<8x64xf32>
    %336 = vector.broadcast %326 : vector<1x64xf32> to vector<8x64xf32>
    %337 = arith.addf %335, %336 : vector<8x64xf32>
    %cst_155 = arith.constant dense<0.000000e+00> : vector<8xf32>
    %338 = vector.multi_reduction <add>, %337, %cst_155 [1] : vector<8x64xf32> to vector<8xf32>
    %339 = vector.shape_cast %338 : vector<8xf32> to vector<8x1xf32>
    %cst_156 = arith.constant 6.400000e+01 : f32
    %340 = vector.broadcast %cst_156 : f32 to vector<8x1xf32>
    %341 = arith.divf %339, %340 : vector<8x1xf32>
    %342 = vector.broadcast %341 : vector<8x1xf32> to vector<8x64xf32>
    %343 = arith.subf %337, %342 : vector<8x64xf32>
    %344 = arith.mulf %343, %343 : vector<8x64xf32>
    %cst_157 = arith.constant dense<0.000000e+00> : vector<8xf32>
    %345 = vector.multi_reduction <add>, %344, %cst_157 [1] : vector<8x64xf32> to vector<8xf32>
    %346 = vector.shape_cast %345 : vector<8xf32> to vector<8x1xf32>
    %cst_158 = arith.constant 6.400000e+01 : f32
    %347 = vector.broadcast %cst_158 : f32 to vector<8x1xf32>
    %348 = arith.divf %346, %347 : vector<8x1xf32>
    %349 = vector.broadcast %341 : vector<8x1xf32> to vector<8x64xf32>
    %350 = arith.subf %337, %349 : vector<8x64xf32>
    %cst_159 = arith.constant 9.99999974E-6 : f32
    %351 = vector.broadcast %cst_159 : f32 to vector<8x1xf32>
    %352 = arith.addf %348, %351 : vector<8x1xf32>
    %353 = math.rsqrt %352 : vector<8x1xf32>
    %354 = vector.broadcast %353 : vector<8x1xf32> to vector<8x64xf32>
    %355 = arith.mulf %350, %354 : vector<8x64xf32>
    %356 = vector.broadcast %327 : vector<1x64xf32> to vector<8x64xf32>
    %357 = arith.mulf %355, %356 : vector<8x64xf32>
    %358 = vector.broadcast %328 : vector<1x64xf32> to vector<8x64xf32>
    %359 = arith.addf %357, %358 : vector<8x64xf32>
    %cst_160 = arith.constant 5.000000e-01 : f32
    %360 = vector.broadcast %cst_160 : f32 to vector<8x64xf32>
    %361 = arith.mulf %360, %359 : vector<8x64xf32>
    %cst_161 = arith.constant 4.471500e-02 : f32
    %362 = vector.broadcast %cst_161 : f32 to vector<8x64xf32>
    %363 = arith.mulf %362, %359 : vector<8x64xf32>
    %364 = arith.mulf %363, %359 : vector<8x64xf32>
    %365 = arith.mulf %364, %359 : vector<8x64xf32>
    %366 = arith.addf %359, %365 : vector<8x64xf32>
    %cst_162 = arith.constant 0.797884583 : f32
    %367 = vector.broadcast %cst_162 : f32 to vector<8x64xf32>
    %368 = arith.mulf %367, %366 : vector<8x64xf32>
    %369 = math.tanh %368 : vector<8x64xf32>
    %cst_163 = arith.constant 1.000000e+00 : f32
    %370 = vector.broadcast %cst_163 : f32 to vector<8x64xf32>
    %371 = arith.addf %370, %369 : vector<8x64xf32>
    %372 = arith.mulf %361, %371 : vector<8x64xf32>
    %373 = arith.truncf %372 : vector<8x64xf32> to vector<8x64xbf16>
    %cst_164 = arith.constant dense<0.000000e+00> : vector<8x32xf32>
    %374 = tpu.matmul %373, %329, %cst_164 {dimension_numbers = #tpu.dot_dimension_numbers<[1], [0], [0], [1], [0, 0, 1, 1], [], []>} : vector<8x64xbf16>, vector<64x32xbf16>, vector<8x32xf32> -> vector<8x32xf32>
    %375 = arith.addf %323, %374 : vector<8x32xf32>
    %376 = vector.broadcast %330 : vector<1x32xf32> to vector<8x32xf32>
    %377 = arith.addf %375, %376 : vector<8x32xf32>
    %378 = arith.truncf %377 : vector<8x32xf32> to vector<8x32xbf16>
    %c0_165 = arith.constant 0 : index
    %c0_166 = arith.constant 0 : index
    %c0_167 = arith.constant 0 : index
    %379 = vector.load %arg43[%c0_165, %c0_166, %c0_167] : memref<1x8x32xbf16, #tpu.memory_space<vmem>>, vector<1x8x32xbf16>
    %380 = vector.shape_cast %379 : vector<1x8x32xbf16> to vector<8x32xbf16>
    %381 = vector.shape_cast %378 : vector<8x32xbf16> to vector<1x8x32xbf16>
    tpu.vector_store %arg43[%c0_165, %c0_166, %c0_167], %381 {strides = array<i32>} : memref<1x8x32xbf16, #tpu.memory_space<vmem>>, vector<1x8x32xbf16>,
    return
  }
  func.func @transform_0(%arg0: i32) -> (i32, i32, i32) {
    %c0_i32 = arith.constant 0 : i32
    %0 = arith.addi %arg0, %c0_i32 : i32
    %c0_i32_0 = arith.constant 0 : i32
    %c0_i32_1 = arith.constant 0 : i32
    %c0_i32_2 = arith.constant 0 : i32
    return %0, %c0_i32_0, %c0_i32_1 : i32, i32, i32
  }
  func.func @transform_1(%arg0: i32) -> (i32, i32, i32) {
    %c0_i32 = arith.constant 0 : i32
    %0 = arith.addi %arg0, %c0_i32 : i32
    %c0_i32_0 = arith.constant 0 : i32
    %c0_i32_1 = arith.constant 0 : i32
    %c0_i32_2 = arith.constant 0 : i32
    return %0, %c0_i32_0, %c0_i32_1 : i32, i32, i32
  }
  func.func @transform_2(%arg0: i32) -> (i32, i32, i32) {
    %c0_i32 = arith.constant 0 : i32
    %0 = arith.addi %arg0, %c0_i32 : i32
    %c0_i32_0 = arith.constant 0 : i32
    %c0_i32_1 = arith.constant 0 : i32
    %c0_i32_2 = arith.constant 0 : i32
    return %0, %c0_i32_0, %c0_i32_1 : i32, i32, i32
  }
  func.func @transform_3(%arg0: i32) -> (i32, i32, i32) {
    %c0_i32 = arith.constant 0 : i32
    %0 = arith.addi %arg0, %c0_i32 : i32
    %c0_i32_0 = arith.constant 0 : i32
    %c0_i32_1 = arith.constant 0 : i32
    %c0_i32_2 = arith.constant 0 : i32
    return %0, %c0_i32_0, %c0_i32_1 : i32, i32, i32
  }
  func.func @transform_4(%arg0: i32) -> (i32, i32, i32) {
    %c0_i32 = arith.constant 0 : i32
    %0 = arith.addi %arg0, %c0_i32 : i32
    %c0_i32_0 = arith.constant 0 : i32
    %c0_i32_1 = arith.constant 0 : i32
    %c0_i32_2 = arith.constant 0 : i32
    return %0, %c0_i32_0, %c0_i32_1 : i32, i32, i32
  }
  func.func @transform_5(%arg0: i32) -> (i32, i32) {
    %c0_i32 = arith.constant 0 : i32
    %c0_i32_0 = arith.constant 0 : i32
    %c0_i32_1 = arith.constant 0 : i32
    return %c0_i32, %c0_i32_0 : i32, i32
  }
  func.func @transform_6(%arg0: i32) -> (i32, i32) {
    %c0_i32 = arith.constant 0 : i32
    %c0_i32_0 = arith.constant 0 : i32
    %c0_i32_1 = arith.constant 0 : i32
    return %c0_i32, %c0_i32_0 : i32, i32
  }
  func.func @transform_7(%arg0: i32) -> (i32, i32) {
    %c0_i32 = arith.constant 0 : i32
    %c0_i32_0 = arith.constant 0 : i32
    %c0_i32_1 = arith.constant 0 : i32
    return %c0_i32, %c0_i32_0 : i32, i32
  }
  func.func @transform_8(%arg0: i32) -> (i32, i32) {
    %c0_i32 = arith.constant 0 : i32
    %c0_i32_0 = arith.constant 0 : i32
    %c0_i32_1 = arith.constant 0 : i32
    return %c0_i32, %c0_i32_0 : i32, i32
  }
  func.func @transform_9(%arg0: i32) -> (i32, i32) {
    %c0_i32 = arith.constant 0 : i32
    %c0_i32_0 = arith.constant 0 : i32
    %c0_i32_1 = arith.constant 0 : i32
    return %c0_i32, %c0_i32_0 : i32, i32
  }
  func.func @transform_10(%arg0: i32) -> (i32, i32) {
    %c0_i32 = arith.constant 0 : i32
    %c0_i32_0 = arith.constant 0 : i32
    %c0_i32_1 = arith.constant 0 : i32
    return %c0_i32, %c0_i32_0 : i32, i32
  }
  func.func @transform_11(%arg0: i32) -> (i32, i32) {
    %c0_i32 = arith.constant 0 : i32
    %c0_i32_0 = arith.constant 0 : i32
    %c0_i32_1 = arith.constant 0 : i32
    return %c0_i32, %c0_i32_0 : i32, i32
  }
  func.func @transform_12(%arg0: i32) -> (i32, i32) {
    %c0_i32 = arith.constant 0 : i32
    %c0_i32_0 = arith.constant 0 : i32
    %c0_i32_1 = arith.constant 0 : i32
    return %c0_i32, %c0_i32_0 : i32, i32
  }
  func.func @transform_13(%arg0: i32) -> (i32, i32) {
    %c0_i32 = arith.constant 0 : i32
    %c0_i32_0 = arith.constant 0 : i32
    %c0_i32_1 = arith.constant 0 : i32
    return %c0_i32, %c0_i32_0 : i32, i32
  }
  func.func @transform_14(%arg0: i32) -> (i32, i32) {
    %c0_i32 = arith.constant 0 : i32
    %c0_i32_0 = arith.constant 0 : i32
    %c0_i32_1 = arith.constant 0 : i32
    return %c0_i32, %c0_i32_0 : i32, i32
  }
  func.func @transform_15(%arg0: i32) -> (i32, i32) {
    %c0_i32 = arith.constant 0 : i32
    %c0_i32_0 = arith.constant 0 : i32
    %c0_i32_1 = arith.constant 0 : i32
    return %c0_i32, %c0_i32_0 : i32, i32
  }
  func.func @transform_16(%arg0: i32) -> (i32, i32) {
    %c0_i32 = arith.constant 0 : i32
    %c0_i32_0 = arith.constant 0 : i32
    %c0_i32_1 = arith.constant 0 : i32
    return %c0_i32, %c0_i32_0 : i32, i32
  }
  func.func @transform_17(%arg0: i32) -> (i32, i32) {
    %c0_i32 = arith.constant 0 : i32
    %c0_i32_0 = arith.constant 0 : i32
    %c0_i32_1 = arith.constant 0 : i32
    return %c0_i32, %c0_i32_0 : i32, i32
  }
  func.func @transform_18(%arg0: i32) -> (i32, i32) {
    %c0_i32 = arith.constant 0 : i32
    %c0_i32_0 = arith.constant 0 : i32
    %c0_i32_1 = arith.constant 0 : i32
    return %c0_i32, %c0_i32_0 : i32, i32
  }
  func.func @transform_19(%arg0: i32) -> (i32, i32) {
    %c0_i32 = arith.constant 0 : i32
    %c0_i32_0 = arith.constant 0 : i32
    %c0_i32_1 = arith.constant 0 : i32
    return %c0_i32, %c0_i32_0 : i32, i32
  }
  func.func @transform_20(%arg0: i32) -> (i32, i32) {
    %c0_i32 = arith.constant 0 : i32
    %c0_i32_0 = arith.constant 0 : i32
    %c0_i32_1 = arith.constant 0 : i32
    return %c0_i32, %c0_i32_0 : i32, i32
  }
  func.func @transform_21(%arg0: i32) -> (i32, i32) {
    %c0_i32 = arith.constant 0 : i32
    %c0_i32_0 = arith.constant 0 : i32
    %c0_i32_1 = arith.constant 0 : i32
    return %c0_i32, %c0_i32_0 : i32, i32
  }
  func.func @transform_22(%arg0: i32) -> (i32, i32) {
    %c0_i32 = arith.constant 0 : i32
    %c0_i32_0 = arith.constant 0 : i32
    %c0_i32_1 = arith.constant 0 : i32
    return %c0_i32, %c0_i32_0 : i32, i32
  }
  func.func @transform_23(%arg0: i32) -> (i32, i32) {
    %c0_i32 = arith.constant 0 : i32
    %c0_i32_0 = arith.constant 0 : i32
    %c0_i32_1 = arith.constant 0 : i32
    return %c0_i32, %c0_i32_0 : i32, i32
  }
  func.func @transform_24(%arg0: i32) -> (i32, i32) {
    %c0_i32 = arith.constant 0 : i32
    %c0_i32_0 = arith.constant 0 : i32
    %c0_i32_1 = arith.constant 0 : i32
    return %c0_i32, %c0_i32_0 : i32, i32
  }
  func.func @transform_25(%arg0: i32) -> (i32, i32) {
    %c0_i32 = arith.constant 0 : i32
    %c0_i32_0 = arith.constant 0 : i32
    %c0_i32_1 = arith.constant 0 : i32
    return %c0_i32, %c0_i32_0 : i32, i32
  }
  func.func @transform_26(%arg0: i32) -> (i32, i32) {
    %c0_i32 = arith.constant 0 : i32
    %c0_i32_0 = arith.constant 0 : i32
    %c0_i32_1 = arith.constant 0 : i32
    return %c0_i32, %c0_i32_0 : i32, i32
  }
  func.func @transform_27(%arg0: i32) -> (i32, i32) {
    %c0_i32 = arith.constant 0 : i32
    %c0_i32_0 = arith.constant 0 : i32
    %c0_i32_1 = arith.constant 0 : i32
    return %c0_i32, %c0_i32_0 : i32, i32
  }
  func.func @transform_28(%arg0: i32) -> (i32, i32) {
    %c0_i32 = arith.constant 0 : i32
    %c0_i32_0 = arith.constant 0 : i32
    %c0_i32_1 = arith.constant 0 : i32
    return %c0_i32, %c0_i32_0 : i32, i32
  }
  func.func @transform_29(%arg0: i32) -> (i32, i32) {
    %c0_i32 = arith.constant 0 : i32
    %c0_i32_0 = arith.constant 0 : i32
    %c0_i32_1 = arith.constant 0 : i32
    return %c0_i32, %c0_i32_0 : i32, i32
  }
  func.func @transform_30(%arg0: i32) -> (i32, i32) {
    %c0_i32 = arith.constant 0 : i32
    %c0_i32_0 = arith.constant 0 : i32
    %c0_i32_1 = arith.constant 0 : i32
    return %c0_i32, %c0_i32_0 : i32, i32
  }
  func.func @transform_31(%arg0: i32) -> (i32, i32) {
    %c0_i32 = arith.constant 0 : i32
    %c0_i32_0 = arith.constant 0 : i32
    %c0_i32_1 = arith.constant 0 : i32
    return %c0_i32, %c0_i32_0 : i32, i32
  }
  func.func @transform_32(%arg0: i32) -> (i32, i32) {
    %c0_i32 = arith.constant 0 : i32
    %c0_i32_0 = arith.constant 0 : i32
    %c0_i32_1 = arith.constant 0 : i32
    return %c0_i32, %c0_i32_0 : i32, i32
  }
  func.func @transform_33(%arg0: i32) -> (i32, i32) {
    %c0_i32 = arith.constant 0 : i32
    %c0_i32_0 = arith.constant 0 : i32
    %c0_i32_1 = arith.constant 0 : i32
    return %c0_i32, %c0_i32_0 : i32, i32
  }
  func.func @transform_34(%arg0: i32) -> (i32, i32) {
    %c0_i32 = arith.constant 0 : i32
    %c0_i32_0 = arith.constant 0 : i32
    %c0_i32_1 = arith.constant 0 : i32
    return %c0_i32, %c0_i32_0 : i32, i32
  }
  func.func @transform_35(%arg0: i32) -> (i32, i32) {
    %c0_i32 = arith.constant 0 : i32
    %c0_i32_0 = arith.constant 0 : i32
    %c0_i32_1 = arith.constant 0 : i32
    return %c0_i32, %c0_i32_0 : i32, i32
  }
  func.func @transform_36(%arg0: i32) -> (i32, i32) {
    %c0_i32 = arith.constant 0 : i32
    %c0_i32_0 = arith.constant 0 : i32
    %c0_i32_1 = arith.constant 0 : i32
    return %c0_i32, %c0_i32_0 : i32, i32
  }
  func.func @transform_37(%arg0: i32) -> (i32, i32) {
    %c0_i32 = arith.constant 0 : i32
    %c0_i32_0 = arith.constant 0 : i32
    %c0_i32_1 = arith.constant 0 : i32
    return %c0_i32, %c0_i32_0 : i32, i32
  }
  func.func @transform_38(%arg0: i32) -> (i32, i32) {
    %c0_i32 = arith.constant 0 : i32
    %c0_i32_0 = arith.constant 0 : i32
    %c0_i32_1 = arith.constant 0 : i32
    return %c0_i32, %c0_i32_0 : i32, i32
  }
  func.func @transform_39(%arg0: i32) -> (i32, i32) {
    %c0_i32 = arith.constant 0 : i32
    %c0_i32_0 = arith.constant 0 : i32
    %c0_i32_1 = arith.constant 0 : i32
    return %c0_i32, %c0_i32_0 : i32, i32
  }
  func.func @transform_40(%arg0: i32) -> (i32, i32) {
    %c0_i32 = arith.constant 0 : i32
    %c0_i32_0 = arith.constant 0 : i32
    %c0_i32_1 = arith.constant 0 : i32
    return %c0_i32, %c0_i32_0 : i32, i32
  }
  func.func @transform_41(%arg0: i32) -> (i32, i32) {
    %c0_i32 = arith.constant 0 : i32
    %c0_i32_0 = arith.constant 0 : i32
    %c0_i32_1 = arith.constant 0 : i32
    return %c0_i32, %c0_i32_0 : i32, i32
  }
  func.func @transform_42(%arg0: i32) -> (i32, i32, i32) {
    %c0_i32 = arith.constant 0 : i32
    %0 = arith.addi %arg0, %c0_i32 : i32
    %c0_i32_0 = arith.constant 0 : i32
    %c0_i32_1 = arith.constant 0 : i32
    %c0_i32_2 = arith.constant 0 : i32
    return %0, %c0_i32_0, %c0_i32_1 : i32, i32, i32
  }
}

</mosaic_0001>

<bundles_post_ra>
// kernel: tile.23
= control target key start
LH: loop header
LB: loop body
LE: loop exit
PB: predicated region body
PF: predicated region fallthrough
CT: control target
= control target key end

     0   :  { %vm68_vm0 = vcmask 1047556   ;;  %vm70_vm1 = vcmask 130048   ;;  %vm89_vm2 = vcmask 261248   ;;  %s195_s0 = inlined_call_operand.vmem [shape: f32[2,8,2,16], index: 0, kind: input, shape index: {}]   ;;  %s196_s1 = inlined_call_operand.vmem [shape: f32[2,8,32], index: 1, kind: output, shape index: {}]  }
   0x1   :  { %v110_v0 = vld [vmem:[%s195_s0 + $0xe] sm:$0x3]  ;;  %v111_v1 = vld [vmem:[%s195_s0 + $0xc] sm:$0x3]  ;;  %v112_v2 = vld [vmem:[%s195_s0 + $0xa] sm:$0x3] }
   0x2   :  { %39 = vst [vmem:[#allocation0 + $0x38] sm:$0x3] %v110_v0  ;;  %v113_v3 = vld [vmem:[%s195_s0 + $0x8] sm:$0x3]  ;;  %v114_v4 = vld [vmem:[%s195_s0 + $0x6] sm:$0x3] }
   0x3   :  { %43 = vst [vmem:[#allocation0 + $0x30] sm:$0x3] %v111_v1  ;;  %v115_v5 = vld [vmem:[%s195_s0 + $0x4] sm:$0x3]  ;;  %v116_v6 = vld [vmem:[%s195_s0 + $0x2] sm:$0x3] }
   0x4   :  { %47 = vst [vmem:[#allocation0 + $0x28] sm:$0x3] %v112_v2  ;;  %v64_v7 = vld [vmem:[%s195_s0] sm:$0x3]  ;;  %v102_v8 = vld [vmem:[%s195_s0 + $0x1e] sm:$0x3] }
   0x5   :  { %51 = vst [vmem:[#allocation0 + $0x20] sm:$0x3] %v113_v3  ;;  %v103_v9 = vld [vmem:[%s195_s0 + $0x1c] sm:$0x3]  ;;  %v104_v10 = vld [vmem:[%s195_s0 + $0x1a] sm:$0x3] }
   0x6   :  { %55 = vst [vmem:[#allocation0 + $0x18] sm:$0x3] %v114_v4  ;;  %v105_v11 = vld [vmem:[%s195_s0 + $0x18] sm:$0x3]  ;;  %v106_v12 = vld [vmem:[%s195_s0 + $0x16] sm:$0x3] }
   0x7   :  { %59 = vst [vmem:[#allocation0 + $0x10] sm:$0x3] %v115_v5  ;;  %v107_v13 = vld [vmem:[%s195_s0 + $0x14] sm:$0x3]  ;;  %v108_v14 = vld [vmem:[%s195_s0 + $0x12] sm:$0x3] }
   0x8   :  { %63 = vst [vmem:[#allocation0 + $0x8] sm:$0x3] %v116_v6  ;;  %v109_v15 = vld [vmem:[%s195_s0 + $0x10] sm:$0x3]  ;;  %s120_s0 = smov 16  }
   0x9   :  { %65 = vst [vmem:[#allocation0] sm:$0x3] %v64_v7 }
   0xa   :  { %7 = vst [vmem:[#allocation0 + $0x78] sm:$0x3] %v102_v8 }
   0xb   :  { %11 = vst [vmem:[#allocation0 + $0x70] sm:$0x3] %v103_v9 }
   0xc   :  { %15 = vst [vmem:[#allocation0 + $0x68] sm:$0x3] %v104_v10  ;;  %v84_v16 = vld [vmem:[#allocation0 + $0x1] ss:$8 sm:$0xf0]  }
   0xd   :  { %19 = vst [vmem:[#allocation0 + $0x60] sm:$0x3] %v105_v11  ;;  %v67_v23 = vld [vmem:[#allocation0] ss:$8 sm:$0xf0]  }
   0xe   :  { %23 = vst [vmem:[#allocation0 + $0x58] sm:$0x3] %v106_v12 }
   0xf   :  { %27 = vst [vmem:[#allocation0 + $0x50] sm:$0x3] %v107_v13 }
  0x10   :  { %v82_v17 = vld [vmem:[#allocation0 + $0x1] ss:$8 sm:$0xf]   ;;  %31 = vst [vmem:[#allocation0 + $0x48] sm:$0x3] %v108_v14 }
  0x11   :  { %v86_v18 = vsel %vm68_vm0, %v84_v16, %v82_v17  ;;  %35 = vst [vmem:[#allocation0 + $0x40] sm:$0x3] %v109_v15  ;;  %v66_v22 = vld [vmem:[#allocation0] ss:$8 sm:$0xf]  }
  0x12   :  { %87 = vrot.lane.b32.xlu0 %v86_v18, %s120_s0  ;;  %v69_v24 = vsel %vm68_vm0, %v67_v23, %v66_v22 }
  0x13   :  { %71 = vst.msk [vmem:[%s196_s1] sm:$0xff] %vm70_vm1, %v69_v24  }
  0x14   :  { %v94_v19 = vld [vmem:[#allocation0 + $0x41] ss:$8 sm:$0xf0]   ;;  %v75_v26 = vld [vmem:[#allocation0 + $0x40] ss:$8 sm:$0xf0]  }
  0x18   :  { %v92_v20 = vld [vmem:[#allocation0 + $0x41] ss:$8 sm:$0xf]   ;;  %v73_v25 = vld [vmem:[#allocation0 + $0x40] ss:$8 sm:$0xf]  }
  0x19   :  { %v96_v21 = vsel %vm68_vm0, %v94_v19, %v92_v20  ;;  %v77_v27 = vsel %vm68_vm0, %v75_v26, %v73_v25 }
  0x1a   :  { %97 = vrot.lane.b32.xlu0 %v96_v21, %s120_s0  ;;  %117 = vst.msk [vmem:[%s196_s1 + $0x8] sm:$0xff] %vm70_vm1, %v77_v27  }
  0x84   :  { %v88_v28 = vpop.permute.xlu0 %87  }
  0x85   :  { %90 = vst.msk [vmem:[%s196_s1] sm:$0xff] %vm89_vm2, %v88_v28  }
  0x8c   :  { %v98_v29 = vpop.permute.xlu0 %97  }
  0x8d   :  { %118 = vst.msk [vmem:[%s196_s1 + $0x8] sm:$0xff] %vm89_vm2, %v98_v29  }

// kernel: seg_transformer.3
= control target key start
LH: loop header
LB: loop body
LE: loop exit
PB: predicated region body
PF: predicated region fallthrough
CT: control target
= control target key end

     0   :  { %s1958_s0 = inlined_call_operand.vmem [shape: bf16[4,8,32], index: 0, kind: input, shape index: {}, may-alias: {0,1}]   ;;  %s1959_s1 = inlined_call_operand.vmem [shape: bf16[4,8,32], index: 1, kind: input, shape index: {}, may-alias: {0,1}]   ;;  %s1960_s2 = inlined_call_operand.vmem [shape: bf16[32,32], index: 2, kind: input, shape index: {}]   ;;  %s1961_s3 = inlined_call_operand.vmem [shape: f32[1,32], index: 3, kind: input, shape index: {}]   ;;  %s1962_s4 = inlined_call_operand.vmem [shape: bf16[32,32], index: 4, kind: input, shape index: {}]   ;;  %s1963_s5 = inlined_call_operand.vmem [shape: f32[1,32], index: 5, kind: input, shape index: {}]   ;;  %s1964_s6 = inlined_call_operand.vmem [shape: bf16[32,32], index: 6, kind: input, shape index: {}]   ;;  %s1965_s7 = inlined_call_operand.vmem [shape: f32[1,32], index: 7, kind: input, shape index: {}]   ;;  %s1966_s8 = inlined_call_operand.vmem [shape: bf16[32,64], index: 8, kind: input, shape index: {}]   ;;  %s1967_s9 = inlined_call_operand.vmem [shape: bf16[32,64], index: 9, kind: input, shape index: {}]   ;;  %s1968_s10 = inlined_call_operand.vmem [shape: f32[1,64], index: 10, kind: input, shape index: {}]   ;;  %s1969_s11 = inlined_call_operand.vmem [shape: f32[1,64], index: 11, kind: input, shape index: {}]   ;;  %s1970_s12 = inlined_call_operand.vmem [shape: f32[1,64], index: 12, kind: input, shape index: {}]   ;;  %s1971_s13 = inlined_call_operand.vmem [shape: bf16[64,32], index: 13, kind: input, shape index: {}]   ;;  %s1972_s14 = inlined_call_operand.vmem [shape: f32[1,32], index: 14, kind: input, shape index: {}]   ;;  %s1973_s15 = inlined_call_operand.hbm [shape: f32[2,8,32], index: 15, kind: output, shape index: {0}]   ;;  %s1974_s16 = inlined_call_operand.hbm [shape: f32[2,8,32], index: 16, kind: output, shape index: {1}]  }
   0x1   :  { %1983 = sst [smem:[#allocation14_spill]] %s1958_s0 }
   0x2   :  { %1984 = sst [smem:[#allocation15_spill]] %s1959_s1 }
   0x3   :  { %1985 = sst [smem:[#allocation16_spill]] %s1974_s16 }
   0x4   :  { %22 = vsyncpa [#allocation3], 0 }
   0x5   :  { %24 = vsyncpa [#allocation3 + $0x1], 0 }
   0x6   :  { %25 = vsyncpa [#allocation5], 0 }
   0x7   :  { %27 = vsyncpa [#allocation5 + $0x1], 0  ;;  %s1720_s21 = smov 0   ;;  %s1722_s22 = smov 0  }
   0x8   :  { %s1724_s23 = smov 0   ;;  %s1726_s24 = smov 0  }
   0x9 LB: > { %1986 = sst [smem:[#allocation8_spill]] %s1619_s21  ;;  %s1741_s25 = sadd.s32 4294967295, %s1631_s24   ;;  %s1631_s24 = sphi %s1726_s24, %s2002_s24   ;;  %s1627_s23 = sphi %s1724_s23, %s2004_s23   ;;  %s1623_s22 = sphi %s1722_s22, %s2006_s22   ;;  %s1619_s21 = sphi %s1720_s21, %s2005_s21  }
   0xa   : > { %1987 = sst [smem:[#allocation9_spill]] %s1627_s23  ;;  %s1352_s26 = sadd.s32 4294967294, %s1631_s24  }
   0xb   : > { %1988 = sst [smem:[#allocation10_spill]] %s1631_s24  ;;  %s1745_s27 = sadd.s32 1, %s1631_s24  }
   0xc   : > { %1989 = sst [smem:[#allocation11_spill]] %s1745_s27  ;;  %s367_s28 = sadd.s32 1, %s1627_s23 }
   0xd   : > { %s364_s29 = ssub.s32 %s1631_s24, %s1745_s27  ;;  %p377_p0 = scmp.ne.s32.totalorder %s1627_s23, %s1623_s22 }
   0xe   : > { %p365_p1 = scmp.eq.s32.totalorder %s364_s29, 0  ;;  %p378_p2 = scmp.eq.s32.totalorder %s1741_s25, 1 }
   0xf   : > { %p383_p3 = scmp.ne.s32.totalorder %s1623_s22, %s1619_s21  ;;  %p384_p4 = scmp.eq.s32.totalorder %s1352_s26, 1 }
  0x10   : > { %s1756_s30 = scalar_select %p365_p1, %s1627_s23, %s367_s28  }
  0x11   : > { %p1758_p5 = por %p378_p2, %p377_p0  ;;  %p1762_p6 = por %p384_p4, %p383_p3 }
  0x12   : > { %1990 = sst [smem:[#allocation12_spill]] %s1756_s30  ;;  %p1355_p7 = scmp.ge.s32.totalorder %s1631_s24, 1 }
  0x13   : > { %s1992_s17 = scalar_select %p1762_p6, 1, 0 }
  0x14   : > { %p483_p8 = scmp.lt.s32.totalorder %s1631_s24, 3 }
  0x15   : > { %1993 = sst [smem:[#allocation13_spill]] %s1992_s17 }
  0x16   : > { %p484_p9 = pnand %p1355_p7, %p483_p8 }
  0x17   : > { %p542_p10 = scmp.lt.s32.totalorder (!%p484_p9), %s1741_s25, 3  ;;  %s546_s20 = sadd.s32 (!%p484_p9), 2, %s1741_s25 }
  0x18   : > { %487 = sbr.rel (%p484_p9) target bundleno = 1526 (0x5f6), region = 80  ;;  %p547_p11 = scmp.lt.s32.totalorder (!%p484_p9), %s546_s20, 3 }
  0x19   : > { %s1994_s17 = sld [smem:[#allocation14_spill]] (!%p484_p9)  ;;  %s1633_s21 = smov (!%p484_p9), 112  }
  0x1a   : > { %s1995_s1 = sld [smem:[#allocation15_spill]] (!%p484_p9) }
  0x1d   : > { %v1445_v0 = vld [vmem:[%s1960_s2 + $0x8] sm:$0xff]  ;;  %v1444_v1 = vld [vmem:[%s1960_s2] sm:$0xff]  ;;  %s543_s29 = scalar_select %p542_p10, %s1741_s25, 3  ;;  %vm577_vm0 = vcmask 261120   ;;  %vm662_vm1 = vcmask 130048   ;;  %vm697_vm2 = vcmask 64512  }
  0x1e   : > { %587 = vmatpush.bf16.msra.mxu0 %v1445_v0  ;;  %603 = vmatpush.bf16.msra.mxu1 %v1445_v0  ;;  %s2008_s20 = smov (!%p547_p11, %s546_s20), 3  ;;  %v1504_v4 = vld [vmem:[%s1961_s3] ss:$0 sm:$0xff]  ;;  %v1447_v15 = vld [vmem:[%s1962_s4 + $0x8] sm:$0xff]  ;;  %vm714_vm3 = vcmask 1043456   ;;  %vm1035_vm4 = vcmask 523264  }
  0x1f   : > { %s1358_s30 = sshll.u32 %s543_s29, 2  ;;  %s1359_s19 = sshll.u32 %s2008_s20, 2  ;;  %636 = vmatpush.bf16.msra.mxu2 %v1447_v15  ;;  %649 = vmatpush.bf16.msra.mxu3 %v1447_v15  ;;  %v1446_v28 = vld [vmem:[%s1962_s4] sm:$0xff] }
  0x20   : > { %s545_s18 = scalar_lea.vmem %s1994_s17, %s1358_s30  ;;  %s550_s16 = scalar_lea.vmem %s1995_s1, %s1359_s19  ;;  %v1505_v47 = vld [vmem:[%s1963_s5] ss:$0 sm:$0xff] }
  0x21   : > { %v1780_v2 = vld [vmem:[%s545_s18] sm:$0xf]  ;;  %s1894_s18 = sand.u32 1, %s1623_s22   ;;  %s1440_s19 = sshll.u32 %s1741_s25, 3 }
  0x22   : > { %588 = vmatpush.bf16.msra.mxu0 %v1444_v1  ;;  %604 = vmatpush.bf16.msra.mxu1 %v1444_v1  ;;  %v1785_v3 = vld [vmem:[%s550_s16] sm:$0xf]  ;;  %s1982_s23 = sshll.u32 %s1894_s18, 3  ;;  %s1229_s16 = scalar_lea.hbm %s1973_s15, %s1440_s19 }
  0x23   : > { %637 = vmatpush.bf16.msra.mxu2 %v1446_v28  ;;  %650 = vmatpush.bf16.msra.mxu3 %v1446_v28  ;;  %s534_s17 = scalar_lea.vmem [#allocation2], %s1982_s23  ;;  %s1233_s26 = sshll.u32 %s1229_s16, 4  ;;  %s1234_s26 = int_to_ptr.hbm [resolvable:$true] %s1233_s26 }
  0x24   : > { %s1231_s20 = sshll.u32 %s534_s17, 4  ;;  %s1214_s28 = scalar_lea.sflag [#allocation3], %s1894_s18  ;;  %s1232_s20 = int_to_ptr.vmem [resolvable:$true] %s1231_s20 }
  0x25   : > { %1368 = vmatmul.msk.bf16.vlgmr.msra.gmra.mxu0 %vm577_vm0, %v1780_v2  ;;  %1369 = vmatmul.msk.bf16.vlgmr.msra.gmra.mxu1 %vm577_vm0, %v1785_v3  ;;  %s1551_s29 = sshra.s32 %s1234_s26, 4  ;;  %s1557_s30 = scalar_lea.hbm %s1973_s15, 16  ;;  %s1552_s29 = int_to_ptr.hbm [resolvable:$true] %s1551_s29 }
  0x26   : > { %1378 = vmatmul.msk.bf16.vlgmr.msra.gmra.mxu2 %vm577_vm0, %v1780_v2  ;;  %1379 = vmatmul.msk.bf16.vlgmr.msra.gmra.mxu3 %vm577_vm0, %v1785_v3  ;;  %s1553_s27 = scalar_lea.hbm %s1552_s29, 8  ;;  %p1558_p1 = scmp.lt.s32.totalorder %s1552_s29, %s1973_s15 }
  0x27   : > { %p1554_p12 = scmp.ne.s32.totalorder %s1552_s29, %s1553_s27  ;;  %p1559_p2 = scmp.lt.s32.totalorder %s1557_s30, %s1553_s27 }
  0x29   : > { %p1555_p13 = pnand %p1554_p12, %p1758_p5  ;;  %p1560_p3 = por %p1559_p2, %p1558_p1 }
  0x2b   : > { %p1556_p0 = pneg %p1555_p13 }
  0x2d   : > { %p1561_p4 = pnand %p1560_p3, %p1556_p0 }
  0xa2   : > { %v590_v5 = vpop.f32.mrf.mxu0  ;;  %v606_v6 = vpop.f32.mrf.mxu1 }
  0xa3   : > { %v591_v7 = vadd.f32 %v1504_v4, %v590_v5  ;;  %v607_v8 = vadd.f32 %v1504_v4, %v606_v6 }
  0xa5   : > { %v660_v9 = vpack.c.bf16 %v591_v7, %v591_v7  ;;  %v661_v10 = vpack.c.bf16 %v607_v8, %v607_v8 }
  0xa7   : > { %769 = vrot.lane.b32.xlu0 %v661_v10, %s1633_s21  ;;  %v667_v11 = vsel %vm662_vm1, %v661_v10, 0  ;;  %v664_v12 = vsel %vm662_vm1, %v660_v9, 0 }
  0xa8   : > { %676 = vmatpush.bf16.xpose.msrb.mxu0 %v667_v11  ;;  %690 = vmatpush.bf16.xpose.msrb.mxu1 %v664_v12 }
  0xa9   : > { %v639_v48 = vpop.f32.mrf.mxu2  ;;  %v652_v49 = vpop.f32.mrf.mxu3 }
  0xaa   : > { %v592_v13 = vpop.f32.mrf.mxu0  ;;  %v608_v14 = vpop.f32.mrf.mxu1  ;;  %v640_v50 = vadd.f32 %v1505_v47, %v639_v48  ;;  %v653_v51 = vadd.f32 %v1505_v47, %v652_v49 }
  0xac   : > { %v744_v52 = vpack.c.bf16 %v640_v50, %v640_v50  ;;  %v710_v53 = vpack.c.bf16 %v653_v51, %v653_v51 }
  0xae   : > { %v716_v54 = vsel %vm714_vm3, %v710_v53, 0  ;;  %v749_v55 = vsel %vm714_vm3, %v744_v52, 0 }
  0xaf   : > { %766 = vrot.lane.b32.xlu0 %v660_v9, %s1633_s21  ;;  %1380 = vmatmul.msk.bf16.vlgmr.msrb.gmra.mxu0 %vm662_vm1, %v660_v9 }
  0xb0   : > { %1381 = vmatmul.msk.bf16.vlgmr.msrb.gmra.mxu1 %vm662_vm1, %v661_v10  ;;  %725 = vmatpush.bf16.msrb.mxu2 %v716_v54 }
  0xb1   : > { %758 = vmatpush.bf16.msrb.mxu3 %v749_v55  ;;  %v641_v56 = vpop.f32.mrf.mxu2  ;;  %v654_v57 = vpop.f32.mrf.mxu3 }
 0x119   : > { %v770_v16 = vpop.permute.xlu0 %769 }
 0x11a   : > { %v775_v17 = vsel %vm662_vm1, %v770_v16, 0 }
 0x11b   : > { %784 = vmatpush.bf16.xpose.msra.mxu0 %v775_v17 }
 0x121   : > { %v767_v18 = vpop.permute.xlu0 %766 }
 0x122   : > { %v772_v19 = vsel %vm662_vm1, %v767_v18, 0  ;;  %1384 = vmatmul.msk.bf16.vlgmr.msra.gmra.mxu0 %vm662_vm1, %v767_v18 }
 0x123   : > { %798 = vmatpush.bf16.xpose.msra.mxu1 %v772_v19 }
 0x12a   : > { %1385 = vmatmul.msk.bf16.vlgmr.msra.gmra.mxu1 %vm662_vm1, %v770_v16  ;;  %v1448_v16 = vld [vmem:[%s1964_s6] sm:$0xff] }
 0x12b   : > { %878 = vmatpush.bf16.msrb.mxu0 %v1448_v16 }
 0x12c   : > { %v678_v20 = vpop.f32.mrf.mxu0 }
 0x12d   : > { %v682_v21 = vmul.f32 0.25, %v678_v20  ;;  %v692_v22 = vpop.f32.mrf.mxu1 }
 0x12e   : > { %v696_v23 = vmul.f32 0.25, %v692_v22 }
 0x12f   : > { %v698_v24 = vsel %vm697_vm2, %v682_v21, -inf }
 0x130   : > { %699 = vmax.xlane.f32.xlu1 %v698_v24  ;;  %v732_v25 = vsel %vm697_vm2, %v696_v23, -inf }
 0x131   : > { %733 = vmax.xlane.f32.xlu2 %v732_v25 }
 0x134   : > { %v680_v26 = vpop.f32.mrf.mxu0 }
 0x135   : > { %v694_v27 = vpop.f32.mrf.mxu1 }
 0x19f   : > { %v786_v29 = vpop.f32.mrf.mxu0 }
 0x1a0   : > { %v790_v30 = vmul.f32 0.25, %v786_v29 }
 0x1a2   : > { %v805_v31 = vsel %vm697_vm2, %v790_v30, -inf }
 0x1a3   : > { %v700_v32 = vpop.xlane.xlu1 %699  ;;  %806 = vmax.xlane.f32.xlu1 %v805_v31 }
 0x1a4   : > { %v701_v33 = vsub.f32 %v682_v21, %v700_v32  ;;  %v734_v34 = vpop.xlane.xlu2 %733  ;;  %v1449_v32 = vld [vmem:[%s1964_s6 + $0x8] sm:$0xff] }
 0x1a5   : > { %v735_v35 = vsub.f32 %v696_v23, %v734_v34  ;;  %856 = vmatpush.bf16.msra.mxu3 %v1449_v32 }
 0x1a6   : > { %v702_v36 = vmul.f32 1.442695, %v701_v33 }
 0x1a7   : > { %v736_v37 = vmul.f32 1.442695, %v735_v35  ;;  %v788_v38 = vpop.f32.mrf.mxu0  ;;  %v800_v39 = vpop.f32.mrf.mxu1 }
 0x1a8   : > { %1511 = vpow2.f32 %v702_v36  ;;  %v804_v40 = vmul.f32 0.25, %v800_v39 }
 0x1a9   : > { %1513 = vpow2.f32 %v736_v37 }
 0x1aa   : > { %v884_v41 = vsel %vm697_vm2, %v804_v40, -inf }
 0x1ab   : > { %885 = vmax.xlane.f32.xlu2 %v884_v41 }
 0x1ae   : > { %v1512_v42 = vpop.eup %1511 }
 0x1af   : > { %v1514_v43 = vpop.eup %1513  ;;  %v802_v44 = vpop.f32.mrf.mxu1  ;;  %v704_v45 = vsel %vm697_vm2, %v1512_v42, 0.0 }
 0x1b0   : > { %705 = vadd.xlane.f32.xlu0 %v704_v45  ;;  %v738_v46 = vsel %vm697_vm2, %v1514_v43, 0.0  ;;  %v1452_v44 = vld [vmem:[%s1967_s9] sm:$0xff] }
 0x1b1   : > { %739 = vadd.xlane.f32.xlu1 %v738_v46  ;;  %v1450_v45 = vld [vmem:[%s1966_s8] sm:$0xff] }
 0x1b2   : > { %v1506_v46 = vld [vmem:[%s1965_s7] ss:$0 sm:$0xff] }
 0x1c3   : > { %818 = vrot.lane.b32.xlu2 %v710_v53, %s1633_s21 }
 0x216   : > { %v807_v58 = vpop.xlane.xlu1 %806 }
 0x217   : > { %v808_v59 = vsub.f32 %v790_v30, %v807_v58 }
 0x219   : > { %v809_v60 = vmul.f32 1.442695, %v808_v59 }
 0x21b   : > { %1515 = vpow2.f32 %v809_v60 }
 0x21e   : > { %v886_v61 = vpop.xlane.xlu2 %885 }
 0x21f   : > { %v887_v62 = vsub.f32 %v804_v40, %v886_v61  ;;  %v1507_v61 = vld [vmem:[%s1968_s10] ss:$0 sm:$0xff] }
 0x221   : > { %v1516_v63 = vpop.eup %1515  ;;  %v888_v0 = vmul.f32 1.442695, %v887_v62 }
 0x222   : > { %v811_v1 = vsel %vm697_vm2, %v1516_v63, 0.0 }
 0x223   : > { %1517 = vpow2.f32 %v888_v0  ;;  %v706_v4 = vpop.xlane.xlu0 %705  ;;  %812 = vadd.xlane.f32.xlu1 %v811_v1 }
 0x224   : > { %1519 = vrcp.f32 %v706_v4  ;;  %v740_v5 = vpop.xlane.xlu1 %739 }
 0x225   : > { %1521 = vrcp.f32 %v740_v5 }
 0x226   : > { %v819_v14 = vpop.permute.xlu2 %818 }
 0x227   : > { %v824_v15 = vsel %vm714_vm3, %v819_v14, 0 }
 0x228   : > { %833 = vmatpush.bf16.msra.mxu2 %v824_v15 }
 0x229   : > { %v1518_v6 = vpop.eup %1517 }
 0x22a   : > { %v1520_v7 = vpop.eup %1519  ;;  %v890_v8 = vsel %vm697_vm2, %v1518_v6, 0.0 }
 0x22b   : > { %v1522_v9 = vpop.eup %1521  ;;  %v708_v10 = vmul.f32 %v1520_v7, %v1512_v42  ;;  %891 = vadd.xlane.f32.xlu1 %v890_v8  ;;  %v1453_v42 = vld [vmem:[%s1967_s9 + $0x8] sm:$0xff] }
 0x22c   : > { %v742_v11 = vmul.f32 %v1522_v9, %v1514_v43  ;;  %v1451_v43 = vld [vmem:[%s1966_s8 + $0x8] sm:$0xff]  ;;  %999 = vmatpush.bf16.msra.mxu0 %v1453_v42 }
 0x22d   : > { %v709_v12 = vpack.c.bf16 %v708_v10, %v708_v10 }
 0x22e   : > { %v743_v13 = vpack.c.bf16 %v742_v11, %v742_v11 }
 0x22f   : > { %1382 = vmatmul.msk.bf16.vlgmr.msrb.gmra.mxu2 %vm697_vm2, %v709_v12  ;;  %v1634_v12 = vmov 64.0  }
 0x230   : > { %1383 = vmatmul.msk.bf16.vlgmr.msrb.gmra.mxu3 %vm697_vm2, %v743_v13  ;;  %929 = vmatpush.bf16.msrb.mxu2 %v1449_v32  ;;  %v1457_v32 = vld [vmem:[%s1971_s13 + $0x18] sm:$0xff] }
 0x231   : > { %945 = vmatpush.bf16.msrb.mxu3 %v1448_v16  ;;  %1000 = vmatpush.bf16.msra.mxu0 %v1452_v44 }
 0x244   : > { %897 = vrot.lane.b32.xlu1 %v744_v52, %s1633_s21 }
 0x296   : > { %v813_v17 = vpop.xlane.xlu1 %812 }
 0x297   : > { %1523 = vrcp.f32 %v813_v17 }
 0x29d   : > { %v1524_v18 = vpop.eup %1523 }
 0x29e   : > { %v815_v19 = vmul.f32 %v1524_v18, %v1516_v63  ;;  %v892_v21 = vpop.xlane.xlu1 %891 }
 0x29f   : > { %1525 = vrcp.f32 %v892_v21 }
 0x2a0   : > { %v816_v20 = vpack.c.bf16 %v815_v19, %v815_v19  ;;  %1527 = vrcp.f32 %v1634_v12 }
 0x2a2   : > { %1386 = vmatmul.msk.bf16.vlgmr.msra.gmra.mxu2 %vm697_vm2, %v816_v20 }
 0x2a3   : > { %1114 = vmatpush.bf16.msra.mxu2 %v1457_v32 }
 0x2a5   : > { %v1526_v22 = vpop.eup %1525 }
 0x2a6   : > { %v894_v26 = vmul.f32 %v1526_v22, %v1518_v6  ;;  %v1528_v13 = vpop.eup %1527 }
 0x2a7   : > { %v1040_v14 = vmul.f32 64.0, %v1528_v13  ;;  %vm1044_vm5 = vweird.f32 %v1528_v13 }
 0x2a8   : > { %v895_v29 = vpack.c.bf16 %v894_v26, %v894_v26 }
 0x2a9   : > { %v1041_v15 = vsub.f32 1.0, %v1040_v14 }
 0x2ab   : > { %v1042_v16 = vmul.f32 %v1528_v13, %v1041_v15 }
 0x2ad   : > { %v1043_v17 = vadd.f32 %v1528_v13, %v1042_v16 }
 0x2af   : > { %v1045_v18 = vsel %vm1044_vm5, %v1528_v13, %v1043_v17 }
 0x2b2   : > { %v727_v23 = vpop.f32.mrf.mxu2 }
 0x2b3   : > { %v731_v24 = vpack.c.bf16 %v727_v23, %v727_v23  ;;  %v760_v25 = vpop.f32.mrf.mxu3 }
 0x2b4   : > { %v764_v37 = vpack.c.bf16 %v760_v25, %v760_v25 }
 0x2b5   : > { %1396 = vmatmul.msk.bf16.vlgmr.msrb.gmra.mxu0 %vm662_vm1, %v731_v24 }
 0x2b6   : > { %v898_v27 = vpop.permute.xlu1 %897  ;;  %1151 = vmatpush.bf16.msrb.mxu0 %v1451_v43 }
 0x2b7   : > { %v903_v28 = vsel %vm714_vm3, %v898_v27, 0 }
 0x2b8   : > { %912 = vmatpush.bf16.msrb.mxu1 %v903_v28 }
 0x2ba   : > { %v729_v30 = vpop.f32.mrf.mxu2  ;;  %1152 = vmatpush.bf16.msrb.mxu0 %v1450_v45 }
 0x2bb   : > { %v762_v31 = vpop.f32.mrf.mxu3  ;;  %1397 = vmatmul.msk.bf16.vlgmr.msrb.gmra.mxu1 %vm697_vm2, %v895_v29 }
 0x2bc   : > { %1024 = vmatpush.bf16.msra.mxu1 %v1451_v43 }
 0x2c0   : > { %1025 = vmatpush.bf16.msra.mxu1 %v1450_v45 }
 0x2c4   : > { %1200 = vmatpush.bf16.msrb.mxu1 %v1457_v32 }
 0x2cb   : > { %1417 = vmatmul.msk.bf16.vlgmr.msra.gmra.mxu1 %vm577_vm0, %v1780_v2 }
 0x325   : > { %v835_v33 = vpop.f32.mrf.mxu2 }
 0x326   : > { %v839_v34 = vpack.c.bf16 %v835_v33, %v835_v33  ;;  %v1456_v33 = vld [vmem:[%s1971_s13 + $0x10] sm:$0xff] }
 0x327   : > { %1115 = vmatpush.bf16.msra.mxu2 %v1456_v33  ;;  %1201 = vmatpush.bf16.msrb.mxu1 %v1456_v33 }
 0x328   : > { %1391 = vmatmul.msk.bf16.vlgmr.msra.gmra.mxu3 %vm662_vm1, %v839_v34 }
 0x329   : > { %1138 = vmatpush.bf16.msra.mxu3 %v1453_v42  ;;  %v1508_v42 = vld [vmem:[%s1969_s11] ss:$0 sm:$0xff] }
 0x32d   : > { %v837_v35 = vpop.f32.mrf.mxu2  ;;  %1139 = vmatpush.bf16.msra.mxu3 %v1452_v44  ;;  %v1509_v44 = vld [vmem:[%s1970_s12] ss:$0 sm:$0xff] }
 0x332   : > { %v880_v36 = vpop.f32.mrf.mxu0 }
 0x338   : > { %v914_v38 = vpop.f32.mrf.mxu1  ;;  %1399 = vmatmul.msk.bf16.vlgmr.msrb.gmra.mxu3 %vm662_vm1, %v764_v37 }
 0x339   : > { %v918_v39 = vpack.c.bf16 %v914_v38, %v914_v38 }
 0x33a   : > { %v882_v40 = vpop.f32.mrf.mxu0 }
 0x33b   : > { %1398 = vmatmul.msk.bf16.vlgmr.msrb.gmra.mxu2 %vm662_vm1, %v918_v39  ;;  %v1454_v39 = vld [vmem:[%s1971_s13] sm:$0xff] }
 0x340   : > { %v916_v41 = vpop.f32.mrf.mxu1 }
 0x348   : > { %v1027_v59 = vpop.f32.mrf.mxu1 }
 0x350   : > { %v1029_v60 = vpop.f32.mrf.mxu1 }
 0x3ab   : > { %v858_v47 = vpop.f32.mrf.mxu3 }
 0x3ac   : > { %v881_v48 = vadd.f32 %v880_v36, %v858_v47  ;;  %v1455_v36 = vld [vmem:[%s1971_s13 + $0x8] sm:$0xff] }
 0x3ad   : > { %1116 = vmatpush.bf16.msra.mxu2 %v1455_v36  ;;  %1202 = vmatpush.bf16.msrb.mxu1 %v1455_v36 }
 0x3ae   : > { %v955_v49 = vadd.f32 %v1506_v46, %v881_v48 }
 0x3b0   : > { %v977_v50 = vpack.c.bf16 %v955_v49, %v955_v49 }
 0x3b1   : > { %1117 = vmatpush.bf16.msra.mxu2 %v1454_v39  ;;  %1203 = vmatpush.bf16.msrb.mxu1 %v1454_v39 }
 0x3b2   : > { %1408 = vmatmul.msk.bf16.vlgmr.msra.gmra.mxu0 %vm577_vm0, %v977_v50 }
 0x3b3   : > { %v860_v51 = vpop.f32.mrf.mxu3 }
 0x3bb   : > { %v947_v52 = vpop.f32.mrf.mxu3 }
 0x3be   : > { %v931_v53 = vpop.f32.mrf.mxu2 }
 0x3bf   : > { %v948_v54 = vadd.f32 %v947_v52, %v931_v53 }
 0x3c1   : > { %v956_v55 = vadd.f32 %v1506_v46, %v948_v54 }
 0x3c2   : > { %1436 = vmatmul.msk.bf16.vlgmr.msrb.gmra.mxu0 %vm577_vm0, %v1785_v3 }
 0x3c3   : > { %v1128_v56 = vpack.c.bf16 %v956_v55, %v956_v55  ;;  %v949_v57 = vpop.f32.mrf.mxu3 }
 0x3c5   : > { %1435 = vmatmul.msk.bf16.vlgmr.msra.gmra.mxu3 %vm577_vm0, %v1128_v56 }
 0x3c6   : > { %v933_v58 = vpop.f32.mrf.mxu2 }
 0x42f   : > { %v1002_v62 = vpop.f32.mrf.mxu0 }
 0x430   : > { %v1028_v63 = vadd.f32 %v1027_v59, %v1002_v62 }
 0x432   : > { %v1034_v0 = vadd.f32 %v1507_v61, %v1028_v63 }
 0x434   : > { %v1036_v1 = vsel %vm1035_vm4, %v1034_v0, 0.0 }
 0x435   : > { %1037 = vadd.xlane.f32.xlu2 %v1036_v1 }
 0x437   : > { %v1004_v4 = vpop.f32.mrf.mxu0 }
 0x43f   : > { %v1154_v5 = vpop.f32.mrf.mxu0 }
 0x447   : > { %v1156_v6 = vpop.f32.mrf.mxu0 }
 0x448   : > { %v1141_v7 = vpop.f32.mrf.mxu3 }
 0x449   : > { %v1155_v8 = vadd.f32 %v1154_v5, %v1141_v7 }
 0x44b   : > { %v1158_v9 = vadd.f32 %v1507_v61, %v1155_v8 }
 0x44d   : > { %v1159_v10 = vsel %vm1035_vm4, %v1158_v9, 0.0 }
 0x44e   : > { %1160 = vadd.xlane.f32.xlu0 %v1159_v10 }
 0x450   : > { %v1143_v11 = vpop.f32.mrf.mxu3 }
 0x4a8   : > { %v1038_v19 = vpop.xlane.xlu2 %1037 }
 0x4a9   : > { %v1046_v20 = vmul.f32 %v1045_v18, %v1038_v19  ;;  %v554_v19 = vunpack.c.l.bf16 %v1780_v2 }
 0x4ab   : > { %v1047_v21 = vsub.f32 %v1034_v0, %v1046_v20  ;;  %v1510_v20 = vld [vmem:[%s1972_s14] ss:$0 sm:$0xff] }
 0x4ad   : > { %v1048_v22 = vmul.f32 %v1047_v21, %v1047_v21 }
 0x4af   : > { %v1049_v23 = vsel %vm1035_vm4, %v1048_v22, 0.0 }
 0x4b0   : > { %1050 = vadd.xlane.f32.xlu1 %v1049_v23 }
 0x4c1   : > { %v1161_v24 = vpop.xlane.xlu0 %1160 }
 0x4c2   : > { %v1162_v25 = vmul.f32 %v1161_v24, %v1045_v18 }
 0x4c4   : > { %v1163_v26 = vsub.f32 %v1158_v9, %v1162_v25 }
 0x4c6   : > { %v1164_v27 = vmul.f32 %v1163_v26, %v1163_v26 }
 0x4c8   : > { %v1165_v28 = vsel %vm1035_vm4, %v1164_v27, 0.0 }
 0x4c9   : > { %1166 = vadd.xlane.f32.xlu0 %v1165_v28 }
 0x523   : > { %v1051_v29 = vpop.xlane.xlu1 %1050 }
 0x524   : > { %v1052_v30 = vmul.f32 %v1051_v29, %v1045_v18 }
 0x526   : > { %v1053_v31 = vadd.f32 1e-05, %v1052_v30 }
 0x528   : > { %1529 = vrsqrt.f32 %v1053_v31  ;;  %vm1060_vm7 = vweird.f32 %v1053_v31 }
 0x52e   : > { %v1530_v34 = vpop.eup %1529 }
 0x52f   : > { %v1055_v35 = vmul.f32 %v1530_v34, %v1053_v31  ;;  %vm1061_vm6 = vweird.f32 %v1530_v34 }
 0x530   : > { %vm1062_vm8 = vmor %vm1060_vm7, %vm1061_vm6 }
 0x531   : > { %v1056_v37 = vmul.f32 %v1530_v34, %v1055_v35 }
 0x533   : > { %v1057_v38 = vmul.f32 0.5, %v1056_v37 }
 0x535   : > { %v1058_v40 = vsub.f32 1.5, %v1057_v38 }
 0x537   : > { %v1059_v41 = vmul.f32 %v1530_v34, %v1058_v40 }
 0x539   : > { %v1063_v43 = vsel %vm1062_vm8, %v1530_v34, %v1059_v41 }
 0x53a   : > { %v1064_v45 = vmul.f32 %v1063_v43, %v1047_v21 }
 0x53c   : > { %v1068_v46 = vmul.f32 %v1508_v42, %v1064_v45  ;;  %v1167_v47 = vpop.xlane.xlu0 %1166 }
 0x53d   : > { %v1168_v48 = vmul.f32 %v1167_v47, %v1045_v18 }
 0x53e   : > { %v1072_v49 = vadd.f32 %v1509_v44, %v1068_v46 }
 0x53f   : > { %v1169_v50 = vadd.f32 1e-05, %v1168_v48 }
 0x540   : > { %v1074_v51 = vmul.f32 0.044715, %v1072_v49  ;;  %v1073_v63 = vmul.f32 0.5, %v1072_v49 }
 0x541   : > { %1531 = vrsqrt.f32 %v1169_v50  ;;  %vm1176_vm10 = vweird.f32 %v1169_v50 }
 0x542   : > { %v1075_v52 = vmul.f32 %v1074_v51, %v1072_v49 }
 0x544   : > { %v1076_v53 = vmul.f32 %v1075_v52, %v1072_v49 }
 0x546   : > { %v1077_v54 = vadd.f32 %v1076_v53, %v1072_v49 }
 0x547   : > { %v1532_v55 = vpop.eup %1531 }
 0x548   : > { %v1171_v56 = vmul.f32 %v1532_v55, %v1169_v50  ;;  %v1078_v57 = vmul.f32 0.7978846, %v1077_v54  ;;  %vm1177_vm9 = vweird.f32 %v1532_v55 }
 0x549   : > { %vm1178_vm11 = vmor %vm1176_vm10, %vm1177_vm9 }
 0x54a   : > { %v1172_v58 = vmul.f32 %v1532_v55, %v1171_v56  ;;  %1533 = vtanh.f32 %v1078_v57 }
 0x54c   : > { %v1173_v59 = vmul.f32 0.5, %v1172_v58 }
 0x54e   : > { %v1174_v60 = vsub.f32 1.5, %v1173_v59 }
 0x550   : > { %v1534_v61 = vpop.eup %1533  ;;  %v1175_v62 = vmul.f32 %v1532_v55, %v1174_v60 }
 0x551   : > { %v1080_v0 = vadd.f32 1.0, %v1534_v61 }
 0x552   : > { %v1179_v1 = vsel %vm1178_vm11, %v1532_v55, %v1175_v62 }
 0x553   : > { %v1180_v4 = vmul.f32 %v1179_v1, %v1163_v26  ;;  %v1081_v5 = vmul.f32 %v1080_v0, %v1073_v63 }
 0x555   : > { %v1181_v6 = vmul.f32 %v1508_v42, %v1180_v4  ;;  %v1082_v7 = vpack.c.bf16 %v1081_v5, %v1081_v5 }
 0x557   : > { %v1182_v8 = vadd.f32 %v1509_v44, %v1181_v6  ;;  %1434 = vmatmul.msk.bf16.vlgmr.msra.gmra.mxu2 %vm1035_vm4, %v1082_v7 }
 0x559   : > { %v1184_v9 = vmul.f32 0.044715, %v1182_v8  ;;  %v1183_v15 = vmul.f32 0.5, %v1182_v8 }
 0x55b   : > { %v1185_v10 = vmul.f32 %v1184_v9, %v1182_v8 }
 0x55d   : > { %v1186_v11 = vmul.f32 %v1185_v10, %v1182_v8 }
 0x55f   : > { %v1187_v12 = vadd.f32 %v1186_v11, %v1182_v8 }
 0x561   : > { %v1188_v13 = vmul.f32 0.7978846, %v1187_v12 }
 0x563   : > { %1535 = vtanh.f32 %v1188_v13 }
 0x569   : > { %v1536_v14 = vpop.eup %1535 }
 0x56a   : > { %v1190_v16 = vadd.f32 1.0, %v1536_v14 }
 0x56c   : > { %v1191_v17 = vmul.f32 %v1190_v16, %v1183_v15 }
 0x56e   : > { %v1192_v18 = vpack.c.bf16 %v1191_v17, %v1191_v17 }
 0x570   : > { %1437 = vmatmul.msk.bf16.vlgmr.msrb.gmra.mxu1 %vm1035_vm4, %v1192_v18 }
 0x5da   : > { %v1119_v21 = vpop.f32.mrf.mxu2 }
 0x5db   : > { %v1123_v22 = vadd.f32 %v1119_v21, %v554_v19 }
 0x5dd   : > { %v1127_v23 = vadd.f32 %v1510_v20, %v1123_v22 }
 0x5df   : > { %1211 = vst.msk [vmem:[%s534_s17] sm:$0xff] %vm577_vm0, %v1127_v23 }
 0x5e0   : > { %1564 = shalt.err (!%p1561_p4)
}
 0x5e1   : > { %1458 = dma.vmem_to_hbm [thread:$0]  (%p1758_p5), %s1232_s20, 128, %s1234_s26, %s1214_s28   ;;  %v556_v24 = vunpack.c.l.bf16 %v1785_v3 }
 0x5e2   : > { %v1121_v2 = vpop.f32.mrf.mxu2  ;;  %s1996_s24 = sld [smem:[#allocation16_spill]]  ;;  %s1998_s29 = sshll.u32 %s1894_s18, 3 }
 0x5e3   : > { %s541_s27 = scalar_lea.vmem [#allocation4], %s1998_s29  ;;  %s1219_s20 = scalar_lea.sflag [#allocation5], %s1894_s18 }
 0x5e4   : > { %s1245_s30 = sshll.u32 %s541_s27, 4  ;;  %s1246_s30 = int_to_ptr.vmem [resolvable:$true] %s1245_s30 }
 0x5e8   : > { %s1997_s1 = smov %s1996_s24  ;;  %s1243_s23 = scalar_lea.hbm %s1996_s24, %s1440_s19 }
 0x5e9   : > { %s1247_s16 = sshll.u32 %s1243_s23, 4  ;;  %s1585_s17 = scalar_lea.hbm %s1997_s1, 16  ;;  %s1248_s16 = int_to_ptr.hbm [resolvable:$true] %s1247_s16 }
 0x5ea   : > { %s1579_s26 = sshra.s32 %s1248_s16, 4  ;;  %s1580_s26 = int_to_ptr.hbm [resolvable:$true] %s1579_s26 }
 0x5eb   : > { %s1581_s25 = scalar_lea.hbm %s1580_s26, 8  ;;  %p1586_p10 = scmp.lt.s32.totalorder %s1580_s26, %s1997_s1 }
 0x5ec   : > { %p1582_p7 = scmp.ne.s32.totalorder %s1580_s26, %s1581_s25  ;;  %p1587_p11 = scmp.lt.s32.totalorder %s1585_s17, %s1581_s25 }
 0x5ed   : > { %v1205_v25 = vpop.f32.mrf.mxu1 }
 0x5ee   : > { %v1209_v26 = vadd.f32 %v1205_v25, %v556_v24  ;;  %p1583_p8 = pnand %p1582_p7, %p1758_p5  ;;  %p1588_p12 = por %p1587_p11, %p1586_p10 }
 0x5f0   : > { %v1210_v27 = vadd.f32 %v1510_v20, %v1209_v26  ;;  %p1584_p9 = pneg %p1583_p8 }
 0x5f2   : > { %1212 = vst.msk [vmem:[%s541_s27] sm:$0xff] %vm577_vm0, %v1210_v27  ;;  %p1589_p13 = pnand %p1588_p12, %p1584_p9 }
 0x5f4   : > { %1592 = shalt.err (!%p1589_p13)
}
 0x5f5   : > { %1459 = dma.vmem_to_hbm [thread:$0]  (%p1758_p5), %s1246_s30, 128, %s1248_s16, %s1219_s20   ;;  %v1207_v3 = vpop.f32.mrf.mxu1 }
 0x5f6 PF: > { %s1999_s18 = sld [smem:[#allocation10_spill]] }
 0x5f7   : > { %s2000_s23 = sld [smem:[#allocation8_spill]] }
 0x5fc   : > { %p1469_p0 = scmp.ge.s32.totalorder %s1999_s18, 2 }
 0x5fd   : > { %s1259_s27 = sand.u32 1, %s2000_s23  }
 0x5fe   : > { %p1463_p1 = pnand %p1469_p0, %p1762_p6  ;;  %s1260_s19 = scalar_lea.sflag [#allocation3], %s1259_s27 }
 0x600   : > { %p1464_p2 = pneg %p1463_p1 }
 0x602   : > { %1610 = dma.done.wait (%p1464_p2), %s1260_s19, 128  }
 0x603   : > { %1612 = vsyncadd (%p1464_p2), %s1260_s19, 4294967168  ;;  %s1270_s26 = scalar_lea.sflag [#allocation5], %s1259_s27 }
 0x604   : > { %1614 = dma.done.wait (%p1464_p2), %s1270_s26, 128  }
 0x605   : > { %1616 = vsyncadd (%p1464_p2), %s1270_s26, 4294967168  ;;  %s2002_s24 = sld [smem:[#allocation11_spill]]  ;;  %s2005_s21 = smov %s1623_s22 }
 0x606   : > { %s2003_s0 = sld [smem:[#allocation9_spill]] }
 0x607   : > { %s2004_s23 = sld [smem:[#allocation12_spill]] }
 0x60b   : > { %p30_p5 = scmp.ge.s32.totalorder %s2002_s24, 4  }
 0x60c   : > { %s2006_s22 = smov %s2003_s0 }
 0x60d   :  { %32 = sbr.rel (!%p30_p5) target bundleno = 9 (0x9), region = 135 }
 0x612   :  { %1276 = vsyncpa [#allocation3], 1 }
 0x613   :  { %1278 = vsyncpa [#allocation3 + $0x1], 1 }
 0x614   :  { %1279 = vsyncpa [#allocation5], 1 }
 0x615   :  { %1281 = vsyncpa [#allocation5 + $0x1], 1 }

// kernel: seg_transformer.2
= control target key start
LH: loop header
LB: loop body
LE: loop exit
PB: predicated region body
PF: predicated region fallthrough
CT: control target
= control target key end

     0   :  { %s3678_s6 = smov 1   ;;  %s3679_s10 = smov 2   ;;  %s4308_s0 = inlined_call_operand.smem [shape: u32[43], index: -1, kind: input, shape index: {}] }
   0x1   :  { %s3750_s5 = sld [smem:[%s4308_s0]]   ;;  %s3680_s14 = smov 3  }
   0x2   :  { %s3755_s9 = sld [smem:[%s4308_s0 + %s3678_s6]]   ;;  %s3681_s18 = smov 4  }
   0x3   :  { %s3760_s13 = sld [smem:[%s4308_s0 + %s3679_s10]]   ;;  %s3682_s22 = smov 5  }
   0x4   :  { %s3765_s17 = sld [smem:[%s4308_s0 + %s3680_s14]]   ;;  %s3683_s26 = smov 6  }
   0x5   :  { %s3770_s21 = sld [smem:[%s4308_s0 + %s3681_s18]]   ;;  %s3684_s30 = smov 7  }
   0x6   :  { %s3775_s25 = sld [smem:[%s4308_s0 + %s3682_s22]]   ;;  %s3685_s4 = smov 8  }
   0x7   :  { %s3780_s29 = sld [smem:[%s4308_s0 + %s3683_s26]]   ;;  %s3686_s10 = smov 9  }
   0x8   :  { %s3785_s3 = sld [smem:[%s4308_s0 + %s3684_s30]]   ;;  %s3687_s15 = smov 10  }
   0x9   :  { %4327 = sst [smem:[#allocation24_spill]] %s3760_s13  ;;  %s3688_s20 = smov 11  }
   0xa   :  { %4328 = sst [smem:[#allocation25_spill]] %s3765_s17  ;;  %s3689_s26 = smov 12  }
   0xb   :  { %4329 = sst [smem:[#allocation26_spill]] %s3770_s21  ;;  %s3690_s1 = smov 13  }
   0xc   :  { %4330 = sst [smem:[#allocation27_spill]] %s3775_s25  ;;  %s3691_s7 = smov 14  }
   0xd   :  { %4331 = sst [smem:[#allocation28_spill]] %s3780_s29  ;;  %s3693_s22 = smov 16  }
   0xe   :  { %s3790_s8 = sld [smem:[%s4308_s0 + %s3685_s4]]   ;;  %s3694_s28 = smov 17  }
   0xf   :  { %s3795_s14 = sld [smem:[%s4308_s0 + %s3686_s10]]  }
  0x10   :  { %s3800_s19 = sld [smem:[%s4308_s0 + %s3687_s15]]   ;;  %s3692_s15 = smov 15  }
  0x11   :  { %s3805_s24 = sld [smem:[%s4308_s0 + %s3688_s20]]  }
  0x12   :  { %s3810_s30 = sld [smem:[%s4308_s0 + %s3689_s26]]  }
  0x13   :  { %s3815_s6 = sld [smem:[%s4308_s0 + %s3690_s1]]  }
  0x14   :  { %s3820_s12 = sld [smem:[%s4308_s0 + %s3691_s7]]   ;;  %s3695_s7 = smov 18  }
  0x15   :  { %s3825_s20 = sld [smem:[%s4308_s0 + %s3692_s15]]   ;;  %s3696_s15 = smov 19  }
  0x16   :  { %4332 = sst [smem:[#allocation29_spill]] %s3800_s19 }
  0x17   :  { %s3830_s27 = sld [smem:[%s4308_s0 + %s3693_s22]]   ;;  %s3697_s22 = smov 20  }
  0x18   :  { %4333 = sst [smem:[#allocation30_spill]] %s3810_s30 }
  0x19   :  { %4334 = sst [smem:[#allocation31_spill]] %s3815_s6 }
  0x1a   :  { %4335 = sst [smem:[#allocation32_spill]] %s3820_s12 }
  0x1b   :  { %4336 = sst [smem:[#allocation33_spill]] %s3825_s20 }
  0x1c   :  { %s3835_s4 = sld [smem:[%s4308_s0 + %s3694_s28]]   ;;  %s3698_s28 = smov 21  }
  0x1d   :  { %4337 = sst [smem:[#allocation34_spill]] %s3830_s27 }
  0x1e   :  { %s3840_s17 = sld [smem:[%s4308_s0 + %s3695_s7]]   ;;  %s3699_s7 = smov 22  }
  0x1f   :  { %s3845_s21 = sld [smem:[%s4308_s0 + %s3696_s15]]   ;;  %s3700_s15 = smov 23  }
  0x20   :  { %s3850_s13 = sld [smem:[%s4308_s0 + %s3697_s22]]   ;;  %s3701_s22 = smov 24  }
  0x21   :  { %s3855_s27 = sld [smem:[%s4308_s0 + %s3698_s28]]   ;;  %s3702_s28 = smov 25  }
  0x22   :  { %4338 = sst [smem:[#allocation35_spill]] %s3835_s4 }
  0x24   :  { %4339 = sst [smem:[#allocation36_spill]] %s3840_s17 }
  0x25   :  { %4340 = sst [smem:[#allocation37_spill]] %s3845_s21 }
  0x26   :  { %4341 = sst [smem:[#allocation38_spill]] %s3850_s13 }
  0x27   :  { %4342 = sst [smem:[#allocation39_spill]] %s3855_s27 }
  0x28   :  { %s3860_s17 = sld [smem:[%s4308_s0 + %s3699_s7]]   ;;  %s3703_s7 = smov 26  }
  0x29   :  { %s3865_s21 = sld [smem:[%s4308_s0 + %s3700_s15]]   ;;  %s3704_s15 = smov 27  }
  0x2a   :  { %s3870_s13 = sld [smem:[%s4308_s0 + %s3701_s22]]   ;;  %s3705_s22 = smov 28  }
  0x2b   :  { %s3875_s27 = sld [smem:[%s4308_s0 + %s3702_s28]]   ;;  %s3706_s28 = smov 29  }
  0x2c   :  { %s3895_s20 = sld [smem:[%s4308_s0 + %s3706_s28]]   ;;  %s3710_s28 = smov 33  }
  0x2e   :  { %4343 = sst [smem:[#allocation40_spill]] %s3860_s17 }
  0x2f   :  { %4344 = sst [smem:[#allocation41_spill]] %s3865_s21 }
  0x30   :  { %4345 = sst [smem:[#allocation42_spill]] %s3870_s13 }
  0x31   :  { %s3880_s17 = sld [smem:[%s4308_s0 + %s3703_s7]]   ;;  %s3707_s7 = smov 30  }
  0x32   :  { %s3885_s21 = sld [smem:[%s4308_s0 + %s3704_s15]]   ;;  %s3708_s15 = smov 31  }
  0x33   :  { %s3890_s13 = sld [smem:[%s4308_s0 + %s3705_s22]]   ;;  %s3709_s22 = smov 32  }
  0x34   :  { %4348 = sst [smem:[#allocation45_spill]] %s3895_s20 }
  0x35   :  { %s3905_s4 = sld [smem:[%s4308_s0 + %s3708_s15]]   ;;  %s3712_s15 = smov 35  }
  0x36   :  { %s3915_s20 = sld [smem:[%s4308_s0 + %s3710_s28]]   ;;  %s3714_s28 = smov 37  }
  0x37   :  { %4346 = sst [smem:[#allocation43_spill]] %s3880_s17 }
  0x38   :  { %s3900_s17 = sld [smem:[%s4308_s0 + %s3707_s7]]   ;;  %s3711_s7 = smov 34  }
  0x39   :  { %4347 = sst [smem:[#allocation44_spill]] %s3890_s13 }
  0x3a   :  { %s3910_s13 = sld [smem:[%s4308_s0 + %s3709_s22]]   ;;  %s3713_s22 = smov 36  }
  0x3b   :  { %s3920_s12 = sld [smem:[%s4308_s0 + %s3711_s7]]   ;;  %s3715_s7 = smov 38  }
  0x3c   :  { %4349 = sst [smem:[#allocation46_spill]] %s3915_s20 }
  0x3d   :  { %s3925_s19 = sld [smem:[%s4308_s0 + %s3712_s15]]   ;;  %s3716_s15 = smov 39  }
  0x3e   :  { %s3930_s30 = sld [smem:[%s4308_s0 + %s3713_s22]]   ;;  %s3717_s22 = smov 40  }
  0x3f   :  { %s3935_s20 = sld [smem:[%s4308_s0 + %s3714_s28]]   ;;  %s3718_s28 = smov 41  }
  0x40   :  { %s3940_s6 = sld [smem:[%s4308_s0 + %s3715_s7]]   ;;  %s3719_s7 = smov 42  }
  0x41   :  { %s3955_s29 = sld [smem:[%s4308_s0 + %s3718_s28]]  }
  0x42   :  { %s3960_s25 = sld [smem:[%s4308_s0 + %s3719_s7]]  }
  0x43   :  { %4350 = sst [smem:[#allocation47_spill]] %s3925_s19 }
  0x44   :  { %4351 = sst [smem:[#allocation48_spill]] %s3930_s30 }
  0x45   :  { %s3945_s19 = sld [smem:[%s4308_s0 + %s3716_s15]]  }
  0x46   :  { %s3950_s30 = sld [smem:[%s4308_s0 + %s3717_s22]]  }
  0x48   :  { %4352 = sst [smem:[#allocation49_spill]] %s3960_s25 }
  0x49   :  { %90 = vsyncpa [#allocation3], 0 }
  0x4a   :  { %91 = vsyncpa [#allocation5], 0 }
  0x4b   :  { %92 = vsyncpa [#allocation8], 0 }
  0x4c   :  { %93 = vsyncpa [#allocation11], 0 }
  0x4d   :  { %94 = vsyncpa [#allocation14], 0 }
  0x4e   :  { %95 = vsyncpa [#allocation17], 0  ;;  %s3962_s15 = smov 0  }
  0x4f LB: > { %4353 = sst [smem:[#allocation50_spill]] %s3676_s15  ;;  %s1126_s0 = sshll.u32 %s3885_s21, 4  ;;  %s3676_s15 = sphi %s3962_s15, %s101_s15   ;;  %s3968_s0 = int_to_ptr.hbm [resolvable:$true] %s1126_s0 }
  0x50   : > { %s3971_s16 = sadd.s32 4294967295, %s3676_s15   ;;  %p2880_p0 = scmp.ge.s32.totalorder %s3676_s15, 1 }
  0x51   : > { %p1039_p1 = scmp.lt.s32.totalorder %s3676_s15, 5  ;;  %p3193_p2 = scmp.eq.s32.totalorder %s3971_s16, 0 }
  0x52   : > { %s3720_s22 = smov [#allocation4]   ;;  %s1156_s26 = sshll.u32 %s3905_s4, 4  ;;  %s3983_s26 = int_to_ptr.hbm [resolvable:$true] %s1156_s26 }
  0x53   : > { %p3976_p3 = pnand %p2880_p0, %p1039_p1  ;;  %s1128_s23 = sshll.u32 %s3720_s22, 4  ;;  %s1129_s23 = int_to_ptr.vmem [resolvable:$true] %s1128_s23 }
  0x54   : > { %s1183_s28 = sshll.u32 %s3920_s12, 4  ;;  %s3721_s2 = smov [#allocation7]   ;;  %s3995_s28 = int_to_ptr.hbm [resolvable:$true] %s1183_s28 }
  0x55   : > { %p3162_p4 = pneg %p3976_p3  ;;  %s3992_s7 = sshll.u32 %s3721_s2, 4  ;;  %s1159_s7 = int_to_ptr.vmem [resolvable:$true] %s3992_s7 }
  0x56   : > { %s3346_s10 = sshra.s32 %s3968_s0, 4  ;;  %s3353_s15 = scalar_lea.hbm %s3885_s21, 1  ;;  %s3347_s10 = int_to_ptr.hbm [resolvable:$true] %s3346_s10 }
  0x57   : > { %p3988_p5 = pnand %p3193_p2, %p3162_p4  ;;  %s3348_s11 = scalar_lea.hbm %s3347_s10, 1 }
  0x58   : > { %p3349_p6 = scmp.ne.s32.totalorder %s3347_s10, %s3348_s11  ;;  %p3354_p10 = scmp.lt.s32.totalorder %s3347_s10, %s3885_s21 }
  0x59   : > { %p4000_p7 = pneg %p3988_p5  ;;  %p3355_p11 = scmp.lt.s32.totalorder %s3353_s15, %s3348_s11 }
  0x5b   : > { %p3351_p8 = pnand %p4000_p7, %p3349_p6  ;;  %p3356_p12 = por %p3355_p11, %p3354_p10 }
  0x5d   : > { %p3352_p9 = pneg %p3351_p8 }
  0x5f   : > { %p3357_p13 = pnand %p3356_p12, %p3352_p9 }
  0x61   : > { %3360 = shalt.err (!%p3357_p13)
}
  0x62   : > { %3168 = dma.hbm_to_vmem [thread:$0]  (!%p3988_p5), %s3968_s0, 16, %s1129_s23, [#allocation5]  }
  0x63   : > { %s3376_s2 = sshra.s32 %s3983_s26, 4  ;;  %s3383_s10 = scalar_lea.hbm %s3905_s4, 1  ;;  %s3377_s2 = int_to_ptr.hbm [resolvable:$true] %s3376_s2 }
  0x64   : > { %s3378_s25 = scalar_lea.hbm %s3377_s2, 1  ;;  %p3384_p6 = scmp.lt.s32.totalorder %s3377_s2, %s3905_s4 }
  0x65   : > { %p3379_p0 = scmp.ne.s32.totalorder %s3377_s2, %s3378_s25  ;;  %p3385_p8 = scmp.lt.s32.totalorder %s3383_s10, %s3378_s25 }
  0x67   : > { %p3381_p1 = pnand %p3379_p0, %p4000_p7  ;;  %p3386_p9 = por %p3385_p8, %p3384_p6 }
  0x69   : > { %p3382_p4 = pneg %p3381_p1 }
  0x6b   : > { %p3387_p10 = pnand %p3386_p9, %p3382_p4 }
  0x6d   : > { %3390 = shalt.err (!%p3387_p10)
}
  0x6e   : > { %3174 = dma.hbm_to_vmem [thread:$0]  (!%p3988_p5), %s3983_s26, 16, %s1159_s7, [#allocation8]  }
  0x6f   : > { %s3722_s15 = smov [#allocation10]   ;;  %s1213_s23 = sshll.u32 %s3940_s6, 4  ;;  %s4020_s23 = int_to_ptr.hbm [resolvable:$true] %s1213_s23 }
  0x70   : > { %s1185_s0 = sshll.u32 %s3722_s15, 4  ;;  %s3406_s11 = sshra.s32 %s3995_s28, 4  ;;  %s1186_s0 = int_to_ptr.vmem [resolvable:$true] %s1185_s0  ;;  %s3407_s11 = int_to_ptr.hbm [resolvable:$true] %s3406_s11 }
  0x71   : > { %s3408_s25 = scalar_lea.hbm %s3407_s11, 1  ;;  %s3413_s2 = scalar_lea.hbm %s3920_s12, 1 }
  0x72   : > { %p3409_p11 = scmp.ne.s32.totalorder %s3407_s11, %s3408_s25  ;;  %p3414_p0 = scmp.lt.s32.totalorder %s3407_s11, %s3920_s12 }
  0x73   : > { %p3415_p1 = scmp.lt.s32.totalorder %s3413_s2, %s3408_s25 }
  0x74   : > { %p3411_p12 = pnand %p3409_p11, %p4000_p7 }
  0x75   : > { %p3416_p4 = por %p3415_p1, %p3414_p0 }
  0x76   : > { %p3412_p13 = pneg %p3411_p12 }
  0x78   : > { %p3417_p6 = pnand %p3416_p4, %p3412_p13 }
  0x7a   : > { %3420 = shalt.err (!%p3417_p6)
}
  0x7b   : > { %3180 = dma.hbm_to_vmem [thread:$0]  (!%p3988_p5), %s3995_s28, 16, %s1186_s0, [#allocation11]  }
  0x7c   : > { %s1111_s26 = sshll.u32 %s3875_s27, 4  ;;  %s3723_s7 = smov [#allocation13]   ;;  %s4031_s26 = int_to_ptr.hbm [resolvable:$true] %s1111_s26 }
  0x7d   : > { %s1215_s10 = sshll.u32 %s3723_s7, 4  ;;  %s3436_s15 = sshra.s32 %s4020_s23, 4  ;;  %s1216_s10 = int_to_ptr.vmem [resolvable:$true] %s1215_s10  ;;  %s3437_s15 = int_to_ptr.hbm [resolvable:$true] %s3436_s15 }
  0x7e   : > { %s3438_s11 = scalar_lea.hbm %s3437_s15, 1  ;;  %s3443_s25 = scalar_lea.hbm %s3940_s6, 1 }
  0x7f   : > { %p3439_p8 = scmp.ne.s32.totalorder %s3437_s15, %s3438_s11  ;;  %p3444_p11 = scmp.lt.s32.totalorder %s3437_s15, %s3940_s6 }
  0x80   : > { %p3445_p12 = scmp.lt.s32.totalorder %s3443_s25, %s3438_s11 }
  0x81   : > { %p3441_p9 = pnand %p3439_p8, %p4000_p7 }
  0x82   : > { %p3446_p13 = por %p3445_p12, %p3444_p11 }
  0x83   : > { %p3442_p10 = pneg %p3441_p9 }
  0x85   : > { %p3447_p0 = pnand %p3446_p13, %p3442_p10 }
  0x87   : > { %3450 = shalt.err (!%p3447_p0)
}
  0x88   : > { %3186 = dma.hbm_to_vmem [thread:$0]  (!%p3988_p5), %s4020_s23, 16, %s1216_s10, [#allocation14]  }
  0x89   : > { %s3724_s28 = smov [#allocation2]   ;;  %s1144_s2 = sshll.u32 %s3900_s17, 4  ;;  %s4042_s2 = int_to_ptr.hbm [resolvable:$true] %s1144_s2 }
  0x8a   : > { %s1113_s0 = sshll.u32 %s3724_s28, 4  ;;  %s3466_s7 = sshra.s32 %s4031_s26, 4  ;;  %s1114_s0 = int_to_ptr.vmem [resolvable:$true] %s1113_s0  ;;  %s3467_s7 = int_to_ptr.hbm [resolvable:$true] %s3466_s7 }
  0x8b   : > { %s3468_s15 = scalar_lea.hbm %s3467_s7, 1  ;;  %s3473_s11 = scalar_lea.hbm %s3875_s27, 1 }
  0x8c   : > { %p3469_p1 = scmp.ne.s32.totalorder %s3467_s7, %s3468_s15  ;;  %p3474_p8 = scmp.lt.s32.totalorder %s3467_s7, %s3875_s27 }
  0x8d   : > { %p3475_p9 = scmp.lt.s32.totalorder %s3473_s11, %s3468_s15 }
  0x8e   : > { %p3471_p4 = pnand %p3469_p1, %p4000_p7 }
  0x8f   : > { %p3476_p10 = por %p3475_p9, %p3474_p8 }
  0x90   : > { %p3472_p6 = pneg %p3471_p4 }
  0x92   : > { %p3477_p11 = pnand %p3476_p10, %p3472_p6 }
  0x94   : > { %3480 = shalt.err (!%p3477_p11)
}
  0x95   : > { %3165 = dma.hbm_to_vmem [thread:$0]  (!%p3988_p5), %s4031_s26, 16, %s1114_s0, [#allocation3]  }
  0x96   : > { %s1168_s23 = sshll.u32 %s3910_s13, 4  ;;  %s3725_s10 = smov [#allocation6]   ;;  %s4053_s23 = int_to_ptr.hbm [resolvable:$true] %s1168_s23 }
  0x97   : > { %s1146_s25 = sshll.u32 %s3725_s10, 4  ;;  %s3496_s28 = sshra.s32 %s4042_s2, 4  ;;  %s1147_s25 = int_to_ptr.vmem [resolvable:$true] %s1146_s25  ;;  %s3497_s28 = int_to_ptr.hbm [resolvable:$true] %s3496_s28 }
  0x98   : > { %s3498_s7 = scalar_lea.hbm %s3497_s28, 1  ;;  %s3503_s15 = scalar_lea.hbm %s3900_s17, 1 }
  0x99   : > { %p3499_p12 = scmp.ne.s32.totalorder %s3497_s28, %s3498_s7  ;;  %p3504_p1 = scmp.lt.s32.totalorder %s3497_s28, %s3900_s17 }
  0x9a   : > { %p3505_p4 = scmp.lt.s32.totalorder %s3503_s15, %s3498_s7 }
  0x9b   : > { %p3501_p13 = pnand %p3499_p12, %p4000_p7 }
  0x9c   : > { %p3506_p6 = por %p3505_p4, %p3504_p1 }
  0x9d   : > { %p3502_p0 = pneg %p3501_p13 }
  0x9f   : > { %p3507_p8 = pnand %p3506_p6, %p3502_p0 }
  0xa1   : > { %3510 = shalt.err (!%p3507_p8)
}
  0xa2   : > { %3171 = dma.hbm_to_vmem [thread:$0]  (!%p3988_p5), %s4042_s2, 16, %s1147_s25, [#allocation5]  }
  0xa3   : > { %s3726_s26 = smov [#allocation9]   ;;  %s1201_s11 = sshll.u32 %s3935_s20, 4  ;;  %s4064_s11 = int_to_ptr.hbm [resolvable:$true] %s1201_s11 }
  0xa4   : > { %s1170_s0 = sshll.u32 %s3726_s26, 4  ;;  %s3526_s10 = sshra.s32 %s4053_s23, 4  ;;  %s1171_s0 = int_to_ptr.vmem [resolvable:$true] %s1170_s0  ;;  %s3527_s10 = int_to_ptr.hbm [resolvable:$true] %s3526_s10 }
  0xa5   : > { %s3528_s28 = scalar_lea.hbm %s3527_s10, 1  ;;  %s3533_s7 = scalar_lea.hbm %s3910_s13, 1 }
  0xa6   : > { %p3529_p9 = scmp.ne.s32.totalorder %s3527_s10, %s3528_s28  ;;  %p3534_p12 = scmp.lt.s32.totalorder %s3527_s10, %s3910_s13 }
  0xa7   : > { %p3535_p13 = scmp.lt.s32.totalorder %s3533_s7, %s3528_s28 }
  0xa8   : > { %p3531_p10 = pnand %p3529_p9, %p4000_p7 }
  0xa9   : > { %p3536_p0 = por %p3535_p13, %p3534_p12 }
  0xaa   : > { %p3532_p11 = pneg %p3531_p10 }
  0xac   : > { %p3537_p1 = pnand %p3536_p0, %p3532_p11 }
  0xae   : > { %3540 = shalt.err (!%p3537_p1)
}
  0xaf   : > { %3177 = dma.hbm_to_vmem [thread:$0]  (!%p3988_p5), %s4053_s23, 16, %s1171_s0, [#allocation8]  }
  0xb0   : > { %s1225_s2 = sshll.u32 %s3945_s19, 4  ;;  %s3727_s25 = smov [#allocation12]   ;;  %s4075_s2 = int_to_ptr.hbm [resolvable:$true] %s1225_s2 }
  0xb1   : > { %s1203_s15 = sshll.u32 %s3727_s25, 4  ;;  %s3556_s26 = sshra.s32 %s4064_s11, 4  ;;  %s1204_s15 = int_to_ptr.vmem [resolvable:$true] %s1203_s15  ;;  %s3557_s26 = int_to_ptr.hbm [resolvable:$true] %s3556_s26 }
  0xb2   : > { %s3558_s10 = scalar_lea.hbm %s3557_s26, 1  ;;  %s3563_s28 = scalar_lea.hbm %s3935_s20, 1 }
  0xb3   : > { %p3559_p4 = scmp.ne.s32.totalorder %s3557_s26, %s3558_s10  ;;  %p3564_p9 = scmp.lt.s32.totalorder %s3557_s26, %s3935_s20 }
  0xb4   : > { %p3565_p10 = scmp.lt.s32.totalorder %s3563_s28, %s3558_s10 }
  0xb5   : > { %p3561_p6 = pnand %p3559_p4, %p4000_p7 }
  0xb6   : > { %p3566_p11 = por %p3565_p10, %p3564_p9 }
  0xb7   : > { %p3562_p8 = pneg %p3561_p6 }
  0xb9   : > { %p3567_p12 = pnand %p3566_p11, %p3562_p8 }
  0xbb   : > { %3570 = shalt.err (!%p3567_p12)
}
  0xbc   : > { %3183 = dma.hbm_to_vmem [thread:$0]  (!%p3988_p5), %s4064_s11, 16, %s1204_s15, [#allocation11]  }
  0xbd   : > { %s3728_s23 = smov [#allocation15]   ;;  %s1240_s7 = sshll.u32 %s3955_s29, 4  ;;  %s1241_s7 = int_to_ptr.hbm [resolvable:$true] %s1240_s7 }
  0xbe   : > { %s1227_s0 = sshll.u32 %s3728_s23, 4  ;;  %s3586_s25 = sshra.s32 %s4075_s2, 4  ;;  %s1228_s0 = int_to_ptr.vmem [resolvable:$true] %s1227_s0  ;;  %s3587_s25 = int_to_ptr.hbm [resolvable:$true] %s3586_s25 }
  0xbf   : > { %s3588_s26 = scalar_lea.hbm %s3587_s25, 1  ;;  %s3593_s10 = scalar_lea.hbm %s3945_s19, 1 }
  0xc0   : > { %p3589_p13 = scmp.ne.s32.totalorder %s3587_s25, %s3588_s26  ;;  %p3594_p4 = scmp.lt.s32.totalorder %s3587_s25, %s3945_s19 }
  0xc1   : > { %p3595_p6 = scmp.lt.s32.totalorder %s3593_s10, %s3588_s26 }
  0xc2   : > { %p3591_p0 = pnand %p3589_p13, %p4000_p7 }
  0xc3   : > { %p3596_p8 = por %p3595_p6, %p3594_p4 }
  0xc4   : > { %p3592_p1 = pneg %p3591_p0 }
  0xc6   : > { %p3597_p9 = pnand %p3596_p8, %p3592_p1 }
  0xc8   : > { %3600 = shalt.err (!%p3597_p9)
}
  0xc9   : > { %3189 = dma.hbm_to_vmem [thread:$0]  (!%p3988_p5), %s4075_s2, 16, %s1228_s0, [#allocation14]  }
  0xca   : > { %s3729_s11 = smov [#allocation16]   ;;  %s3616_s28 = sshra.s32 %s1241_s7, 4  ;;  %s3617_s28 = int_to_ptr.hbm [resolvable:$true] %s3616_s28 }
  0xcb   : > { %s1242_s15 = sshll.u32 %s3729_s11, 4  ;;  %s3618_s23 = scalar_lea.hbm %s3617_s28, 1  ;;  %s1243_s15 = int_to_ptr.vmem [resolvable:$true] %s1242_s15 }
  0xcc   : > { %p3619_p10 = scmp.ne.s32.totalorder %s3617_s28, %s3618_s23  ;;  %s3623_s25 = scalar_lea.hbm %s3955_s29, 1 }
  0xcd   : > { %p3624_p13 = scmp.lt.s32.totalorder %s3617_s28, %s3955_s29  ;;  %p3625_p0 = scmp.lt.s32.totalorder %s3623_s25, %s3618_s23 }
  0xce   : > { %p3621_p11 = pnand %p3619_p10, %p4000_p7 }
  0xcf   : > { %p3626_p1 = por %p3625_p0, %p3624_p13 }
  0xd0   : > { %p3622_p12 = pneg %p3621_p11 }
  0xd2   : > { %p3627_p4 = pnand %p3626_p1, %p3622_p12 }
  0xd4   : > { %3630 = shalt.err (!%p3627_p4)
}
  0xd5   : > { %3192 = dma.hbm_to_vmem [thread:$0]  (!%p3988_p5), %s1241_s7, 16, %s1243_s15, [#allocation17]  }
  0xd6   : > { %1291 = sbr.rel (%p3976_p3) target bundleno = 4609 (0x1201), region = 188 }
  0xdb   : > { %3651 = dma.done.wait (%p3193_p2), [#allocation3], 16  }
  0xdc   : > { %3653 = vsyncadd (%p3193_p2), [#allocation3], 4294967280 }
  0xdd   : > { %3655 = dma.done.wait (%p3193_p2), [#allocation5], 32  }
  0xde   : > { %3657 = vsyncadd (%p3193_p2), [#allocation5], 4294967264 }
  0xdf   : > { %3659 = dma.done.wait (%p3193_p2), [#allocation8], 32  }
  0xe0   : > { %3661 = vsyncadd (%p3193_p2), [#allocation8], 4294967264 }
  0xe1   : > { %3663 = dma.done.wait (%p3193_p2), [#allocation11], 32  }
  0xe2   : > { %3665 = vsyncadd (%p3193_p2), [#allocation11], 4294967264 }
  0xe3   : > { %3667 = dma.done.wait (%p3193_p2), [#allocation14], 32  }
  0xe4   : > { %3669 = vsyncadd (%p3193_p2), [#allocation14], 4294967264 }
  0xe5   : > { %3671 = dma.done.wait (%p3193_p2), [#allocation17], 16  }
  0xe6   : > { %3673 = vsyncadd (%p3193_p2), [#allocation17], 4294967280  ;;  %p1454_p3 = scmp.lt.s32.totalorder %s3971_s16, 3  ;;  %vm1488_vm0 = vcmask 261120   ;;  %v3730_v8 = vmov 32.0   ;;  %v3083_v30 = vld [vmem:[%s3795_s14 + $0x8] sm:$0xff] }
  0xe7   : > { %3307 = vrcp.f32 %v3730_v8  ;;  %1612 = vmatpush.bf16.msra.mxu0 %v3083_v30  ;;  %v3082_v33 = vld [vmem:[%s3795_s14] sm:$0xff]  ;;  %v3085_v38 = vld [vmem:[%s3805_s24 + $0x8] sm:$0xff]  ;;  %s4358_s0 = sld [smem:[#allocation28_spill]]  ;;  %s4322_s15 = smov 112   ;;  %vm1701_vm11 = vcmask 130048   ;;  %vm1939_vm12 = vcmask 523264  }
  0xe8   : > { %s4389_s16 = smov (!%p1454_p3, %s3971_s16), 3  ;;  %1650 = vmatpush.bf16.msra.mxu1 %v3085_v38  ;;  %v3084_v41 = vld [vmem:[%s3805_s24] sm:$0xff]  ;;  %s4359_s7 = sld [smem:[#allocation31_spill]] }
  0xe9   : > { %s4128_s18 = sshll.u32 %s4389_s16, 2  ;;  %s3081_s1 = sshll.u32 %s4389_s16, 3  ;;  %v3287_v58 = vld [vmem:[%s3785_s3] ss:$0 sm:$0xff] }
  0xea   : > { %s1462_s22 = scalar_lea.vmem %s3755_s9, %s3081_s1  ;;  %s4133_s2 = scalar_lea.vmem %s3750_s5, %s4128_s18  ;;  %v3288_v63 = vld [vmem:[%s3790_s8] ss:$0 sm:$0xff] }
  0xeb   : > { %v3119_v0 = vld [vmem:[%s1462_s22] sm:$0xff]   ;;  %1613 = vmatpush.bf16.msra.mxu0 %v3082_v33  ;;  %s4357_s16 = sld [smem:[#allocation27_spill]]  ;;  %s4325_s28 = smov 96  }
  0xec   : > { %v1480_v1 = vld [vmem:[%s4133_s2] sm:$0xf]  ;;  %v3120_v2 = vunpack.c.l.bf16 %v3119_v0  ;;  %v3121_v6 = vunpack.c.h.bf16 %v3119_v0  ;;  %1651 = vmatpush.bf16.msra.mxu1 %v3084_v41  ;;  %s4360_s26 = sld [smem:[#allocation30_spill]]  ;;  %s4323_s23 = smov 80  }
  0xed   : > { %v1481_v3 = vunpack.c.l.bf16 %v1480_v1  ;;  %v3308_v9 = vpop.eup %3307  ;;  %s4361_s10 = sld [smem:[#allocation29_spill]] }
  0xee   : > { %v1528_v4 = vsel %vm1488_vm0, %v3120_v2, 0.0  ;;  %v1531_v7 = vsel %vm1488_vm0, %v3121_v6, 0.0  ;;  %v1493_v10 = vmul.f32 32.0, %v3308_v9  ;;  %vm1497_vm1 = vweird.f32 %v3308_v9  ;;  %s4362_s11 = sld [smem:[#allocation32_spill]] }
  0xef   : > { %v1489_v5 = vsel %vm1488_vm0, %v1481_v3, 0.0  ;;  %1529 = vadd.xlane.f32.xlu0 %v1528_v4  ;;  %s4363_s25 = sld [smem:[#allocation35_spill]] }
  0xf0   : > { %1490 = vadd.xlane.f32.xlu2 %v1489_v5  ;;  %v1494_v11 = vsub.f32 1.0, %v1493_v10  ;;  %v3286_v10 = vld [vmem:[%s4358_s0] ss:$0 sm:$0xff]  ;;  %s4364_s1 = sld [smem:[#allocation33_spill]] }
  0xf1   : > { %s4365_s22 = sld [smem:[#allocation36_spill]] }
  0xf2   : > { %v1495_v12 = vmul.f32 %v3308_v9, %v1494_v11  ;;  %s4367_s0 = sld [smem:[#allocation37_spill]] }
  0xf4   : > { %v1496_v13 = vadd.f32 %v3308_v9, %v1495_v12 }
  0xf6   : > { %v1498_v14 = vsel %vm1497_vm1, %v3308_v9, %v1496_v13 }
  0xf7   : > { %1532 = vadd.xlane.f32.xlu0 %v1531_v7 }
 0x162   : > { %v1530_v15 = vpop.xlane.xlu0 %1529 }
 0x163   : > { %v1491_v16 = vpop.xlane.xlu2 %1490  ;;  %v1534_v17 = vmul.f32 %v1530_v15, %v1498_v14  ;;  %v3087_v15 = vld [vmem:[%s4359_s7 + $0x8] sm:$0xff] }
 0x164   : > { %v1499_v18 = vmul.f32 %v1498_v14, %v1491_v16  ;;  %1687 = vmatpush.bf16.msra.mxu2 %v3087_v15  ;;  %v3086_v16 = vld [vmem:[%s4359_s7] sm:$0xff] }
 0x165   : > { %v4139_v19 = vsub.f32 %v3120_v2, %v1534_v17  ;;  %v3290_v17 = vld [vmem:[%s4360_s26] ss:$0 sm:$0xff]  ;;  %s4368_s26 = sld [smem:[#allocation40_spill]] }
 0x166   : > { %v1500_v20 = vsub.f32 %v1481_v3, %v1499_v18  ;;  %v3285_v3 = vld [vmem:[%s4357_s16] ss:$0 sm:$0xff]  ;;  %s4366_s16 = sld [smem:[#allocation34_spill]] }
 0x167   : > { %v1538_v21 = vmul.f32 %v4139_v19, %v4139_v19 }
 0x168   : > { %v1501_v22 = vmul.f32 %v1500_v20, %v1500_v20  ;;  %1688 = vmatpush.bf16.msra.mxu2 %v3086_v16  ;;  %v3093_v16 = vld [vmem:[%s4365_s22 + $0x8] sm:$0xff] }
 0x169   : > { %v1540_v23 = vsel %vm1488_vm0, %v1538_v21, 0.0 }
 0x16a   : > { %v1502_v24 = vsel %vm1488_vm0, %v1501_v22, 0.0  ;;  %1541 = vadd.xlane.f32.xlu1 %v1540_v23  ;;  %v1533_v25 = vpop.xlane.xlu0 %1532  ;;  %v3289_v23 = vld [vmem:[%s4361_s10] ss:$0 sm:$0xff]  ;;  %s4369_s10 = sld [smem:[#allocation38_spill]] }
 0x16b   : > { %1503 = vadd.xlane.f32.xlu2 %v1502_v24  ;;  %v1535_v26 = vmul.f32 %v1533_v25, %v1498_v14 }
 0x16d   : > { %v1537_v27 = vsub.f32 %v3121_v6, %v1535_v26 }
 0x16f   : > { %v1539_v28 = vmul.f32 %v1537_v27, %v1537_v27 }
 0x171   : > { %v1543_v29 = vsel %vm1488_vm0, %v1539_v28, 0.0 }
 0x172   : > { %1544 = vadd.xlane.f32.xlu1 %v1543_v29  ;;  %v3291_v29 = vld [vmem:[%s4362_s11] ss:$0 sm:$0xff]  ;;  %s4370_s11 = sld [smem:[#allocation39_spill]] }
 0x1dd   : > { %v1542_v31 = vpop.xlane.xlu1 %1541 }
 0x1de   : > { %v1504_v32 = vpop.xlane.xlu2 %1503  ;;  %v1546_v34 = vmul.f32 %v1542_v31, %v1498_v14 }
 0x1df   : > { %v1505_v35 = vmul.f32 %v1504_v32, %v1498_v14 }
 0x1e0   : > { %v1548_v36 = vadd.f32 1e-05, %v1546_v34 }
 0x1e1   : > { %v1506_v37 = vadd.f32 1e-05, %v1505_v35 }
 0x1e2   : > { %3309 = vrsqrt.f32 %v1548_v36  ;;  %vm1556_vm6 = vweird.f32 %v1548_v36 }
 0x1e3   : > { %3311 = vrsqrt.f32 %v1506_v37  ;;  %vm1513_vm2 = vweird.f32 %v1506_v37 }
 0x1e5   : > { %v1545_v39 = vpop.xlane.xlu1 %1544 }
 0x1e6   : > { %v1547_v40 = vmul.f32 %v1545_v39, %v1498_v14 }
 0x1e8   : > { %v3310_v42 = vpop.eup %3309  ;;  %v1549_v43 = vadd.f32 1e-05, %v1547_v40 }
 0x1e9   : > { %v3312_v44 = vpop.eup %3311  ;;  %v1551_v45 = vmul.f32 %v3310_v42, %v1548_v36  ;;  %vm1557_vm4 = vweird.f32 %v3310_v42 }
 0x1ea   : > { %3313 = vrsqrt.f32 %v1549_v43  ;;  %v1508_v46 = vmul.f32 %v3312_v44, %v1506_v37  ;;  %vm1514_vm3 = vweird.f32 %v3312_v44  ;;  %vm1558_vm7 = vmor %vm1556_vm6, %vm1557_vm4  ;;  %vm1566_vm9 = vweird.f32 %v1549_v43 }
 0x1eb   : > { %v1552_v47 = vmul.f32 %v3310_v42, %v1551_v45  ;;  %vm1515_vm5 = vmor %vm1513_vm2, %vm1514_vm3  ;;  %vm2076_vm2 = vcmask 1047808   ;;  %vm2159_vm3 = vcmask 64512   ;;  %vm2179_vm4 = vcmask 1043456  }
 0x1ec   : > { %v1509_v48 = vmul.f32 %v3312_v44, %v1508_v46 }
 0x1ed   : > { %v1553_v49 = vmul.f32 0.5, %v1552_v47 }
 0x1ee   : > { %v1510_v50 = vmul.f32 0.5, %v1509_v48 }
 0x1ef   : > { %v1554_v51 = vsub.f32 1.5, %v1553_v49 }
 0x1f0   : > { %v3314_v52 = vpop.eup %3313  ;;  %v1511_v53 = vsub.f32 1.5, %v1510_v50 }
 0x1f1   : > { %v1555_v54 = vmul.f32 %v3310_v42, %v1554_v51  ;;  %v1561_v55 = vmul.f32 %v3314_v52, %v1549_v43  ;;  %vm1567_vm8 = vweird.f32 %v3314_v52 }
 0x1f2   : > { %v1512_v56 = vmul.f32 %v3312_v44, %v1511_v53  ;;  %vm1568_vm10 = vmor %vm1566_vm9, %vm1567_vm8 }
 0x1f3   : > { %v1562_v57 = vmul.f32 %v3314_v52, %v1561_v55  ;;  %v1559_v60 = vsel %vm1558_vm7, %v3310_v42, %v1555_v54 }
 0x1f4   : > { %v1516_v59 = vsel %vm1515_vm5, %v3312_v44, %v1512_v56  ;;  %v1570_v2 = vmul.f32 %v1559_v60, %v4139_v19  ;;  %v3089_v60 = vld [vmem:[%s4364_s1 + $0x8] sm:$0xff] }
 0x1f5   : > { %v1563_v61 = vmul.f32 0.5, %v1562_v57  ;;  %v1517_v62 = vmul.f32 %v1516_v59, %v1500_v20  ;;  %v3090_v59 = vld [vmem:[%s4363_s25] sm:$0xff] }
 0x1f6   : > { %v1575_v9 = vmul.f32 %v3285_v3, %v1570_v2 }
 0x1f7   : > { %v1564_v0 = vsub.f32 1.5, %v1563_v61  ;;  %v1521_v1 = vmul.f32 %v3287_v58, %v1517_v62  ;;  %v3091_v58 = vld [vmem:[%s4363_s25 + $0x8] sm:$0xff] }
 0x1f8   : > { %v1580_v12 = vadd.f32 %v3286_v10, %v1575_v9 }
 0x1f9   : > { %v1565_v4 = vmul.f32 %v3314_v52, %v1564_v0  ;;  %v4154_v5 = vadd.f32 %v3288_v63, %v1521_v1 }
 0x1fb   : > { %v1569_v6 = vsel %vm1568_vm10, %v3314_v52, %v1565_v4  ;;  %v4158_v7 = vpack.c.bf16 %v4154_v5, %v4154_v5  ;;  %vm2635_vm10 = vcmask 257024  }
 0x1fc   : > { %v1571_v8 = vmul.f32 %v1569_v6, %v1537_v27  ;;  %v3088_v6 = vld [vmem:[%s4364_s1] sm:$0xff] }
 0x1fd   : > { %2927 = vmatmul.msk.bf16.vlgmr.msra.gmra.mxu1 %vm1488_vm0, %v4158_v7 }
 0x1fe   : > { %v1576_v11 = vmul.f32 %v3285_v3, %v1571_v8 }
 0x200   : > { %v1581_v13 = vadd.f32 %v3286_v10, %v1576_v11 }
 0x202   : > { %v1586_v14 = vpack.c.bf16 %v1581_v13, %v1580_v12 }
 0x204   : > { %2918 = vmatmul.msk.bf16.vlgmr.msra.gmra.mxu0 %vm1488_vm0, %v1586_v14 }
 0x27a   : > { %v1653_v18 = vpop.f32.mrf.mxu1 }
 0x27b   : > { %v1654_v19 = vadd.f32 %v3290_v17, %v1653_v18  ;;  %v3092_v17 = vld [vmem:[%s4365_s22] sm:$0xff] }
 0x27c   : > { %v3292_v18 = vld [vmem:[%s4366_s16] ss:$0 sm:$0xff]  ;;  %s4371_s16 = sld [smem:[#allocation42_spill]] }
 0x27d   : > { %v1699_v20 = vpack.c.bf16 %v1654_v19, %v1654_v19 }
 0x27f   : > { %1756 = vrot.lane.b32.xlu1 %v1699_v20, %s4322_s15 }
 0x281   : > { %v1615_v21 = vpop.f32.mrf.mxu0 }
 0x282   : > { %v1655_v22 = vpop.f32.mrf.mxu1  ;;  %v1616_v25 = vadd.f32 %v3289_v23, %v1615_v21 }
 0x289   : > { %v1617_v24 = vpop.f32.mrf.mxu0 }
 0x28a   : > { %v1618_v26 = vadd.f32 %v3289_v23, %v1617_v24 }
 0x28c   : > { %v1661_v27 = vpack.c.bf16 %v1618_v26, %v1616_v25  ;;  %v3293_v25 = vld [vmem:[%s4367_s0] ss:$0 sm:$0xff]  ;;  %s4372_s0 = sld [smem:[#allocation24_spill]] }
 0x28e   : > { %2936 = vmatmul.msk.bf16.vlgmr.msra.gmra.mxu2 %vm1488_vm0, %v1661_v27 }
 0x2f1   : > { %v1757_v35 = vpop.permute.xlu1 %1756 }
 0x311   : > { %v1690_v28 = vpop.f32.mrf.mxu2 }
 0x312   : > { %v1691_v31 = vadd.f32 %v3291_v29, %v1690_v28 }
 0x319   : > { %v1692_v30 = vpop.f32.mrf.mxu2 }
 0x31a   : > { %v1693_v32 = vadd.f32 %v3291_v29, %v1692_v30 }
 0x31c   : > { %v1700_v33 = vpack.c.bf16 %v1693_v32, %v1691_v31  ;;  %v3734_v31 = vmov 64.0  }
 0x31e   : > { %1758 = vrot.lane.b32.xlu0 %v1700_v33, %s4322_s15  ;;  %1735 = vrot.lane.b32.xlu1 %v1700_v33, %s4325_s28  ;;  %v1706_v34 = vsel %vm1701_vm11, %v1700_v33, 0  ;;  %s4373_s15 = sld [smem:[#allocation41_spill]] }
 0x31f   : > { %1715 = vmatpush.bf16.xpose.msra.mxu3 %v1706_v34 }
 0x326   : > { %1792 = vrot.lane.b32.xlu0 %v1700_v33, %s4323_s23  ;;  %2937 = vmatmul.msk.bf16.vlgmr.msra.gmra.mxu3 %vm1701_vm11, %v1699_v20  ;;  %s4374_s23 = sld [smem:[#allocation26_spill]] }
 0x327   : > { %1828 = vmatpush.bf16.msrb.mxu3 %v3089_v60 }
 0x390   : > { %v1759_v36 = vpop.permute.xlu0 %1758  ;;  %v1736_v37 = vpop.permute.xlu1 %1735 }
 0x391   : > { %1748 = vmatpush.bf16.msrb.mxu0 %v1736_v37  ;;  %v1764_v38 = vsel %vm1701_vm11, %v1759_v36, 0 }
 0x392   : > { %1773 = vmatpush.bf16.xpose.msrb.mxu1 %v1764_v38 }
 0x395   : > { %1850 = vmatpush.bf16.msra.mxu0 %v3088_v6 }
 0x398   : > { %v1793_v39 = vpop.permute.xlu0 %1792 }
 0x399   : > { %2939 = vmatmul.msk.bf16.vlgmr.msrb.gmra.mxu1 %vm1701_vm11, %v1757_v35  ;;  %1805 = vmatpush.bf16.msrb.mxu2 %v1793_v39 }
 0x39a   : > { %1903 = vmatpush.bf16.msra.mxu1 %v3093_v16 }
 0x39d   : > { %1928 = vmatpush.bf16.msra.mxu2 %v3091_v58  ;;  %v3295_v58 = vld [vmem:[%s4370_s11] ss:$0 sm:$0xff]  ;;  %s3735_s11 = smov 32  }
 0x39e   : > { %1904 = vmatpush.bf16.msra.mxu1 %v3092_v17 }
 0x3a1   : > { %1929 = vmatpush.bf16.msra.mxu2 %v3090_v59 }
 0x3a9   : > { %v1717_v40 = vpop.f32.mrf.mxu3 }
 0x3aa   : > { %v1721_v45 = vmul.f32 0.25, %v1717_v40 }
 0x3ac   : > { %v1722_v47 = vsel %vm1701_vm11, %v1721_v45, -inf }
 0x3b1   : > { %v1719_v41 = vpop.f32.mrf.mxu3 }
 0x416   : > { %v1775_v42 = vpop.f32.mrf.mxu1 }
 0x417   : > { %v1779_v43 = vmul.f32 0.25, %v1775_v42 }
 0x419   : > { %v1780_v44 = vsel %vm1701_vm11, %v1779_v43, -inf }
 0x41a   : > { %1781 = vmax.xlane.f32.xlu2 %v1780_v44  ;;  %v3096_v44 = vld [vmem:[%s4368_s26 + $0x10] sm:$0xff] }
 0x41e   : > { %v1777_v46 = vpop.f32.mrf.mxu1 }
 0x422   : > { %1723 = vmax.xlane.f32.xlu2 %v1722_v47  ;;  %v3095_v47 = vld [vmem:[%s4368_s26 + $0x8] sm:$0xff] }
 0x48d   : > { %v1782_v48 = vpop.xlane.xlu2 %1781 }
 0x48e   : > { %v1783_v49 = vsub.f32 %v1779_v43, %v1782_v48  ;;  %v3097_v43 = vld [vmem:[%s4368_s26 + $0x18] sm:$0xff] }
 0x48f   : > { %2018 = vmatpush.bf16.msra.mxu3 %v3097_v43 }
 0x490   : > { %v1784_v50 = vmul.f32 1.442695, %v1783_v49  ;;  %v3094_v49 = vld [vmem:[%s4368_s26] sm:$0xff] }
 0x492   : > { %3315 = vpow2.f32 %v1784_v50 }
 0x493   : > { %2019 = vmatpush.bf16.msra.mxu3 %v3096_v44 }
 0x495   : > { %v1724_v51 = vpop.xlane.xlu2 %1723 }
 0x496   : > { %v1725_v52 = vsub.f32 %v1721_v45, %v1724_v51 }
 0x497   : > { %2020 = vmatpush.bf16.msra.mxu3 %v3095_v47 }
 0x498   : > { %v3316_v53 = vpop.eup %3315  ;;  %v1726_v54 = vmul.f32 1.442695, %v1725_v52 }
 0x499   : > { %v1786_v55 = vsel %vm1701_vm11, %v3316_v53, 0.0 }
 0x49a   : > { %3317 = vpow2.f32 %v1726_v54  ;;  %1787 = vadd.xlane.f32.xlu2 %v1786_v55 }
 0x49b   : > { %2021 = vmatpush.bf16.msra.mxu3 %v3094_v49 }
 0x4a0   : > { %v3318_v56 = vpop.eup %3317 }
 0x4a1   : > { %v1728_v57 = vsel %vm1701_vm11, %v3318_v56, 0.0 }
 0x4a2   : > { %1729 = vadd.xlane.f32.xlu2 %v1728_v57 }
 0x50d   : > { %v1788_v61 = vpop.xlane.xlu2 %1787 }
 0x50e   : > { %3319 = vrcp.f32 %v1788_v61 }
 0x514   : > { %v3320_v62 = vpop.eup %3319 }
 0x515   : > { %v1790_v63 = vmul.f32 %v3320_v62, %v3316_v53  ;;  %v1730_v0 = vpop.xlane.xlu2 %1729 }
 0x516   : > { %3321 = vrcp.f32 %v1730_v0 }
 0x517   : > { %v1791_v1 = vpack.c.bf16 %v1790_v63, %v1790_v63  ;;  %3323 = vrcp.f32 %v3734_v31 }
 0x519   : > { %2940 = vmatmul.msk.bf16.vlgmr.msrb.gmra.mxu2 %vm1701_vm11, %v1791_v1 }
 0x51c   : > { %v3322_v2 = vpop.eup %3321 }
 0x51d   : > { %v1732_v3 = vmul.f32 %v3322_v2, %v3318_v56  ;;  %v3324_v32 = vpop.eup %3323  ;;  %v3294_v56 = vld [vmem:[%s4369_s10] ss:$0 sm:$0xff]  ;;  %s1466_s10 = scalar_lea.vmem %s4372_s0, %s4128_s18  ;;  %s4375_s0 = sld [smem:[#allocation25_spill]] }
 0x51e   : > { %v1944_v33 = vmul.f32 64.0, %v3324_v32  ;;  %vm1948_vm13 = vweird.f32 %v3324_v32 }
 0x51f   : > { %v1733_v4 = vpack.c.bf16 %v1732_v3, %v1732_v3 }
 0x520   : > { %v1945_v34 = vsub.f32 1.0, %v1944_v33 }
 0x521   : > { %2938 = vmatmul.msk.bf16.vlgmr.msrb.gmra.mxu0 %vm1701_vm11, %v1733_v4 }
 0x522   : > { %v1946_v35 = vmul.f32 %v3324_v32, %v1945_v34 }
 0x523   : > { %s1470_s1 = scalar_lea.vmem %s4375_s0, %s4128_s18  ;;  %s4378_s0 = smov 112  }
 0x524   : > { %v1947_v36 = vadd.f32 %v3324_v32, %v1946_v35 }
 0x526   : > { %v4198_v37 = vsel %vm1948_vm13, %v3324_v32, %v1947_v36 }
 0x529   : > { %2968 = vmatmul.msk.bf16.vlgmr.msra.gmra.mxu2 %vm1488_vm0, %v4158_v7 }
 0x59c   : > { %v1807_v8 = vpop.f32.mrf.mxu2 }
 0x59d   : > { %v1811_v9 = vpack.c.bf16 %v1807_v8, %v1807_v8 }
 0x59e   : > { %v1750_v10 = vpop.f32.mrf.mxu0 }
 0x59f   : > { %v1754_v11 = vpack.c.bf16 %v1750_v10, %v1750_v10  ;;  %2945 = vmatmul.msk.bf16.vlgmr.msrb.gmra.mxu3 %vm1701_vm11, %v1811_v9  ;;  %v3099_v10 = vld [vmem:[%s4371_s16 + $0x8] sm:$0xff] }
 0x5a0   : > { %2068 = vmatpush.bf16.msrb.mxu0 %v3099_v10 }
 0x5a1   : > { %2950 = vmatmul.msk.bf16.vlgmr.msra.gmra.mxu0 %vm1701_vm11, %v1754_v11  ;;  %v3098_v11 = vld [vmem:[%s4371_s16] sm:$0xff] }
 0x5a4   : > { %v1809_v12 = vpop.f32.mrf.mxu2  ;;  %2069 = vmatpush.bf16.msrb.mxu0 %v3098_v11 }
 0x5a5   : > { %v4214_v12 = vld [vmem:[%s1466_s10] sm:$0xf]  ;;  %s3736_s10 = smov 31  }
 0x5a6   : > { %v1752_v13 = vpop.f32.mrf.mxu0 }
 0x5a7   : > { %v2033_v13 = vunpack.c.l.bf16 %v4214_v12 }
 0x5ac   : > { %v1931_v14 = vpop.f32.mrf.mxu2 }
 0x5b4   : > { %v1933_v15 = vpop.f32.mrf.mxu2 }
 0x61e   : > { %v1852_v7 = vpop.f32.mrf.mxu0 }
 0x622   : > { %v1830_v19 = vpop.f32.mrf.mxu3 }
 0x623   : > { %v1853_v20 = vadd.f32 %v1852_v7, %v1830_v19  ;;  %v3297_v19 = vld [vmem:[#allocation2] ss:$0 sm:$0xff] }
 0x625   : > { %v1860_v21 = vadd.f32 %v3292_v18, %v1853_v20 }
 0x626   : > { %v1854_v22 = vpop.f32.mrf.mxu0 }
 0x627   : > { %v1881_v23 = vpack.c.bf16 %v1860_v21, %v1860_v21 }
 0x629   : > { %2959 = vmatmul.msk.bf16.vlgmr.msra.gmra.mxu1 %vm1488_vm0, %v1881_v23 }
 0x62a   : > { %v1832_v24 = vpop.f32.mrf.mxu3 }
 0x6a6   : > { %v1906_v26 = vpop.f32.mrf.mxu1 }
 0x6a7   : > { %v1932_v27 = vadd.f32 %v1931_v14, %v1906_v26  ;;  %v3296_v14 = vld [vmem:[%s4373_s15] ss:$0 sm:$0xff]  ;;  %s1474_s15 = scalar_lea.vmem %s4374_s23, %s4128_s18  ;;  %s3738_s23 = smov 127  }
 0x6a8   : > { %v2036_v23 = vld [vmem:[%s1474_s15] sm:$0xf]  ;;  %s3740_s15 = smov 64  }
 0x6a9   : > { %v1938_v28 = vadd.f32 %v3293_v25, %v1932_v27  ;;  %v2037_v24 = vunpack.c.l.bf16 %v2036_v23  ;;  %v2034_v27 = vld [vmem:[%s1470_s1] sm:$0xf]  ;;  %s3739_s1 = smov 97  }
 0x6ab   : > { %v1940_v29 = vsel %vm1939_vm12, %v1938_v28, 0.0 }
 0x6ac   : > { %1941 = vadd.xlane.f32.xlu0 %v1940_v29 }
 0x6ae   : > { %v1908_v30 = vpop.f32.mrf.mxu1 }
 0x6c0   : > { %2104 = vrot.lane.b32.xlu0 %v2033_v13, %s3735_s11 }
 0x71f   : > { %v1942_v38 = vpop.xlane.xlu0 %1941 }
 0x720   : > { %v1950_v39 = vmul.f32 %v4198_v37, %v1942_v38 }
 0x722   : > { %v1951_v40 = vsub.f32 %v1938_v28, %v1950_v39  ;;  %v2035_v28 = vunpack.c.l.bf16 %v2034_v27 }
 0x724   : > { %v1952_v41 = vmul.f32 %v1951_v40, %v1951_v40 }
 0x726   : > { %v1953_v42 = vsel %vm1939_vm12, %v1952_v41, 0.0 }
 0x727   : > { %1954 = vadd.xlane.f32.xlu2 %v1953_v42 }
 0x732   : > { %v2105_v42 = vpop.permute.xlu0 %2104 }
 0x79a   : > { %v1955_v45 = vpop.xlane.xlu2 %1954 }
 0x79b   : > { %v1956_v46 = vmul.f32 %v1955_v45, %v4198_v37 }
 0x79d   : > { %v1957_v48 = vadd.f32 1e-05, %v1956_v46 }
 0x79f   : > { %3325 = vrsqrt.f32 %v1957_v48  ;;  %vm1964_vm15 = vweird.f32 %v1957_v48 }
 0x7a5   : > { %v3326_v50 = vpop.eup %3325 }
 0x7a6   : > { %v1959_v51 = vmul.f32 %v3326_v50, %v1957_v48  ;;  %vm1965_vm14 = vweird.f32 %v3326_v50 }
 0x7a7   : > { %vm1966_vm1 = vmor %vm1964_vm15, %vm1965_vm14 }
 0x7a8   : > { %v1960_v52 = vmul.f32 %v3326_v50, %v1959_v51 }
 0x7aa   : > { %v1961_v53 = vmul.f32 0.5, %v1960_v52 }
 0x7ac   : > { %v1962_v54 = vsub.f32 1.5, %v1961_v53 }
 0x7ae   : > { %v1963_v55 = vmul.f32 %v3326_v50, %v1962_v54 }
 0x7b0   : > { %v1967_v57 = vsel %vm1966_vm1, %v3326_v50, %v1963_v55 }
 0x7b1   : > { %v1968_v59 = vmul.f32 %v1967_v57, %v1951_v40 }
 0x7b3   : > { %v1972_v60 = vmul.f32 %v3294_v56, %v1968_v59 }
 0x7b5   : > { %v1976_v61 = vadd.f32 %v3295_v58, %v1972_v60 }
 0x7b7   : > { %v1978_v62 = vmul.f32 0.044715, %v1976_v61  ;;  %v1977_v4 = vmul.f32 0.5, %v1976_v61 }
 0x7b9   : > { %v1979_v63 = vmul.f32 %v1978_v62, %v1976_v61 }
 0x7bb   : > { %v1980_v0 = vmul.f32 %v1979_v63, %v1976_v61 }
 0x7bd   : > { %v1981_v1 = vadd.f32 %v1980_v0, %v1976_v61 }
 0x7bf   : > { %v1982_v2 = vmul.f32 0.7978846, %v1981_v1 }
 0x7c1   : > { %3327 = vtanh.f32 %v1982_v2 }
 0x7c7   : > { %v3328_v3 = vpop.eup %3327 }
 0x7c8   : > { %v1984_v6 = vadd.f32 1.0, %v3328_v3 }
 0x7ca   : > { %v1985_v8 = vmul.f32 %v1984_v6, %v1977_v4 }
 0x7cc   : > { %v1986_v9 = vpack.c.bf16 %v1985_v8, %v1985_v8 }
 0x7ce   : > { %2985 = vmatmul.msk.bf16.vlgmr.msra.gmra.mxu3 %vm1939_vm12, %v1986_v9 }
 0x851   : > { %v2023_v15 = vpop.f32.mrf.mxu3 }
 0x852   : > { %v2027_v16 = vadd.f32 %v2023_v15, %v4154_v5 }
 0x854   : > { %v4220_v17 = vadd.f32 %v3296_v14, %v2027_v16 }
 0x856   : > { %v4224_v7 = vpack.c.bf16 %v4220_v17, %v4220_v17 }
 0x858   : > { %2994 = vmatmul.msk.bf16.vlgmr.msrb.gmra.mxu0 %vm1488_vm0, %v4224_v7 }
 0x859   : > { %v2025_v18 = vpop.f32.mrf.mxu3 }
 0x8d5   : > { %v2071_v20 = vpop.f32.mrf.mxu0 }
 0x8d6   : > { %v4228_v21 = vadd.f32 %v3297_v19, %v2071_v20 }
 0x8d8   : > { %2109 = vrot.lane.b32.xlu1 %v4228_v21, %s4325_s28  ;;  %s3737_s28 = smov 1   ;;  %v2107_v44 = vmul.f32 %v2105_v42, %v4228_v21  ;;  %v2075_v50 = vmul.f32 %v4228_v21, %v2033_v13  ;;  %v2172_v0 = vpack.c.bf16 %v4228_v21, %v4228_v21 }
 0x8dd   : > { %v2073_v5 = vpop.f32.mrf.mxu0 }
 0x8e0   : > { %2077 = vrot.lane.b32.xlu1 %v4228_v21, %s3735_s11 }
 0x94a   : > { %v2110_v22 = vpop.permute.xlu1 %2109 }
 0x94b   : > { %2112 = vrot.lane.b32.xlu2 %v2110_v22, %s3735_s11 }
 0x952   : > { %v2078_v29 = vpop.permute.xlu1 %2077 }
 0x953   : > { %2094 = vrot.lane.b32.xlu2 %v2037_v24, %s3736_s10  ;;  %v2079_v30 = vsel %vm2076_vm2, %v2078_v29, %v4228_v21 }
 0x9a5   : > { %v2113_v25 = vpop.permute.xlu2 %2112 }
 0x9a6   : > { %v2114_v26 = vsel %vm2076_vm2, %v2113_v25, %v2110_v22 }
 0x9a7   : > { %2115 = vrot.lane.b32.xlu1 %v2114_v26, %s3735_s11 }
 0x9ad   : > { %v2095_v31 = vpop.permute.xlu2 %2094 }
 0x9af   : > { %2084 = vrot.lane.b32.xlu1 %v2035_v28, %s3737_s28 }
 0x9b7   : > { %2080 = vrot.lane.b32.xlu1 %v2079_v30, %s3735_s11  ;;  %s4377_s11 = smov 96  }
 0xa19   : > { %v2116_v32 = vpop.permute.xlu1 %2115 }
 0xa1a   : > { %v2117_v33 = vsel %vm2076_vm2, %v2116_v32, %v2110_v22 }
 0xa1b   : > { %v2124_v34 = vmul.f32 %v2117_v33, %v2095_v31 }
 0xa1d   : > { %2126 = vrot.lane.b32.xlu1 %v2124_v34, %s3737_s28  ;;  %s4376_s28 = smov 80  }
 0xa21   : > { %v2085_v35 = vpop.permute.xlu1 %2084 }
 0xa22   : > { %v2118_v36 = vmul.f32 %v2117_v33, %v2085_v35 }
 0xa24   : > { %2120 = vrot.lane.b32.xlu2 %v2118_v36, %s3736_s10  ;;  %s4379_s10 = sld [smem:[#allocation44_spill]] }
 0xa29   : > { %v2081_v38 = vpop.permute.xlu1 %2080 }
 0xa2a   : > { %v2082_v39 = vsel %vm2076_vm2, %v2081_v38, %v4228_v21  ;;  %v3103_v23 = vld [vmem:[%s4379_s10 + $0x8] sm:$0xff]  ;;  %v3102_v26 = vld [vmem:[%s4379_s10] sm:$0xff] }
 0xa2b   : > { %v2087_v40 = vmul.f32 %v2085_v35, %v2082_v39  ;;  %v2097_v41 = vmul.f32 %v2095_v31, %v2082_v39 }
 0xa2d   : > { %2089 = vrot.lane.b32.xlu2 %v2087_v40, %s3738_s23  ;;  %2099 = vrot.lane.b32.xlu1 %v2097_v41, %s3739_s1  ;;  %s3741_s23 = smov 48   ;;  %s4380_s1 = sld [smem:[#allocation43_spill]] }
 0xa33   : > { %v3100_v31 = vld [vmem:[%s4380_s1] sm:$0xff]  ;;  %v3101_v32 = vld [vmem:[%s4380_s1 + $0x8] sm:$0xff] }
 0xa7e   : > { %v2121_v43 = vpop.permute.xlu2 %2120 }
 0xa7f   : > { %v2123_v45 = vadd.f32 %v2121_v43, %v2107_v44 }
 0xa87   : > { %v2090_v49 = vpop.permute.xlu2 %2089 }
 0xa88   : > { %v2092_v51 = vadd.f32 %v2090_v49, %v2075_v50 }
 0xa8f   : > { %v2127_v46 = vpop.permute.xlu1 %2126 }
 0xa90   : > { %v2129_v47 = vadd.f32 %v2127_v46, %v2123_v45  ;;  %v3298_v45 = vld [vmem:[#allocation4] ss:$0 sm:$0xff] }
 0xa92   : > { %v2135_v48 = vpack.c.bf16 %v2129_v47, %v2129_v47 }
 0xa94   : > { %2200 = vrot.lane.b32.xlu1 %v2135_v48, %s4376_s28  ;;  %2137 = vrot.lane.b32.xlu2 %v2135_v48, %s4377_s11  ;;  %s4381_s28 = sld [smem:[#allocation45_spill]] }
 0xa95   : > { %s4382_s11 = sld [smem:[#allocation46_spill]] }
 0xa9a   : > { %v3105_v42 = vld [vmem:[%s4381_s28 + $0x8] sm:$0xff] }
 0xa9f   : > { %v2100_v52 = vpop.permute.xlu1 %2099 }
 0xaa0   : > { %v2102_v53 = vadd.f32 %v2100_v52, %v2092_v51  ;;  %v3299_v51 = vld [vmem:[#allocation6] ss:$0 sm:$0xff] }
 0xaa2   : > { %v2134_v54 = vpack.c.bf16 %v2102_v53, %v2102_v53 }
 0xaa4   : > { %2198 = vrot.lane.b32.xlu0 %v2134_v54, %s4378_s0  ;;  %s4383_s0 = sld [smem:[#allocation48_spill]] }
 0xaee   : > { %v2138_v55 = vpop.permute.xlu2 %2137 }
 0xaef   : > { %v2143_v56 = vsel %vm1701_vm11, %v2138_v55, 0 }
 0xaf0   : > { %2152 = vmatpush.bf16.xpose.msrb.mxu1 %v2143_v56 }
 0xaf7   : > { %2995 = vmatmul.msk.bf16.vlgmr.msrb.gmra.mxu1 %vm1701_vm11, %v2134_v54 }
 0xaf8   : > { %2272 = vmatpush.bf16.msra.mxu1 %v3101_v32  ;;  %v3345_v32 = vld [vmem:[%s4133_s2] sm:$0xf]  ;;  %s4386_s2 = sld [smem:[#allocation49_spill]] }
 0xb06   : > { %v2201_v57 = vpop.permute.xlu1 %2200 }
 0xb07   : > { %v2206_v58 = vsel %vm1701_vm11, %v2201_v57, 0 }
 0xb08   : > { %2215 = vmatpush.bf16.xpose.msrb.mxu3 %v2206_v58 }
 0xb10   : > { %2347 = vmatpush.bf16.msra.mxu3 %v3105_v42 }
 0xb16   : > { %v2199_v59 = vpop.permute.xlu0 %2198 }
 0xb17   : > { %2997 = vmatmul.msk.bf16.vlgmr.msrb.gmra.mxu3 %vm1701_vm11, %v2199_v59 }
 0xb74   : > { %v2154_v60 = vpop.f32.mrf.mxu1 }
 0xb75   : > { %v2158_v61 = vmul.f32 0.25, %v2154_v60 }
 0xb77   : > { %v2160_v62 = vsel %vm2159_vm3, %v2158_v61, -inf }
 0xb78   : > { %2161 = vmax.xlane.f32.xlu2 %v2160_v62  ;;  %v3109_v62 = vld [vmem:[%s4382_s11 + $0x18] sm:$0xff] }
 0xb79   : > { %2454 = vmatpush.bf16.msrb.mxu1 %v3109_v62 }
 0xb7c   : > { %v2156_v63 = vpop.f32.mrf.mxu1 }
 0xb7d   : > { %v3108_v63 = vld [vmem:[%s4382_s11 + $0x10] sm:$0xff] }
 0xb7e   : > { %2455 = vmatpush.bf16.msrb.mxu1 %v3108_v63 }
 0xb90   : > { %2174 = vrot.lane.b32.xlu2 %v2172_v0, %s3740_s15  ;;  %s4384_s15 = sld [smem:[#allocation47_spill]] }
 0xb9a   : > { %v2217_v1 = vpop.f32.mrf.mxu3 }
 0xb9b   : > { %v2221_v2 = vmul.f32 0.25, %v2217_v1 }
 0xb9d   : > { %v2222_v3 = vsel %vm2159_vm3, %v2221_v2, -inf }
 0xb9e   : > { %2223 = vmax.xlane.f32.xlu1 %v2222_v3 }
 0xba2   : > { %v2219_v4 = vpop.f32.mrf.mxu3 }
 0xba3   : > { %v3106_v4 = vld [vmem:[%s4382_s11] sm:$0xff] }
 0xbeb   : > { %v2162_v6 = vpop.xlane.xlu2 %2161 }
 0xbec   : > { %v2163_v8 = vsub.f32 %v2158_v61, %v2162_v6 }
 0xbee   : > { %v2164_v9 = vmul.f32 1.442695, %v2163_v8 }
 0xbf0   : > { %3329 = vpow2.f32 %v2164_v9 }
 0xbf3   : > { %v2175_v10 = vpop.permute.xlu2 %2174 }
 0xbf4   : > { %v2181_v11 = vsel %vm2179_vm4, %v2175_v10, 0 }
 0xbf5   : > { %2190 = vmatpush.bf16.msrb.mxu2 %v2181_v11 }
 0xbf6   : > { %v3330_v12 = vpop.eup %3329 }
 0xbf7   : > { %v2166_v13 = vsel %vm2159_vm3, %v3330_v12, 0.0 }
 0xbf8   : > { %2167 = vadd.xlane.f32.xlu0 %v2166_v13  ;;  %v3300_v13 = vld [vmem:[#allocation7] ss:$0 sm:$0xff] }
 0xbf9   : > { %2294 = vmatpush.bf16.msra.mxu2 %v3100_v31  ;;  %v3111_v31 = vld [vmem:[%s4384_s15 + $0x8] sm:$0xff] }
 0xc0c   : > { %2234 = vrot.lane.b32.xlu0 %v2172_v0, %s3741_s23  ;;  %s4385_s23 = smov %s4384_s15  ;;  %s1478_s15 = scalar_lea.vmem %s4386_s2, %s4128_s18 }
 0xc11   : > { %v2224_v14 = vpop.xlane.xlu1 %2223 }
 0xc12   : > { %v2225_v15 = vsub.f32 %v2221_v2, %v2224_v14  ;;  %v3107_v2 = vld [vmem:[%s4382_s11 + $0x8] sm:$0xff] }
 0xc13   : > { %2456 = vmatpush.bf16.msrb.mxu1 %v3107_v2 }
 0xc14   : > { %v2226_v16 = vmul.f32 1.442695, %v2225_v15  ;;  %v3301_v15 = vld [vmem:[#allocation9] ss:$0 sm:$0xff] }
 0xc16   : > { %3331 = vpow2.f32 %v2226_v16 }
 0xc17   : > { %2457 = vmatpush.bf16.msrb.mxu1 %v3106_v4 }
 0xc1c   : > { %v3332_v18 = vpop.eup %3331 }
 0xc1d   : > { %v2228_v19 = vsel %vm2159_vm3, %v3332_v18, 0.0 }
 0xc1e   : > { %2229 = vadd.xlane.f32.xlu1 %v2228_v19 }
 0xc6b   : > { %v2168_v20 = vpop.xlane.xlu0 %2167 }
 0xc6c   : > { %3333 = vrcp.f32 %v2168_v20 }
 0xc72   : > { %v3334_v21 = vpop.eup %3333 }
 0xc73   : > { %v2170_v5 = vmul.f32 %v3334_v21, %v3330_v12 }
 0xc75   : > { %v2171_v22 = vpack.c.bf16 %v2170_v5, %v2170_v5 }
 0xc77   : > { %2996 = vmatmul.msk.bf16.vlgmr.msrb.gmra.mxu2 %vm2159_vm3, %v2171_v22 }
 0xc7e   : > { %v2235_v24 = vpop.permute.xlu0 %2234 }
 0xc7f   : > { %v2240_v25 = vsel %vm2179_vm4, %v2235_v24, 0 }
 0xc80   : > { %2249 = vmatpush.bf16.msra.mxu0 %v2240_v25 }
 0xc84   : > { %2372 = vmatpush.bf16.msrb.mxu0 %v3103_v23 }
 0xc88   : > { %2373 = vmatpush.bf16.msrb.mxu0 %v3102_v26 }
 0xc91   : > { %v2230_v27 = vpop.xlane.xlu1 %2229 }
 0xc92   : > { %3335 = vrcp.f32 %v2230_v27 }
 0xc98   : > { %v3336_v28 = vpop.eup %3335 }
 0xc99   : > { %v2232_v29 = vmul.f32 %v3336_v28, %v3332_v18 }
 0xc9b   : > { %v2233_v30 = vpack.c.bf16 %v2232_v29, %v2232_v29  ;;  %v3113_v29 = vld [vmem:[%s4383_s0 + $0x8] sm:$0xff] }
 0xc9c   : > { %2510 = vmatpush.bf16.msrb.mxu2 %v3113_v29 }
 0xc9d   : > { %2998 = vmatmul.msk.bf16.vlgmr.msra.gmra.mxu0 %vm2159_vm3, %v2233_v30  ;;  %v3112_v30 = vld [vmem:[%s4383_s0] sm:$0xff] }
 0xca0   : > { %2511 = vmatpush.bf16.msrb.mxu2 %v3112_v30 }
 0xcad   : > { %3026 = vmatmul.msk.bf16.vlgmr.msrb.gmra.mxu0 %vm1488_vm0, %v4224_v7  ;;  %v3104_v7 = vld [vmem:[%s4381_s28] sm:$0xff] }
 0xcae   : > { %2348 = vmatpush.bf16.msra.mxu3 %v3104_v7  ;;  %v3303_v7 = vld [vmem:[#allocation12] ss:$0 sm:$0xff] }
 0xcb2   : > { %2538 = vmatpush.bf16.msrb.mxu3 %v3111_v31 }
 0xcfa   : > { %v2192_v33 = vpop.f32.mrf.mxu2 }
 0xcfb   : > { %v2196_v34 = vpack.c.bf16 %v2192_v33, %v2192_v33  ;;  %v3110_v33 = vld [vmem:[%s4385_s23] sm:$0xff] }
 0xcfc   : > { %2539 = vmatpush.bf16.msrb.mxu3 %v3110_v33 }
 0xcfd   : > { %3008 = vmatmul.msk.bf16.vlgmr.msra.gmra.mxu2 %vm1701_vm11, %v2196_v34  ;;  %v3302_v34 = vld [vmem:[#allocation10] ss:$0 sm:$0xff] }
 0xd02   : > { %v2194_v35 = vpop.f32.mrf.mxu2 }
 0xd0d   : > { %3052 = vmatmul.msk.bf16.vlgmr.msrb.gmra.mxu2 %vm1488_vm0, %v3345_v32 }
 0xd1a   : > { %v2251_v36 = vpop.f32.mrf.mxu0 }
 0xd1b   : > { %v2255_v38 = vpack.c.bf16 %v2251_v36, %v2251_v36 }
 0xd1d   : > { %3003 = vmatmul.msk.bf16.vlgmr.msra.gmra.mxu1 %vm1701_vm11, %v2255_v38 }
 0xd22   : > { %v2253_v39 = vpop.f32.mrf.mxu0 }
 0xd2a   : > { %v2375_v40 = vpop.f32.mrf.mxu0 }
 0xd32   : > { %v2377_v41 = vpop.f32.mrf.mxu0 }
 0xd80   : > { %v2296_v43 = vpop.f32.mrf.mxu2 }
 0xd88   : > { %v2298_v44 = vpop.f32.mrf.mxu2 }
 0xd90   : > { %v2513_v41 = vpop.f32.mrf.mxu2 }
 0xd98   : > { %v2515_v42 = vpop.f32.mrf.mxu2 }
 0xd9a   : > { %v2274_v46 = vpop.f32.mrf.mxu1 }
 0xd9b   : > { %v2297_v47 = vadd.f32 %v2296_v43, %v2274_v46 }
 0xd9d   : > { %v2304_v48 = vadd.f32 %v3298_v45, %v2297_v47 }
 0xd9f   : > { %v2325_v49 = vpack.c.bf16 %v2304_v48, %v2304_v48 }
 0xda1   : > { %3017 = vmatmul.msk.bf16.vlgmr.msra.gmra.mxu3 %vm1488_vm0, %v2325_v49 }
 0xda2   : > { %v2276_v50 = vpop.f32.mrf.mxu1 }
 0xe24   : > { %v2350_v52 = vpop.f32.mrf.mxu3 }
 0xe25   : > { %v2376_v53 = vadd.f32 %v2375_v40, %v2350_v52  ;;  %v3117_v52 = vld [vmem:[%s3950_s30 + $0x18] sm:$0xff] }
 0xe26   : > { %2620 = vmatpush.bf16.msra.mxu0 %v3117_v52 }
 0xe27   : > { %v2382_v54 = vadd.f32 %v3299_v51, %v2376_v53  ;;  %v3116_v53 = vld [vmem:[%s3950_s30 + $0x10] sm:$0xff] }
 0xe29   : > { %v2383_v55 = vsel %vm1939_vm12, %v2382_v54, 0.0 }
 0xe2a   : > { %2384 = vadd.xlane.f32.xlu1 %v2383_v55  ;;  %2621 = vmatpush.bf16.msra.mxu0 %v3116_v53 }
 0xe2c   : > { %v2352_v56 = vpop.f32.mrf.mxu3 }
 0xe2d   : > { %v3115_v56 = vld [vmem:[%s3950_s30 + $0x8] sm:$0xff] }
 0xe2e   : > { %2622 = vmatpush.bf16.msra.mxu0 %v3115_v56 }
 0xe9d   : > { %v2385_v57 = vpop.xlane.xlu1 %2384 }
 0xe9e   : > { %v2386_v58 = vmul.f32 %v2385_v57, %v4198_v37 }
 0xea0   : > { %v2387_v59 = vsub.f32 %v2382_v54, %v2386_v58  ;;  %v3114_v58 = vld [vmem:[%s3950_s30] sm:$0xff] }
 0xea1   : > { %2623 = vmatpush.bf16.msra.mxu0 %v3114_v58 }
 0xea2   : > { %v2388_v60 = vmul.f32 %v2387_v59, %v2387_v59 }
 0xea4   : > { %v2389_v61 = vsel %vm1939_vm12, %v2388_v60, 0.0 }
 0xea5   : > { %2390 = vadd.xlane.f32.xlu1 %v2389_v61 }
 0xf18   : > { %v2391_v0 = vpop.xlane.xlu1 %2390 }
 0xf19   : > { %v2392_v1 = vmul.f32 %v2391_v0, %v4198_v37 }
 0xf1b   : > { %v2393_v3 = vadd.f32 1e-05, %v2392_v1  ;;  %v3304_v1 = vld [vmem:[#allocation13] ss:$0 sm:$0xff] }
 0xf1d   : > { %3337 = vrsqrt.f32 %v2393_v3  ;;  %vm2400_vm6 = vweird.f32 %v2393_v3 }
 0xf23   : > { %v3338_v6 = vpop.eup %3337 }
 0xf24   : > { %v2395_v8 = vmul.f32 %v3338_v6, %v2393_v3  ;;  %vm2401_vm5 = vweird.f32 %v3338_v6  ;;  %v3305_v3 = vld [vmem:[#allocation15] ss:$0 sm:$0xff] }
 0xf25   : > { %vm2402_vm7 = vmor %vm2400_vm6, %vm2401_vm5 }
 0xf26   : > { %v2396_v9 = vmul.f32 %v3338_v6, %v2395_v8 }
 0xf28   : > { %v2397_v10 = vmul.f32 0.5, %v2396_v9 }
 0xf2a   : > { %v2398_v11 = vsub.f32 1.5, %v2397_v10 }
 0xf2c   : > { %v2399_v12 = vmul.f32 %v3338_v6, %v2398_v11 }
 0xf2e   : > { %v2403_v14 = vsel %vm2402_vm7, %v3338_v6, %v2399_v12 }
 0xf2f   : > { %v2404_v16 = vmul.f32 %v2403_v14, %v2387_v59 }
 0xf31   : > { %v2408_v18 = vmul.f32 %v3300_v13, %v2404_v16 }
 0xf33   : > { %v2412_v19 = vadd.f32 %v3301_v15, %v2408_v18 }
 0xf35   : > { %v2414_v20 = vmul.f32 0.044715, %v2412_v19  ;;  %v2413_v25 = vmul.f32 0.5, %v2412_v19 }
 0xf37   : > { %v2415_v21 = vmul.f32 %v2414_v20, %v2412_v19 }
 0xf39   : > { %v2416_v5 = vmul.f32 %v2415_v21, %v2412_v19 }
 0xf3b   : > { %v2417_v22 = vadd.f32 %v2416_v5, %v2412_v19  ;;  %v3306_v19 = vld [vmem:[#allocation16] ss:$0 sm:$0xff] }
 0xf3d   : > { %v2418_v23 = vmul.f32 0.7978846, %v2417_v22 }
 0xf3f   : > { %3339 = vtanh.f32 %v2418_v23 }
 0xf45   : > { %v3340_v24 = vpop.eup %3339 }
 0xf46   : > { %v2420_v26 = vadd.f32 1.0, %v3340_v24 }
 0xf48   : > { %v2421_v27 = vmul.f32 %v2420_v26, %v2413_v25 }
 0xf4a   : > { %v2422_v28 = vpack.c.bf16 %v2421_v27, %v2421_v27 }
 0xf4c   : > { %3043 = vmatmul.msk.bf16.vlgmr.msrb.gmra.mxu1 %vm1939_vm12, %v2422_v28 }
 0xfc9   : > { %v2459_v35 = vpop.f32.mrf.mxu1 }
 0xfca   : > { %v2463_v36 = vadd.f32 %v2459_v35, %v4220_v17 }
 0xfcc   : > { %v2467_v38 = vadd.f32 %v3302_v34, %v2463_v36 }
 0xfce   : > { %v2488_v39 = vpack.c.bf16 %v2467_v38, %v2467_v38 }
 0xfd0   : > { %3061 = vmatmul.msk.bf16.vlgmr.msrb.gmra.mxu3 %vm1488_vm0, %v2488_v39 }
 0xfd1   : > { %v2461_v40 = vpop.f32.mrf.mxu1 }
0x1053   : > { %v2541_v43 = vpop.f32.mrf.mxu3 }
0x1054   : > { %v2542_v44 = vadd.f32 %v2541_v43, %v2513_v41 }
0x1056   : > { %v2548_v45 = vadd.f32 %v3303_v7, %v2542_v44 }
0x1058   : > { %v2549_v46 = vsel %vm1939_vm12, %v2548_v45, 0.0 }
0x1059   : > { %2550 = vadd.xlane.f32.xlu0 %v2549_v46 }
0x105b   : > { %v2543_v47 = vpop.f32.mrf.mxu3 }
0x10cc   : > { %v2551_v48 = vpop.xlane.xlu0 %2550 }
0x10cd   : > { %v2552_v17 = vmul.f32 %v2551_v48, %v4198_v37 }
0x10cf   : > { %v2553_v49 = vsub.f32 %v2548_v45, %v2552_v17 }
0x10d1   : > { %v2554_v50 = vmul.f32 %v2553_v49, %v2553_v49 }
0x10d3   : > { %v2555_v51 = vsel %vm1939_vm12, %v2554_v50, 0.0 }
0x10d4   : > { %2556 = vadd.xlane.f32.xlu2 %v2555_v51 }
0x1147   : > { %v2557_v54 = vpop.xlane.xlu2 %2556 }
0x1148   : > { %v2558_v55 = vmul.f32 %v2557_v54, %v4198_v37 }
0x114a   : > { %v2559_v57 = vadd.f32 1e-05, %v2558_v55 }
0x114c   : > { %3341 = vrsqrt.f32 %v2559_v57  ;;  %vm2566_vm8 = vweird.f32 %v2559_v57 }
0x1152   : > { %v3342_v59 = vpop.eup %3341 }
0x1153   : > { %v2561_v60 = vmul.f32 %v3342_v59, %v2559_v57  ;;  %vm2567_vm0 = vweird.f32 %v3342_v59 }
0x1154   : > { %vm2568_vm9 = vmor %vm2566_vm8, %vm2567_vm0 }
0x1155   : > { %v2562_v61 = vmul.f32 %v3342_v59, %v2561_v60 }
0x1157   : > { %v2563_v62 = vmul.f32 0.5, %v2562_v61 }
0x1159   : > { %v2564_v63 = vsub.f32 1.5, %v2563_v62 }
0x115b   : > { %v2565_v0 = vmul.f32 %v3342_v59, %v2564_v63 }
0x115d   : > { %v2569_v2 = vsel %vm2568_vm9, %v3342_v59, %v2565_v0 }
0x115e   : > { %v2570_v37 = vmul.f32 %v2569_v2, %v2553_v49 }
0x1160   : > { %v2574_v4 = vmul.f32 %v3304_v1, %v2570_v37 }
0x1162   : > { %v2578_v6 = vadd.f32 %v3305_v3, %v2574_v4 }
0x1164   : > { %v2580_v8 = vmul.f32 0.044715, %v2578_v6  ;;  %v2579_v14 = vmul.f32 0.5, %v2578_v6 }
0x1166   : > { %v2581_v9 = vmul.f32 %v2580_v8, %v2578_v6 }
0x1168   : > { %v2582_v10 = vmul.f32 %v2581_v9, %v2578_v6 }
0x116a   : > { %v2583_v11 = vadd.f32 %v2582_v10, %v2578_v6 }
0x116c   : > { %v2584_v12 = vmul.f32 0.7978846, %v2583_v11 }
0x116e   : > { %3343 = vtanh.f32 %v2584_v12 }
0x1174   : > { %v3344_v13 = vpop.eup %3343 }
0x1175   : > { %v2586_v15 = vadd.f32 1.0, %v3344_v13 }
0x1177   : > { %v2587_v16 = vmul.f32 %v2586_v15, %v2579_v14 }
0x1179   : > { %v2588_v18 = vpack.c.bf16 %v2587_v16, %v2587_v16 }
0x117b   : > { %3078 = vmatmul.msk.bf16.vlgmr.msra.gmra.mxu0 %vm1939_vm12, %v2588_v18 }
0x11f8   : > { %v2625_v20 = vpop.f32.mrf.mxu0 }
0x11f9   : > { %v2629_v21 = vadd.f32 %v2625_v20, %v2467_v38 }
0x11fb   : > { %v2633_v5 = vadd.f32 %v3306_v19, %v2629_v21 }
0x11fd   : > { %v2634_v22 = vpack.c.bf16 %v2633_v5, %v2633_v5 }
0x11ff   : > { %2636 = vst.msk [vmem:[%s1478_s15] sm:$0xf] %vm2635_vm10, %v2634_v22 }
0x1200   : > { %v2627_v23 = vpop.f32.mrf.mxu0 }
0x1201 PF: > { %s4387_s0 = sld [smem:[#allocation50_spill]] }
0x1207   : > { %s101_s15 = sadd.s32 1, %s4387_s0  }
0x1208   : > { %p98_p2 = scmp.ge.s32.totalorder %s101_s15, 6  }
0x120a   :  { %100 = sbr.rel (!%p98_p2) target bundleno = 79 (0x4f), region = 313 }
0x120f   :  { %2656 = vsyncpa [#allocation3], 1 }
0x1210   :  { %2658 = vsyncpa [#allocation3 + $0x1], 1 }
0x1211   :  { %2659 = vsyncpa [#allocation5], 1 }
0x1212   :  { %2660 = vsyncpa [#allocation8], 1 }
0x1213   :  { %2661 = vsyncpa [#allocation11], 1 }
0x1214   :  { %2662 = vsyncpa [#allocation14], 1 }
0x1215   :  { %2663 = vsyncpa [#allocation17], 1 }

</bundles_post_ra>
